<compile_context>
chip_gen: v5e
topology: v5e:2x2
jax: 0.10.0
libtpu: 0.0.40
codegen_flags: <defaults>
</compile_context>

<pallas_src>
import jax
import jax.numpy as jnp
from jax import lax
from jax.experimental import pallas as pl
from jax.experimental.pallas import tpu as pltpu

NUM_ACTIONS = 6

# Static network geometry (hard-coded by the torch module via 16*5*5).
H0 = W0 = 84          # input spatial
C0 = 4                # input channels
OH1 = OW1 = 21        # conv1 output spatial  ((84-3)//4 + 1)
C1 = 16               # conv1 output channels
OH2 = OW2 = 5         # conv2 output spatial  ((21-3)//4 + 1)
C2 = 16               # conv2 output channels
K = 3                 # conv kernel size
S = 4                 # conv stride
FC = 64               # fc hidden width


# ----------------------------- Pallas kernel ------------------------------

def _fused_kernel(x_ref, rh1_ref, m1_ref, b1_ref, rh2_ref, m2_ref, b2_ref,
                  wfc_ref, bfc_ref, wh_ref, bh_ref, pi_ref, v_ref):
    """Whole forward for one image (grid step): conv1->conv2->fc->pi/v."""
    f32 = jnp.float32

    # ---- conv1 + ReLU: h1[oh, ow*16 + co], shape (21, 336), channels-last
    # out1 = sum_{ki, c} (RH1[ki] @ x[c]) @ M1[ki, c]
    #   RH1[ki][oh, h]          = 1 iff h == 4*oh + ki           (row subsample)
    #   M1[ki, c][w, ow*16+co]  = w1[co, c, ki, kj] iff w == 4*ow + kj
    acc1 = jnp.zeros((OH1, OW1 * C1), f32)
    for ki in range(K):
        rh = rh1_ref[ki]                                           # (21, 84)
        for c in range(C0):
            u = jnp.dot(rh, x_ref[0, c], preferred_element_type=f32)   # (21, 84)
            acc1 = acc1 + jnp.dot(u, m1_ref[ki, c], preferred_element_type=f32)
    h1 = jnp.maximum(acc1 + b1_ref[...], 0.0)                      # (21, 336)

    # ---- conv2 + ReLU: h2[oh2, ow2*16 + co], shape (5, 80) ----------------
    # out2 = sum_{ki} (RH2[ki] @ h1) @ M2[ki]
    acc2 = jnp.zeros((OH2, OW2 * C2), f32)
    for ki in range(K):
        sel = jnp.dot(rh2_ref[ki], h1, preferred_element_type=f32)     # (5, 336)
        acc2 = acc2 + jnp.dot(sel, m2_ref[ki], preferred_element_type=f32)
    h2 = jnp.maximum(acc2 + b2_ref[...], 0.0)                      # (5, 80)

    # ---- fc + ReLU (torch NCHW-flatten order folded into wfc_ref) ---------
    fc = jnp.zeros((1, FC), f32)
    for oh in range(OH2):
        fc = fc + jnp.dot(h2[oh:oh + 1, :], wfc_ref[oh],
                          preferred_element_type=f32)
    fc = jnp.maximum(fc + bfc_ref[...], 0.0)                       # (1, 64)

    # ---- fused pi / v head: one matmul, split columns ----------------------
    head = jnp.dot(fc, wh_ref[...], preferred_element_type=f32) + bh_ref[...]
    a = pi_ref.shape[-1]
    pi_ref[0] = head[:, :a]
    v_ref[0] = head[:, a:a + 1]


# ---------------------- trace-time weight preprocessing --------------------

def _build_tables(p):
    """Fold stride-4 column selection + layout permutations into the weights.

    All work here is weight-sized (< 2 MB) and runs once per call at the XLA
    level; no activation-sized relayouts remain outside the kernel.
    """
    f32 = jnp.float32

    # One-hot stride-4 ROW selection matrices (applied on the MXU in-kernel).
    rh1 = (jnp.arange(H0)[None, None, :] ==
           (S * jnp.arange(OH1)[None, :, None] + jnp.arange(K)[:, None, None])
           ).astype(f32)                                    # (3, 21, 84)
    rh2 = (jnp.arange(OH1)[None, None, :] ==
           (S * jnp.arange(OH2)[None, :, None] + jnp.arange(K)[:, None, None])
           ).astype(f32)                                    # (3, 5, 21)

    # One-hot stride-4 COLUMN selections, folded into the conv weights below.
    sw1 = (jnp.arange(W0)[None, :, None] ==
           (S * jnp.arange(OW1)[None, None, :] + jnp.arange(K)[:, None, None])
           ).astype(f32)                                    # (3, 84, 21)
    sw2 = (jnp.arange(OW1)[None, :, None] ==
           (S * jnp.arange(OW2)[None, None, :] + jnp.arange(K)[:, None, None])
           ).astype(f32)                                    # (3, 21, 5)

    # m1[ki, c, w, ow*16+co] = w1[co, c, ki, kj]  iff  w == 4*ow + kj
    m1 = jnp.einsum('jwo,zcij->icwoz', sw1, p['w1']).reshape(K, C0, W0, OW1 * C1)
    # m2[ki, ow1*16+c, ow2*16+co] = w2[co, c, ki, kj]  iff  ow1 == 4*ow2 + kj
    m2 = jnp.einsum('jqp,zcij->iqcpz', sw2, p['w2']).reshape(K, OW1 * C1, OW2 * C2)

    # Biases tiled to the channels-last column layout (col = ow*16 + co).
    b1t = jnp.tile(p['b1'], OW1)[None, :]                   # (1, 336)
    b2t = jnp.tile(p['b2'], OW2)[None, :]                   # (1, 80)

    # fc weight: rows permuted from torch's view(N,400) NCHW order
    # (c, oh, ow) to our channels-last order (oh, ow, c), split per oh row.
    wfc = (p['wfc'].reshape(FC, C2, OH2, OW2)
           .transpose(2, 3, 1, 0)
           .reshape(OH2, OW2 * C2, FC))                     # (5, 80, 64)
    bfc = p['bfc'][None, :]                                 # (1, 64)

    # pi / v fused head.
    whead = jnp.concatenate([p['wpi'].T, p['wv'].T], axis=1)    # (64, A+1)
    bhead = jnp.concatenate([p['bpi'], p['bv']])[None, :]       # (1, A+1)

    return rh1, m1, b1t, rh2, m2, b2t, wfc, bfc, whead, bhead


# ------------------------------ forward ------------------------------------

def forward(x, p):
    """Pi logits (N, num_actions) and value (N, 1), matching the torch module."""
    N = x.shape[0]
    A = p['wpi'].shape[0]
    rh1, m1, b1t, rh2, m2, b2t, wfc, bfc, whead, bhead = _build_tables(p)

    def const_spec(shape):
        return pl.BlockSpec(shape, lambda n: (0,) * len(shape))

    pi3, v3 = pl.pallas_call(
        _fused_kernel,
        out_shape=(jax.ShapeDtypeStruct((N, 1, A), jnp.float32),
                   jax.ShapeDtypeStruct((N, 1, 1), jnp.float32)),
        grid=(N,),
        in_specs=[
            pl.BlockSpec((1, C0, H0, W0), lambda n: (n, 0, 0, 0)),  # image n
            const_spec(rh1.shape),
            const_spec(m1.shape),
            const_spec(b1t.shape),
            const_spec(rh2.shape),
            const_spec(m2.shape),
            const_spec(b2t.shape),
            const_spec(wfc.shape),
            const_spec(bfc.shape),
            const_spec(whead.shape),
            const_spec(bhead.shape),
        ],
        out_specs=(pl.BlockSpec((1, 1, A), lambda n: (n, 0, 0)),
                   pl.BlockSpec((1, 1, 1), lambda n: (n, 0, 0))),
        compiler_params=pltpu.CompilerParams(
            dimension_semantics=("parallel",)),
    )(x, rh1, m1, b1t, rh2, m2, b2t, wfc, bfc, whead, bhead)

    return pi3.reshape(N, A), v3.reshape(N, 1)


# -------------------------- params & reference -----------------------------

def init_params(key, num_actions):
    def uni(k, shape, fan_in):
        bound = 1.0 / (fan_in ** 0.5)
        return jax.random.uniform(k, shape, jnp.float32, -bound, bound)

    ks = jax.random.split(key, 10)
    return {
        "w1": uni(ks[0], (16, 4, 3, 3), 4 * 9),
        "b1": uni(ks[1], (16,), 4 * 9),
        "w2": uni(ks[2], (16, 16, 3, 3), 16 * 9),
        "b2": uni(ks[3], (16,), 16 * 9),
        "wfc": uni(ks[4], (64, 16 * 5 * 5), 16 * 5 * 5),
        "bfc": uni(ks[5], (64,), 16 * 5 * 5),
        "wpi": uni(ks[6], (num_actions, 64), 64),
        "bpi": uni(ks[7], (num_actions,), 64),
        "wv": uni(ks[8], (1, 64), 64),
        "bv": uni(ks[9], (1,), 64),
    }


def reference_forward(x, p):
    dn = ("NCHW", "OIHW", "NCHW")
    h = lax.conv_general_dilated(x, p["w1"], (4, 4), "VALID", dimension_numbers=dn)
    h = jnp.maximum(h + p["b1"].reshape(1, 16, 1, 1), 0.0)
    h = lax.conv_general_dilated(h, p["w2"], (4, 4), "VALID", dimension_numbers=dn)
    h = jnp.maximum(h + p["b2"].reshape(1, 16, 1, 1), 0.0)
    h = h.reshape(x.shape[0], 16 * 5 * 5)
    fc = jnp.maximum(h @ p["wfc"].T + p["bfc"], 0.0)
    return fc @ p["wpi"].T + p["bpi"], fc @ p["wv"].T + p["bv"]


# --------------------------------- main ------------------------------------

if __name__ == "__main__":
    key = jax.random.PRNGKey(0)
    # The module hard-codes 84x84 inputs via the view(N, 16*5*5).
    x = jax.random.normal(key, (2, 4, 84, 84), jnp.float32)
    params = init_params(jax.random.PRNGKey(42), NUM_ACTIONS)

    pi_out, v_out = jax.jit(forward)(x, params)
    jax.block_until_ready((pi_out, v_out))

    assert pi_out.shape == (2, NUM_ACTIONS) and pi_out.dtype == jnp.float32
    assert v_out.shape == (2, 1) and v_out.dtype == jnp.float32

    pi_gold, v_gold = reference_forward(x, params)
    assert jnp.allclose(pi_out, pi_gold, rtol=2e-2, atol=2e-2)
    assert jnp.allclose(v_out, v_gold, rtol=2e-2, atol=2e-2)

    print("KERNEL_OK")
</pallas_src>

<mosaic_0001>
module attributes {stable_mosaic.version = 11 : i64} {
  func.func @_fused_kernel(%arg0: i32, %arg1: memref<1x4x84x84xf32, #tpu.memory_space<vmem>>, %arg2: memref<3x21x84xf32, #tpu.memory_space<vmem>>, %arg3: memref<3x4x84x336xf32, #tpu.memory_space<vmem>>, %arg4: memref<1x336xf32, #tpu.memory_space<vmem>>, %arg5: memref<3x5x21xf32, #tpu.memory_space<vmem>>, %arg6: memref<3x336x80xf32, #tpu.memory_space<vmem>>, %arg7: memref<1x80xf32, #tpu.memory_space<vmem>>, %arg8: memref<5x80x64xf32, #tpu.memory_space<vmem>>, %arg9: memref<1x64xf32, #tpu.memory_space<vmem>>, %arg10: memref<64x7xf32, #tpu.memory_space<vmem>>, %arg11: memref<1x7xf32, #tpu.memory_space<vmem>>, %arg12: memref<1x1x6xf32, #tpu.memory_space<vmem>>, %arg13: memref<1x1x1xf32, #tpu.memory_space<vmem>>) attributes {dimension_semantics = [#tpu.dimension_semantics<parallel>], iteration_bounds = array<i64: 2>, scalar_prefetch = 0 : i64, scratch_operands = 0 : i64, tpu.core_type = #tpu.core_type<tc>, window_params = [{transform_indices = @transform_0, window_bounds = array<i64: 1, 4, 84, 84>}, {pipeline_mode = #tpu.pipeline_mode<synchronous>, transform_indices = @transform_1, window_bounds = array<i64: 3, 21, 84>}, {pipeline_mode = #tpu.pipeline_mode<synchronous>, transform_indices = @transform_2, window_bounds = array<i64: 3, 4, 84, 336>}, {pipeline_mode = #tpu.pipeline_mode<synchronous>, transform_indices = @transform_3, window_bounds = array<i64: 1, 336>}, {pipeline_mode = #tpu.pipeline_mode<synchronous>, transform_indices = @transform_4, window_bounds = array<i64: 3, 5, 21>}, {pipeline_mode = #tpu.pipeline_mode<synchronous>, transform_indices = @transform_5, window_bounds = array<i64: 3, 336, 80>}, {pipeline_mode = #tpu.pipeline_mode<synchronous>, transform_indices = @transform_6, window_bounds = array<i64: 1, 80>}, {pipeline_mode = #tpu.pipeline_mode<synchronous>, transform_indices = @transform_7, window_bounds = array<i64: 5, 80, 64>}, {pipeline_mode = #tpu.pipeline_mode<synchronous>, transform_indices = @transform_8, window_bounds = array<i64: 1, 64>}, {pipeline_mode = #tpu.pipeline_mode<synchronous>, transform_indices = @transform_9, window_bounds = array<i64: 64, 7>}, {pipeline_mode = #tpu.pipeline_mode<synchronous>, transform_indices = @transform_10, window_bounds = array<i64: 1, 7>}, {transform_indices = @transform_11, window_bounds = array<i64: 1, 1, 6>}, {transform_indices = @transform_12, window_bounds = array<i64: 1, 1, 1>}]} {
    %cst = arith.constant 0.000000e+00 : f32
    %0 = vector.broadcast %cst : f32 to vector<21x336xf32>
    %c0 = arith.constant 0 : index
    %c0_0 = arith.constant 0 : index
    %c0_1 = arith.constant 0 : index
    %1 = vector.load %arg2[%c0, %c0_0, %c0_1] : memref<3x21x84xf32, #tpu.memory_space<vmem>>, vector<1x21x84xf32>
    %2 = vector.shape_cast %1 : vector<1x21x84xf32> to vector<21x84xf32>
    %c0_2 = arith.constant 0 : index
    %c0_3 = arith.constant 0 : index
    %c0_4 = arith.constant 0 : index
    %c0_5 = arith.constant 0 : index
    %3 = vector.load %arg1[%c0_2, %c0_3, %c0_4, %c0_5] : memref<1x4x84x84xf32, #tpu.memory_space<vmem>>, vector<1x1x84x84xf32>
    %4 = vector.shape_cast %3 : vector<1x1x84x84xf32> to vector<84x84xf32>
    %cst_6 = arith.constant dense<0.000000e+00> : vector<21x84xf32>
    %5 = tpu.matmul %2, %4, %cst_6 {dimension_numbers = #tpu.dot_dimension_numbers<[1], [0], [0], [1], [0, 0, 1, 1], [], []>} : vector<21x84xf32>, vector<84x84xf32>, vector<21x84xf32> -> vector<21x84xf32>
    %c0_7 = arith.constant 0 : index
    %c0_8 = arith.constant 0 : index
    %c0_9 = arith.constant 0 : index
    %c0_10 = arith.constant 0 : index
    %6 = vector.load %arg3[%c0_7, %c0_8, %c0_9, %c0_10] : memref<3x4x84x336xf32, #tpu.memory_space<vmem>>, vector<1x1x84x336xf32>
    %7 = vector.shape_cast %6 : vector<1x1x84x336xf32> to vector<84x336xf32>
    %cst_11 = arith.constant dense<0.000000e+00> : vector<21x336xf32>
    %8 = tpu.matmul %5, %7, %cst_11 {dimension_numbers = #tpu.dot_dimension_numbers<[1], [0], [0], [1], [0, 0, 1, 1], [], []>} : vector<21x84xf32>, vector<84x336xf32>, vector<21x336xf32> -> vector<21x336xf32>
    %9 = arith.addf %0, %8 : vector<21x336xf32>
    %c0_12 = arith.constant 0 : index
    %c1 = arith.constant 1 : index
    %c0_13 = arith.constant 0 : index
    %c0_14 = arith.constant 0 : index
    %10 = vector.load %arg1[%c0_12, %c1, %c0_13, %c0_14] : memref<1x4x84x84xf32, #tpu.memory_space<vmem>>, vector<1x1x84x84xf32>
    %11 = vector.shape_cast %10 : vector<1x1x84x84xf32> to vector<84x84xf32>
    %cst_15 = arith.constant dense<0.000000e+00> : vector<21x84xf32>
    %12 = tpu.matmul %2, %11, %cst_15 {dimension_numbers = #tpu.dot_dimension_numbers<[1], [0], [0], [1], [0, 0, 1, 1], [], []>} : vector<21x84xf32>, vector<84x84xf32>, vector<21x84xf32> -> vector<21x84xf32>
    %c0_16 = arith.constant 0 : index
    %c1_17 = arith.constant 1 : index
    %c0_18 = arith.constant 0 : index
    %c0_19 = arith.constant 0 : index
    %13 = vector.load %arg3[%c0_16, %c1_17, %c0_18, %c0_19] : memref<3x4x84x336xf32, #tpu.memory_space<vmem>>, vector<1x1x84x336xf32>
    %14 = vector.shape_cast %13 : vector<1x1x84x336xf32> to vector<84x336xf32>
    %cst_20 = arith.constant dense<0.000000e+00> : vector<21x336xf32>
    %15 = tpu.matmul %12, %14, %cst_20 {dimension_numbers = #tpu.dot_dimension_numbers<[1], [0], [0], [1], [0, 0, 1, 1], [], []>} : vector<21x84xf32>, vector<84x336xf32>, vector<21x336xf32> -> vector<21x336xf32>
    %16 = arith.addf %9, %15 : vector<21x336xf32>
    %c0_21 = arith.constant 0 : index
    %c2 = arith.constant 2 : index
    %c0_22 = arith.constant 0 : index
    %c0_23 = arith.constant 0 : index
    %17 = vector.load %arg1[%c0_21, %c2, %c0_22, %c0_23] : memref<1x4x84x84xf32, #tpu.memory_space<vmem>>, vector<1x1x84x84xf32>
    %18 = vector.shape_cast %17 : vector<1x1x84x84xf32> to vector<84x84xf32>
    %cst_24 = arith.constant dense<0.000000e+00> : vector<21x84xf32>
    %19 = tpu.matmul %2, %18, %cst_24 {dimension_numbers = #tpu.dot_dimension_numbers<[1], [0], [0], [1], [0, 0, 1, 1], [], []>} : vector<21x84xf32>, vector<84x84xf32>, vector<21x84xf32> -> vector<21x84xf32>
    %c0_25 = arith.constant 0 : index
    %c2_26 = arith.constant 2 : index
    %c0_27 = arith.constant 0 : index
    %c0_28 = arith.constant 0 : index
    %20 = vector.load %arg3[%c0_25, %c2_26, %c0_27, %c0_28] : memref<3x4x84x336xf32, #tpu.memory_space<vmem>>, vector<1x1x84x336xf32>
    %21 = vector.shape_cast %20 : vector<1x1x84x336xf32> to vector<84x336xf32>
    %cst_29 = arith.constant dense<0.000000e+00> : vector<21x336xf32>
    %22 = tpu.matmul %19, %21, %cst_29 {dimension_numbers = #tpu.dot_dimension_numbers<[1], [0], [0], [1], [0, 0, 1, 1], [], []>} : vector<21x84xf32>, vector<84x336xf32>, vector<21x336xf32> -> vector<21x336xf32>
    %23 = arith.addf %16, %22 : vector<21x336xf32>
    %c0_30 = arith.constant 0 : index
    %c3 = arith.constant 3 : index
    %c0_31 = arith.constant 0 : index
    %c0_32 = arith.constant 0 : index
    %24 = vector.load %arg1[%c0_30, %c3, %c0_31, %c0_32] : memref<1x4x84x84xf32, #tpu.memory_space<vmem>>, vector<1x1x84x84xf32>
    %25 = vector.shape_cast %24 : vector<1x1x84x84xf32> to vector<84x84xf32>
    %cst_33 = arith.constant dense<0.000000e+00> : vector<21x84xf32>
    %26 = tpu.matmul %2, %25, %cst_33 {dimension_numbers = #tpu.dot_dimension_numbers<[1], [0], [0], [1], [0, 0, 1, 1], [], []>} : vector<21x84xf32>, vector<84x84xf32>, vector<21x84xf32> -> vector<21x84xf32>
    %c0_34 = arith.constant 0 : index
    %c3_35 = arith.constant 3 : index
    %c0_36 = arith.constant 0 : index
    %c0_37 = arith.constant 0 : index
    %27 = vector.load %arg3[%c0_34, %c3_35, %c0_36, %c0_37] : memref<3x4x84x336xf32, #tpu.memory_space<vmem>>, vector<1x1x84x336xf32>
    %28 = vector.shape_cast %27 : vector<1x1x84x336xf32> to vector<84x336xf32>
    %cst_38 = arith.constant dense<0.000000e+00> : vector<21x336xf32>
    %29 = tpu.matmul %26, %28, %cst_38 {dimension_numbers = #tpu.dot_dimension_numbers<[1], [0], [0], [1], [0, 0, 1, 1], [], []>} : vector<21x84xf32>, vector<84x336xf32>, vector<21x336xf32> -> vector<21x336xf32>
    %30 = arith.addf %23, %29 : vector<21x336xf32>
    %c1_39 = arith.constant 1 : index
    %c0_40 = arith.constant 0 : index
    %c0_41 = arith.constant 0 : index
    %31 = vector.load %arg2[%c1_39, %c0_40, %c0_41] : memref<3x21x84xf32, #tpu.memory_space<vmem>>, vector<1x21x84xf32>
    %32 = vector.shape_cast %31 : vector<1x21x84xf32> to vector<21x84xf32>
    %c0_42 = arith.constant 0 : index
    %c0_43 = arith.constant 0 : index
    %c0_44 = arith.constant 0 : index
    %c0_45 = arith.constant 0 : index
    %33 = vector.load %arg1[%c0_42, %c0_43, %c0_44, %c0_45] : memref<1x4x84x84xf32, #tpu.memory_space<vmem>>, vector<1x1x84x84xf32>
    %34 = vector.shape_cast %33 : vector<1x1x84x84xf32> to vector<84x84xf32>
    %cst_46 = arith.constant dense<0.000000e+00> : vector<21x84xf32>
    %35 = tpu.matmul %32, %34, %cst_46 {dimension_numbers = #tpu.dot_dimension_numbers<[1], [0], [0], [1], [0, 0, 1, 1], [], []>} : vector<21x84xf32>, vector<84x84xf32>, vector<21x84xf32> -> vector<21x84xf32>
    %c1_47 = arith.constant 1 : index
    %c0_48 = arith.constant 0 : index
    %c0_49 = arith.constant 0 : index
    %c0_50 = arith.constant 0 : index
    %36 = vector.load %arg3[%c1_47, %c0_48, %c0_49, %c0_50] : memref<3x4x84x336xf32, #tpu.memory_space<vmem>>, vector<1x1x84x336xf32>
    %37 = vector.shape_cast %36 : vector<1x1x84x336xf32> to vector<84x336xf32>
    %cst_51 = arith.constant dense<0.000000e+00> : vector<21x336xf32>
    %38 = tpu.matmul %35, %37, %cst_51 {dimension_numbers = #tpu.dot_dimension_numbers<[1], [0], [0], [1], [0, 0, 1, 1], [], []>} : vector<21x84xf32>, vector<84x336xf32>, vector<21x336xf32> -> vector<21x336xf32>
    %39 = arith.addf %30, %38 : vector<21x336xf32>
    %c0_52 = arith.constant 0 : index
    %c1_53 = arith.constant 1 : index
    %c0_54 = arith.constant 0 : index
    %c0_55 = arith.constant 0 : index
    %40 = vector.load %arg1[%c0_52, %c1_53, %c0_54, %c0_55] : memref<1x4x84x84xf32, #tpu.memory_space<vmem>>, vector<1x1x84x84xf32>
    %41 = vector.shape_cast %40 : vector<1x1x84x84xf32> to vector<84x84xf32>
    %cst_56 = arith.constant dense<0.000000e+00> : vector<21x84xf32>
    %42 = tpu.matmul %32, %41, %cst_56 {dimension_numbers = #tpu.dot_dimension_numbers<[1], [0], [0], [1], [0, 0, 1, 1], [], []>} : vector<21x84xf32>, vector<84x84xf32>, vector<21x84xf32> -> vector<21x84xf32>
    %c1_57 = arith.constant 1 : index
    %c1_58 = arith.constant 1 : index
    %c0_59 = arith.constant 0 : index
    %c0_60 = arith.constant 0 : index
    %43 = vector.load %arg3[%c1_57, %c1_58, %c0_59, %c0_60] : memref<3x4x84x336xf32, #tpu.memory_space<vmem>>, vector<1x1x84x336xf32>
    %44 = vector.shape_cast %43 : vector<1x1x84x336xf32> to vector<84x336xf32>
    %cst_61 = arith.constant dense<0.000000e+00> : vector<21x336xf32>
    %45 = tpu.matmul %42, %44, %cst_61 {dimension_numbers = #tpu.dot_dimension_numbers<[1], [0], [0], [1], [0, 0, 1, 1], [], []>} : vector<21x84xf32>, vector<84x336xf32>, vector<21x336xf32> -> vector<21x336xf32>
    %46 = arith.addf %39, %45 : vector<21x336xf32>
    %c0_62 = arith.constant 0 : index
    %c2_63 = arith.constant 2 : index
    %c0_64 = arith.constant 0 : index
    %c0_65 = arith.constant 0 : index
    %47 = vector.load %arg1[%c0_62, %c2_63, %c0_64, %c0_65] : memref<1x4x84x84xf32, #tpu.memory_space<vmem>>, vector<1x1x84x84xf32>
    %48 = vector.shape_cast %47 : vector<1x1x84x84xf32> to vector<84x84xf32>
    %cst_66 = arith.constant dense<0.000000e+00> : vector<21x84xf32>
    %49 = tpu.matmul %32, %48, %cst_66 {dimension_numbers = #tpu.dot_dimension_numbers<[1], [0], [0], [1], [0, 0, 1, 1], [], []>} : vector<21x84xf32>, vector<84x84xf32>, vector<21x84xf32> -> vector<21x84xf32>
    %c1_67 = arith.constant 1 : index
    %c2_68 = arith.constant 2 : index
    %c0_69 = arith.constant 0 : index
    %c0_70 = arith.constant 0 : index
    %50 = vector.load %arg3[%c1_67, %c2_68, %c0_69, %c0_70] : memref<3x4x84x336xf32, #tpu.memory_space<vmem>>, vector<1x1x84x336xf32>
    %51 = vector.shape_cast %50 : vector<1x1x84x336xf32> to vector<84x336xf32>
    %cst_71 = arith.constant dense<0.000000e+00> : vector<21x336xf32>
    %52 = tpu.matmul %49, %51, %cst_71 {dimension_numbers = #tpu.dot_dimension_numbers<[1], [0], [0], [1], [0, 0, 1, 1], [], []>} : vector<21x84xf32>, vector<84x336xf32>, vector<21x336xf32> -> vector<21x336xf32>
    %53 = arith.addf %46, %52 : vector<21x336xf32>
    %c0_72 = arith.constant 0 : index
    %c3_73 = arith.constant 3 : index
    %c0_74 = arith.constant 0 : index
    %c0_75 = arith.constant 0 : index
    %54 = vector.load %arg1[%c0_72, %c3_73, %c0_74, %c0_75] : memref<1x4x84x84xf32, #tpu.memory_space<vmem>>, vector<1x1x84x84xf32>
    %55 = vector.shape_cast %54 : vector<1x1x84x84xf32> to vector<84x84xf32>
    %cst_76 = arith.constant dense<0.000000e+00> : vector<21x84xf32>
    %56 = tpu.matmul %32, %55, %cst_76 {dimension_numbers = #tpu.dot_dimension_numbers<[1], [0], [0], [1], [0, 0, 1, 1], [], []>} : vector<21x84xf32>, vector<84x84xf32>, vector<21x84xf32> -> vector<21x84xf32>
    %c1_77 = arith.constant 1 : index
    %c3_78 = arith.constant 3 : index
    %c0_79 = arith.constant 0 : index
    %c0_80 = arith.constant 0 : index
    %57 = vector.load %arg3[%c1_77, %c3_78, %c0_79, %c0_80] : memref<3x4x84x336xf32, #tpu.memory_space<vmem>>, vector<1x1x84x336xf32>
    %58 = vector.shape_cast %57 : vector<1x1x84x336xf32> to vector<84x336xf32>
    %cst_81 = arith.constant dense<0.000000e+00> : vector<21x336xf32>
    %59 = tpu.matmul %56, %58, %cst_81 {dimension_numbers = #tpu.dot_dimension_numbers<[1], [0], [0], [1], [0, 0, 1, 1], [], []>} : vector<21x84xf32>, vector<84x336xf32>, vector<21x336xf32> -> vector<21x336xf32>
    %60 = arith.addf %53, %59 : vector<21x336xf32>
    %c2_82 = arith.constant 2 : index
    %c0_83 = arith.constant 0 : index
    %c0_84 = arith.constant 0 : index
    %61 = vector.load %arg2[%c2_82, %c0_83, %c0_84] : memref<3x21x84xf32, #tpu.memory_space<vmem>>, vector<1x21x84xf32>
    %62 = vector.shape_cast %61 : vector<1x21x84xf32> to vector<21x84xf32>
    %c0_85 = arith.constant 0 : index
    %c0_86 = arith.constant 0 : index
    %c0_87 = arith.constant 0 : index
    %c0_88 = arith.constant 0 : index
    %63 = vector.load %arg1[%c0_85, %c0_86, %c0_87, %c0_88] : memref<1x4x84x84xf32, #tpu.memory_space<vmem>>, vector<1x1x84x84xf32>
    %64 = vector.shape_cast %63 : vector<1x1x84x84xf32> to vector<84x84xf32>
    %cst_89 = arith.constant dense<0.000000e+00> : vector<21x84xf32>
    %65 = tpu.matmul %62, %64, %cst_89 {dimension_numbers = #tpu.dot_dimension_numbers<[1], [0], [0], [1], [0, 0, 1, 1], [], []>} : vector<21x84xf32>, vector<84x84xf32>, vector<21x84xf32> -> vector<21x84xf32>
    %c2_90 = arith.constant 2 : index
    %c0_91 = arith.constant 0 : index
    %c0_92 = arith.constant 0 : index
    %c0_93 = arith.constant 0 : index
    %66 = vector.load %arg3[%c2_90, %c0_91, %c0_92, %c0_93] : memref<3x4x84x336xf32, #tpu.memory_space<vmem>>, vector<1x1x84x336xf32>
    %67 = vector.shape_cast %66 : vector<1x1x84x336xf32> to vector<84x336xf32>
    %cst_94 = arith.constant dense<0.000000e+00> : vector<21x336xf32>
    %68 = tpu.matmul %65, %67, %cst_94 {dimension_numbers = #tpu.dot_dimension_numbers<[1], [0], [0], [1], [0, 0, 1, 1], [], []>} : vector<21x84xf32>, vector<84x336xf32>, vector<21x336xf32> -> vector<21x336xf32>
    %69 = arith.addf %60, %68 : vector<21x336xf32>
    %c0_95 = arith.constant 0 : index
    %c1_96 = arith.constant 1 : index
    %c0_97 = arith.constant 0 : index
    %c0_98 = arith.constant 0 : index
    %70 = vector.load %arg1[%c0_95, %c1_96, %c0_97, %c0_98] : memref<1x4x84x84xf32, #tpu.memory_space<vmem>>, vector<1x1x84x84xf32>
    %71 = vector.shape_cast %70 : vector<1x1x84x84xf32> to vector<84x84xf32>
    %cst_99 = arith.constant dense<0.000000e+00> : vector<21x84xf32>
    %72 = tpu.matmul %62, %71, %cst_99 {dimension_numbers = #tpu.dot_dimension_numbers<[1], [0], [0], [1], [0, 0, 1, 1], [], []>} : vector<21x84xf32>, vector<84x84xf32>, vector<21x84xf32> -> vector<21x84xf32>
    %c2_100 = arith.constant 2 : index
    %c1_101 = arith.constant 1 : index
    %c0_102 = arith.constant 0 : index
    %c0_103 = arith.constant 0 : index
    %73 = vector.load %arg3[%c2_100, %c1_101, %c0_102, %c0_103] : memref<3x4x84x336xf32, #tpu.memory_space<vmem>>, vector<1x1x84x336xf32>
    %74 = vector.shape_cast %73 : vector<1x1x84x336xf32> to vector<84x336xf32>
    %cst_104 = arith.constant dense<0.000000e+00> : vector<21x336xf32>
    %75 = tpu.matmul %72, %74, %cst_104 {dimension_numbers = #tpu.dot_dimension_numbers<[1], [0], [0], [1], [0, 0, 1, 1], [], []>} : vector<21x84xf32>, vector<84x336xf32>, vector<21x336xf32> -> vector<21x336xf32>
    %76 = arith.addf %69, %75 : vector<21x336xf32>
    %c0_105 = arith.constant 0 : index
    %c2_106 = arith.constant 2 : index
    %c0_107 = arith.constant 0 : index
    %c0_108 = arith.constant 0 : index
    %77 = vector.load %arg1[%c0_105, %c2_106, %c0_107, %c0_108] : memref<1x4x84x84xf32, #tpu.memory_space<vmem>>, vector<1x1x84x84xf32>
    %78 = vector.shape_cast %77 : vector<1x1x84x84xf32> to vector<84x84xf32>
    %cst_109 = arith.constant dense<0.000000e+00> : vector<21x84xf32>
    %79 = tpu.matmul %62, %78, %cst_109 {dimension_numbers = #tpu.dot_dimension_numbers<[1], [0], [0], [1], [0, 0, 1, 1], [], []>} : vector<21x84xf32>, vector<84x84xf32>, vector<21x84xf32> -> vector<21x84xf32>
    %c2_110 = arith.constant 2 : index
    %c2_111 = arith.constant 2 : index
    %c0_112 = arith.constant 0 : index
    %c0_113 = arith.constant 0 : index
    %80 = vector.load %arg3[%c2_110, %c2_111, %c0_112, %c0_113] : memref<3x4x84x336xf32, #tpu.memory_space<vmem>>, vector<1x1x84x336xf32>
    %81 = vector.shape_cast %80 : vector<1x1x84x336xf32> to vector<84x336xf32>
    %cst_114 = arith.constant dense<0.000000e+00> : vector<21x336xf32>
    %82 = tpu.matmul %79, %81, %cst_114 {dimension_numbers = #tpu.dot_dimension_numbers<[1], [0], [0], [1], [0, 0, 1, 1], [], []>} : vector<21x84xf32>, vector<84x336xf32>, vector<21x336xf32> -> vector<21x336xf32>
    %83 = arith.addf %76, %82 : vector<21x336xf32>
    %c0_115 = arith.constant 0 : index
    %c3_116 = arith.constant 3 : index
    %c0_117 = arith.constant 0 : index
    %c0_118 = arith.constant 0 : index
    %84 = vector.load %arg1[%c0_115, %c3_116, %c0_117, %c0_118] : memref<1x4x84x84xf32, #tpu.memory_space<vmem>>, vector<1x1x84x84xf32>
    %85 = vector.shape_cast %84 : vector<1x1x84x84xf32> to vector<84x84xf32>
    %cst_119 = arith.constant dense<0.000000e+00> : vector<21x84xf32>
    %86 = tpu.matmul %62, %85, %cst_119 {dimension_numbers = #tpu.dot_dimension_numbers<[1], [0], [0], [1], [0, 0, 1, 1], [], []>} : vector<21x84xf32>, vector<84x84xf32>, vector<21x84xf32> -> vector<21x84xf32>
    %c2_120 = arith.constant 2 : index
    %c3_121 = arith.constant 3 : index
    %c0_122 = arith.constant 0 : index
    %c0_123 = arith.constant 0 : index
    %87 = vector.load %arg3[%c2_120, %c3_121, %c0_122, %c0_123] : memref<3x4x84x336xf32, #tpu.memory_space<vmem>>, vector<1x1x84x336xf32>
    %88 = vector.shape_cast %87 : vector<1x1x84x336xf32> to vector<84x336xf32>
    %cst_124 = arith.constant dense<0.000000e+00> : vector<21x336xf32>
    %89 = tpu.matmul %86, %88, %cst_124 {dimension_numbers = #tpu.dot_dimension_numbers<[1], [0], [0], [1], [0, 0, 1, 1], [], []>} : vector<21x84xf32>, vector<84x336xf32>, vector<21x336xf32> -> vector<21x336xf32>
    %90 = arith.addf %83, %89 : vector<21x336xf32>
    %c0_125 = arith.constant 0 : index
    %c0_126 = arith.constant 0 : index
    %91 = vector.load %arg4[%c0_125, %c0_126] : memref<1x336xf32, #tpu.memory_space<vmem>>, vector<1x336xf32>
    %92 = vector.broadcast %91 : vector<1x336xf32> to vector<21x336xf32>
    %93 = arith.addf %90, %92 : vector<21x336xf32>
    %cst_127 = arith.constant 0.000000e+00 : f32
    %94 = vector.broadcast %cst_127 : f32 to vector<21x336xf32>
    %95 = arith.maximumf %93, %94 : vector<21x336xf32>
    %cst_128 = arith.constant 0.000000e+00 : f32
    %96 = vector.broadcast %cst_128 : f32 to vector<5x80xf32>
    %c0_129 = arith.constant 0 : index
    %c0_130 = arith.constant 0 : index
    %c0_131 = arith.constant 0 : index
    %97 = vector.load %arg5[%c0_129, %c0_130, %c0_131] : memref<3x5x21xf32, #tpu.memory_space<vmem>>, vector<1x5x21xf32>
    %98 = vector.shape_cast %97 : vector<1x5x21xf32> to vector<5x21xf32>
    %cst_132 = arith.constant dense<0.000000e+00> : vector<5x336xf32>
    %99 = tpu.matmul %98, %95, %cst_132 {dimension_numbers = #tpu.dot_dimension_numbers<[1], [0], [0], [1], [0, 0, 1, 1], [], []>} : vector<5x21xf32>, vector<21x336xf32>, vector<5x336xf32> -> vector<5x336xf32>
    %c0_133 = arith.constant 0 : index
    %c0_134 = arith.constant 0 : index
    %c0_135 = arith.constant 0 : index
    %100 = vector.load %arg6[%c0_133, %c0_134, %c0_135] : memref<3x336x80xf32, #tpu.memory_space<vmem>>, vector<1x336x80xf32>
    %101 = vector.shape_cast %100 : vector<1x336x80xf32> to vector<336x80xf32>
    %cst_136 = arith.constant dense<0.000000e+00> : vector<5x80xf32>
    %102 = tpu.matmul %99, %101, %cst_136 {dimension_numbers = #tpu.dot_dimension_numbers<[1], [0], [0], [1], [0, 0, 1, 1], [], []>} : vector<5x336xf32>, vector<336x80xf32>, vector<5x80xf32> -> vector<5x80xf32>
    %103 = arith.addf %96, %102 : vector<5x80xf32>
    %c1_137 = arith.constant 1 : index
    %c0_138 = arith.constant 0 : index
    %c0_139 = arith.constant 0 : index
    %104 = vector.load %arg5[%c1_137, %c0_138, %c0_139] : memref<3x5x21xf32, #tpu.memory_space<vmem>>, vector<1x5x21xf32>
    %105 = vector.shape_cast %104 : vector<1x5x21xf32> to vector<5x21xf32>
    %cst_140 = arith.constant dense<0.000000e+00> : vector<5x336xf32>
    %106 = tpu.matmul %105, %95, %cst_140 {dimension_numbers = #tpu.dot_dimension_numbers<[1], [0], [0], [1], [0, 0, 1, 1], [], []>} : vector<5x21xf32>, vector<21x336xf32>, vector<5x336xf32> -> vector<5x336xf32>
    %c1_141 = arith.constant 1 : index
    %c0_142 = arith.constant 0 : index
    %c0_143 = arith.constant 0 : index
    %107 = vector.load %arg6[%c1_141, %c0_142, %c0_143] : memref<3x336x80xf32, #tpu.memory_space<vmem>>, vector<1x336x80xf32>
    %108 = vector.shape_cast %107 : vector<1x336x80xf32> to vector<336x80xf32>
    %cst_144 = arith.constant dense<0.000000e+00> : vector<5x80xf32>
    %109 = tpu.matmul %106, %108, %cst_144 {dimension_numbers = #tpu.dot_dimension_numbers<[1], [0], [0], [1], [0, 0, 1, 1], [], []>} : vector<5x336xf32>, vector<336x80xf32>, vector<5x80xf32> -> vector<5x80xf32>
    %110 = arith.addf %103, %109 : vector<5x80xf32>
    %c2_145 = arith.constant 2 : index
    %c0_146 = arith.constant 0 : index
    %c0_147 = arith.constant 0 : index
    %111 = vector.load %arg5[%c2_145, %c0_146, %c0_147] : memref<3x5x21xf32, #tpu.memory_space<vmem>>, vector<1x5x21xf32>
    %112 = vector.shape_cast %111 : vector<1x5x21xf32> to vector<5x21xf32>
    %cst_148 = arith.constant dense<0.000000e+00> : vector<5x336xf32>
    %113 = tpu.matmul %112, %95, %cst_148 {dimension_numbers = #tpu.dot_dimension_numbers<[1], [0], [0], [1], [0, 0, 1, 1], [], []>} : vector<5x21xf32>, vector<21x336xf32>, vector<5x336xf32> -> vector<5x336xf32>
    %c2_149 = arith.constant 2 : index
    %c0_150 = arith.constant 0 : index
    %c0_151 = arith.constant 0 : index
    %114 = vector.load %arg6[%c2_149, %c0_150, %c0_151] : memref<3x336x80xf32, #tpu.memory_space<vmem>>, vector<1x336x80xf32>
    %115 = vector.shape_cast %114 : vector<1x336x80xf32> to vector<336x80xf32>
    %cst_152 = arith.constant dense<0.000000e+00> : vector<5x80xf32>
    %116 = tpu.matmul %113, %115, %cst_152 {dimension_numbers = #tpu.dot_dimension_numbers<[1], [0], [0], [1], [0, 0, 1, 1], [], []>} : vector<5x336xf32>, vector<336x80xf32>, vector<5x80xf32> -> vector<5x80xf32>
    %117 = arith.addf %110, %116 : vector<5x80xf32>
    %c0_153 = arith.constant 0 : index
    %c0_154 = arith.constant 0 : index
    %118 = vector.load %arg7[%c0_153, %c0_154] : memref<1x80xf32, #tpu.memory_space<vmem>>, vector<1x80xf32>
    %119 = vector.broadcast %118 : vector<1x80xf32> to vector<5x80xf32>
    %120 = arith.addf %117, %119 : vector<5x80xf32>
    %cst_155 = arith.constant 0.000000e+00 : f32
    %121 = vector.broadcast %cst_155 : f32 to vector<5x80xf32>
    %122 = arith.maximumf %120, %121 : vector<5x80xf32>
    %cst_156 = arith.constant 0.000000e+00 : f32
    %123 = vector.broadcast %cst_156 : f32 to vector<1x64xf32>
    %124 = vector.extract_strided_slice %122 {offsets = [0, 0], sizes = [1, 80], strides = [1, 1]} : vector<5x80xf32> to vector<1x80xf32>
    %c0_157 = arith.constant 0 : index
    %c0_158 = arith.constant 0 : index
    %c0_159 = arith.constant 0 : index
    %125 = vector.load %arg8[%c0_157, %c0_158, %c0_159] : memref<5x80x64xf32, #tpu.memory_space<vmem>>, vector<1x80x64xf32>
    %126 = vector.shape_cast %125 : vector<1x80x64xf32> to vector<80x64xf32>
    %cst_160 = arith.constant dense<0.000000e+00> : vector<1x64xf32>
    %127 = tpu.matmul %124, %126, %cst_160 {dimension_numbers = #tpu.dot_dimension_numbers<[1], [0], [0], [1], [0, 0, 1, 1], [], []>} : vector<1x80xf32>, vector<80x64xf32>, vector<1x64xf32> -> vector<1x64xf32>
    %128 = arith.addf %123, %127 : vector<1x64xf32>
    %129 = vector.extract_strided_slice %122 {offsets = [1, 0], sizes = [1, 80], strides = [1, 1]} : vector<5x80xf32> to vector<1x80xf32>
    %c1_161 = arith.constant 1 : index
    %c0_162 = arith.constant 0 : index
    %c0_163 = arith.constant 0 : index
    %130 = vector.load %arg8[%c1_161, %c0_162, %c0_163] : memref<5x80x64xf32, #tpu.memory_space<vmem>>, vector<1x80x64xf32>
    %131 = vector.shape_cast %130 : vector<1x80x64xf32> to vector<80x64xf32>
    %cst_164 = arith.constant dense<0.000000e+00> : vector<1x64xf32>
    %132 = tpu.matmul %129, %131, %cst_164 {dimension_numbers = #tpu.dot_dimension_numbers<[1], [0], [0], [1], [0, 0, 1, 1], [], []>} : vector<1x80xf32>, vector<80x64xf32>, vector<1x64xf32> -> vector<1x64xf32>
    %133 = arith.addf %128, %132 : vector<1x64xf32>
    %134 = vector.extract_strided_slice %122 {offsets = [2, 0], sizes = [1, 80], strides = [1, 1]} : vector<5x80xf32> to vector<1x80xf32>
    %c2_165 = arith.constant 2 : index
    %c0_166 = arith.constant 0 : index
    %c0_167 = arith.constant 0 : index
    %135 = vector.load %arg8[%c2_165, %c0_166, %c0_167] : memref<5x80x64xf32, #tpu.memory_space<vmem>>, vector<1x80x64xf32>
    %136 = vector.shape_cast %135 : vector<1x80x64xf32> to vector<80x64xf32>
    %cst_168 = arith.constant dense<0.000000e+00> : vector<1x64xf32>
    %137 = tpu.matmul %134, %136, %cst_168 {dimension_numbers = #tpu.dot_dimension_numbers<[1], [0], [0], [1], [0, 0, 1, 1], [], []>} : vector<1x80xf32>, vector<80x64xf32>, vector<1x64xf32> -> vector<1x64xf32>
    %138 = arith.addf %133, %137 : vector<1x64xf32>
    %139 = vector.extract_strided_slice %122 {offsets = [3, 0], sizes = [1, 80], strides = [1, 1]} : vector<5x80xf32> to vector<1x80xf32>
    %c3_169 = arith.constant 3 : index
    %c0_170 = arith.constant 0 : index
    %c0_171 = arith.constant 0 : index
    %140 = vector.load %arg8[%c3_169, %c0_170, %c0_171] : memref<5x80x64xf32, #tpu.memory_space<vmem>>, vector<1x80x64xf32>
    %141 = vector.shape_cast %140 : vector<1x80x64xf32> to vector<80x64xf32>
    %cst_172 = arith.constant dense<0.000000e+00> : vector<1x64xf32>
    %142 = tpu.matmul %139, %141, %cst_172 {dimension_numbers = #tpu.dot_dimension_numbers<[1], [0], [0], [1], [0, 0, 1, 1], [], []>} : vector<1x80xf32>, vector<80x64xf32>, vector<1x64xf32> -> vector<1x64xf32>
    %143 = arith.addf %138, %142 : vector<1x64xf32>
    %144 = vector.extract_strided_slice %122 {offsets = [4, 0], sizes = [1, 80], strides = [1, 1]} : vector<5x80xf32> to vector<1x80xf32>
    %c4 = arith.constant 4 : index
    %c0_173 = arith.constant 0 : index
    %c0_174 = arith.constant 0 : index
    %145 = vector.load %arg8[%c4, %c0_173, %c0_174] : memref<5x80x64xf32, #tpu.memory_space<vmem>>, vector<1x80x64xf32>
    %146 = vector.shape_cast %145 : vector<1x80x64xf32> to vector<80x64xf32>
    %cst_175 = arith.constant dense<0.000000e+00> : vector<1x64xf32>
    %147 = tpu.matmul %144, %146, %cst_175 {dimension_numbers = #tpu.dot_dimension_numbers<[1], [0], [0], [1], [0, 0, 1, 1], [], []>} : vector<1x80xf32>, vector<80x64xf32>, vector<1x64xf32> -> vector<1x64xf32>
    %148 = arith.addf %143, %147 : vector<1x64xf32>
    %c0_176 = arith.constant 0 : index
    %c0_177 = arith.constant 0 : index
    %149 = vector.load %arg9[%c0_176, %c0_177] : memref<1x64xf32, #tpu.memory_space<vmem>>, vector<1x64xf32>
    %150 = arith.addf %148, %149 : vector<1x64xf32>
    %cst_178 = arith.constant 0.000000e+00 : f32
    %151 = vector.broadcast %cst_178 : f32 to vector<1x64xf32>
    %152 = arith.maximumf %150, %151 : vector<1x64xf32>
    %c0_179 = arith.constant 0 : index
    %c0_180 = arith.constant 0 : index
    %153 = vector.load %arg10[%c0_179, %c0_180] : memref<64x7xf32, #tpu.memory_space<vmem>>, vector<64x7xf32>
    %cst_181 = arith.constant dense<0.000000e+00> : vector<1x7xf32>
    %154 = tpu.matmul %152, %153, %cst_181 {dimension_numbers = #tpu.dot_dimension_numbers<[1], [0], [0], [1], [0, 0, 1, 1], [], []>} : vector<1x64xf32>, vector<64x7xf32>, vector<1x7xf32> -> vector<1x7xf32>
    %c0_182 = arith.constant 0 : index
    %c0_183 = arith.constant 0 : index
    %155 = vector.load %arg11[%c0_182, %c0_183] : memref<1x7xf32, #tpu.memory_space<vmem>>, vector<1x7xf32>
    %156 = arith.addf %154, %155 : vector<1x7xf32>
    %157 = vector.extract_strided_slice %156 {offsets = [0, 0], sizes = [1, 6], strides = [1, 1]} : vector<1x7xf32> to vector<1x6xf32>
    %c0_184 = arith.constant 0 : index
    %c0_185 = arith.constant 0 : index
    %c0_186 = arith.constant 0 : index
    %158 = vector.load %arg12[%c0_184, %c0_185, %c0_186] : memref<1x1x6xf32, #tpu.memory_space<vmem>>, vector<1x1x6xf32>
    %159 = vector.shape_cast %158 : vector<1x1x6xf32> to vector<1x6xf32>
    %160 = vector.shape_cast %157 : vector<1x6xf32> to vector<1x1x6xf32>
    tpu.vector_store %arg12[%c0_184, %c0_185, %c0_186], %160 {strides = array<i32>} : memref<1x1x6xf32, #tpu.memory_space<vmem>>, vector<1x1x6xf32>,
    %161 = vector.extract_strided_slice %156 {offsets = [0, 6], sizes = [1, 1], strides = [1, 1]} : vector<1x7xf32> to vector<1x1xf32>
    %c0_187 = arith.constant 0 : index
    %c0_188 = arith.constant 0 : index
    %c0_189 = arith.constant 0 : index
    %162 = vector.load %arg13[%c0_187, %c0_188, %c0_189] : memref<1x1x1xf32, #tpu.memory_space<vmem>>, vector<1x1x1xf32>
    %163 = vector.shape_cast %162 : vector<1x1x1xf32> to vector<1x1xf32>
    %164 = vector.shape_cast %161 : vector<1x1xf32> to vector<1x1x1xf32>
    tpu.vector_store %arg13[%c0_187, %c0_188, %c0_189], %164 {strides = array<i32>} : memref<1x1x1xf32, #tpu.memory_space<vmem>>, vector<1x1x1xf32>,
    return
  }
  func.func @transform_0(%arg0: i32) -> (i32, i32, i32, i32) {
    %c0_i32 = arith.constant 0 : i32
    %c0_i32_0 = arith.constant 0 : i32
    %c0_i32_1 = arith.constant 0 : i32
    %c0_i32_2 = arith.constant 0 : i32
    return %arg0, %c0_i32, %c0_i32_0, %c0_i32_1 : i32, i32, i32, i32
  }
  func.func @transform_1(%arg0: i32) -> (i32, i32, i32) {
    %c0_i32 = arith.constant 0 : i32
    %c0_i32_0 = arith.constant 0 : i32
    %c0_i32_1 = arith.constant 0 : i32
    %c0_i32_2 = arith.constant 0 : i32
    return %c0_i32, %c0_i32_0, %c0_i32_1 : i32, i32, i32
  }
  func.func @transform_2(%arg0: i32) -> (i32, i32, i32, i32) {
    %c0_i32 = arith.constant 0 : i32
    %c0_i32_0 = arith.constant 0 : i32
    %c0_i32_1 = arith.constant 0 : i32
    %c0_i32_2 = arith.constant 0 : i32
    %c0_i32_3 = arith.constant 0 : i32
    return %c0_i32, %c0_i32_0, %c0_i32_1, %c0_i32_2 : i32, i32, i32, i32
  }
  func.func @transform_3(%arg0: i32) -> (i32, i32) {
    %c0_i32 = arith.constant 0 : i32
    %c0_i32_0 = arith.constant 0 : i32
    %c0_i32_1 = arith.constant 0 : i32
    return %c0_i32, %c0_i32_0 : i32, i32
  }
  func.func @transform_4(%arg0: i32) -> (i32, i32, i32) {
    %c0_i32 = arith.constant 0 : i32
    %c0_i32_0 = arith.constant 0 : i32
    %c0_i32_1 = arith.constant 0 : i32
    %c0_i32_2 = arith.constant 0 : i32
    return %c0_i32, %c0_i32_0, %c0_i32_1 : i32, i32, i32
  }
  func.func @transform_5(%arg0: i32) -> (i32, i32, i32) {
    %c0_i32 = arith.constant 0 : i32
    %c0_i32_0 = arith.constant 0 : i32
    %c0_i32_1 = arith.constant 0 : i32
    %c0_i32_2 = arith.constant 0 : i32
    return %c0_i32, %c0_i32_0, %c0_i32_1 : i32, i32, i32
  }
  func.func @transform_6(%arg0: i32) -> (i32, i32) {
    %c0_i32 = arith.constant 0 : i32
    %c0_i32_0 = arith.constant 0 : i32
    %c0_i32_1 = arith.constant 0 : i32
    return %c0_i32, %c0_i32_0 : i32, i32
  }
  func.func @transform_7(%arg0: i32) -> (i32, i32, i32) {
    %c0_i32 = arith.constant 0 : i32
    %c0_i32_0 = arith.constant 0 : i32
    %c0_i32_1 = arith.constant 0 : i32
    %c0_i32_2 = arith.constant 0 : i32
    return %c0_i32, %c0_i32_0, %c0_i32_1 : i32, i32, i32
  }
  func.func @transform_8(%arg0: i32) -> (i32, i32) {
    %c0_i32 = arith.constant 0 : i32
    %c0_i32_0 = arith.constant 0 : i32
    %c0_i32_1 = arith.constant 0 : i32
    return %c0_i32, %c0_i32_0 : i32, i32
  }
  func.func @transform_9(%arg0: i32) -> (i32, i32) {
    %c0_i32 = arith.constant 0 : i32
    %c0_i32_0 = arith.constant 0 : i32
    %c0_i32_1 = arith.constant 0 : i32
    return %c0_i32, %c0_i32_0 : i32, i32
  }
  func.func @transform_10(%arg0: i32) -> (i32, i32) {
    %c0_i32 = arith.constant 0 : i32
    %c0_i32_0 = arith.constant 0 : i32
    %c0_i32_1 = arith.constant 0 : i32
    return %c0_i32, %c0_i32_0 : i32, i32
  }
  func.func @transform_11(%arg0: i32) -> (i32, i32, i32) {
    %c0_i32 = arith.constant 0 : i32
    %c0_i32_0 = arith.constant 0 : i32
    %c0_i32_1 = arith.constant 0 : i32
    return %arg0, %c0_i32, %c0_i32_0 : i32, i32, i32
  }
  func.func @transform_12(%arg0: i32) -> (i32, i32, i32) {
    %c0_i32 = arith.constant 0 : i32
    %c0_i32_0 = arith.constant 0 : i32
    %c0_i32_1 = arith.constant 0 : i32
    return %arg0, %c0_i32, %c0_i32_0 : i32, i32, i32
  }
}

</mosaic_0001>

<bundles_post_ra>
// kernel: tile.13
= control target key start
LH: loop header
LB: loop body
LE: loop exit
PB: predicated region body
PF: predicated region fallthrough
CT: control target
= control target key end

     0   :  { %s34_s0 = inlined_call_operand.vmem [shape: f32[16], index: 0, kind: input, shape index: {}]   ;;  %s35_s1 = inlined_call_operand.vmem [shape: f32[21,16], index: 1, kind: output, shape index: {}]  }
   0x1   :  { %v4_v0 = vld [vmem:[%s34_s0] ss:$0 sm:$0xff] }
   0x2   :  { %5 = vst [vmem:[%s35_s1] sm:$0xff] %v4_v0 }
   0x3   :  { %10 = vst [vmem:[%s35_s1 + $0x8] sm:$0xff] %v4_v0 }
   0x4   :  { %11 = vst [vmem:[%s35_s1 + $0x10] sm:$0xff] %v4_v0 }

// kernel: tile.14
= control target key start
LH: loop header
LB: loop body
LE: loop exit
PB: predicated region body
PF: predicated region fallthrough
CT: control target
= control target key end

     0   :  { %s6_s6 = smov 3  ;;  %s20_s9 = smov 3  ;;  %vm3_vm0 = vcmask 130048   ;;  %vm10_vm1 = vcmask 1048448   ;;  %vm17_vm2 = vcmask 917248   ;;  %vm24_vm3 = vcmask 786048   ;;  %s134_s0 = inlined_call_operand.vmem [shape: f32[21,16], index: 0, kind: input, shape index: {}]   ;;  %s135_s1 = inlined_call_operand.vmem [shape: f32[1,336], index: 1, kind: output, shape index: {}]  }
   0x1   :  { %v68_v0 = vld [vmem:[%s134_s0 + $0x7] ss:$8 sm:%s6_s6]   ;;  %s84_s10 = smov 112   ;;  %v70_v1 = vld [vmem:[%s134_s0 + $0x5] ss:$8 sm:%s20_s9]   ;;  %s85_s13 = smov 80  }
   0x2   :  { %8 = vrot.lane.b32.xlu0 %v68_v0, %s84_s10  ;;  %22 = vrot.lane.b32.xlu1 %v70_v1, %s85_s13  ;;  %s13_s14 = smov 3  ;;  %v72_v2 = vld [vmem:[%s134_s0 + $0x3] ss:$8 sm:$0x7]   ;;  %s86_s17 = smov 48   ;;  %vm30_vm4 = vcmask 654848  }
   0x3   :  { %34 = vrot.lane.b32.xlu2 %v72_v2, %s86_s17  ;;  %v69_v3 = vld [vmem:[%s134_s0 + $0x6] ss:$8 sm:%s13_s14]   ;;  %v71_v4 = vld [vmem:[%s134_s0 + $0x4] ss:$8 sm:$0x7]   ;;  %s87_s22 = smov 96  }
   0x4   :  { %v73_v5 = vld [vmem:[%s134_s0 + $0x2] ss:$8 sm:$0x7]   ;;  %s88_s25 = smov 64   ;;  %s89_s26 = smov 32   ;;  %vm36_vm5 = vcmask 523648  }
   0x5   :  { %v74_v6 = vld [vmem:[%s134_s0 + $0x1] ss:$8 sm:$0x7]   ;;  %s90_s29 = smov 16   ;;  %vm42_vm6 = vcmask 392448   ;;  %vm48_vm7 = vcmask 261248  }
   0x6   :  { %v2_v7 = vld [vmem:[%s134_s0] ss:$8 sm:$0x7]  }
   0x7   :  { %4 = vst.msk [vmem:[#allocation0] ss:$8 sm:$0x7] %vm3_vm0, %v2_v7  }
   0xa   :  { %15 = vrot.lane.b32.xlu0 %v69_v3, %s87_s22  ;;  %28 = vrot.lane.b32.xlu1 %v71_v4, %s88_s25 }
   0xb   :  { %40 = vrot.lane.b32.xlu2 %v73_v5, %s89_s26 }
  0x12   :  { %46 = vrot.lane.b32.xlu0 %v74_v6, %s90_s29 }
  0x5d   :  { %v35_v8 = vpop.permute.xlu2 %34  }
  0x65   :  { %v41_v9 = vpop.permute.xlu2 %40  }
  0x74   :  { %v9_v10 = vpop.permute.xlu0 %8   ;;  %v23_v11 = vpop.permute.xlu1 %22  }
  0x75   :  { %11 = vst.msk [vmem:[#allocation0] ss:$8 sm:$0x3] %vm10_vm1, %v9_v10  }
  0x7c   :  { %v16_v12 = vpop.permute.xlu0 %15   ;;  %v29_v13 = vpop.permute.xlu1 %28  }
  0x7d   :  { %18 = vst.msk [vmem:[#allocation0] ss:$8 sm:$0x3] %vm17_vm2, %v16_v12  }
  0x7e   :  { %25 = vst.msk [vmem:[#allocation0] ss:$8 sm:$0x3] %vm24_vm3, %v23_v11  }
  0x7f   :  { %31 = vst.msk [vmem:[#allocation0] ss:$8 sm:$0x7] %vm30_vm4, %v29_v13  }
  0x80   :  { %37 = vst.msk [vmem:[#allocation0] ss:$8 sm:$0x7] %vm36_vm5, %v35_v8  }
  0x81   :  { %43 = vst.msk [vmem:[#allocation0] ss:$8 sm:$0x7] %vm42_vm6, %v41_v9  }
  0x84   :  { %v47_v14 = vpop.permute.xlu0 %46  }
  0x85   :  { %49 = vst.msk [vmem:[#allocation0] ss:$8 sm:$0x7] %vm48_vm7, %v47_v14  }
  0x8c   :  { %v52_v15 = vld [vmem:[#allocation0] sm:$0x1]  ;;  %v57_v16 = vld [vmem:[#allocation0 + $0x8] sm:$0x1]  ;;  %v63_v17 = vld [vmem:[#allocation0 + $0x10] sm:$0x1] }
  0x8d   :  { %55 = vst [vmem:[%s135_s1] sm:$0x1] %v52_v15 }
  0x8e   :  { %75 = vst [vmem:[%s135_s1 + $0x1] sm:$0x1] %v57_v16 }
  0x8f   :  { %76 = vst [vmem:[%s135_s1 + $0x2] sm:$0x1] %v63_v17 }

// kernel: tile.18
= control target key start
LH: loop header
LB: loop body
LE: loop exit
PB: predicated region body
PF: predicated region fallthrough
CT: control target
= control target key end

     0   :  { %s22_s0 = inlined_call_operand.vmem [shape: f32[16], index: 0, kind: input, shape index: {}]   ;;  %s23_s1 = inlined_call_operand.vmem [shape: f32[5,16], index: 1, kind: output, shape index: {}]  }
   0x1   :  { %v4_v0 = vld [vmem:[%s22_s0] ss:$0 sm:$0xff] }
   0x2   :  { %5 = vst [vmem:[%s23_s1] sm:$0xff] %v4_v0 }

// kernel: tile.19
= control target key start
LH: loop header
LB: loop body
LE: loop exit
PB: predicated region body
PF: predicated region fallthrough
CT: control target
= control target key end

     0   :  { %s43_s10 = smov 64   ;;  %s44_s11 = smov 32   ;;  %vm3_vm0 = vcmask 130048   ;;  %vm9_vm1 = vcmask 654848   ;;  %vm15_vm2 = vcmask 523648   ;;  %vm21_vm3 = vcmask 392448   ;;  %s75_s0 = inlined_call_operand.vmem [shape: f32[5,16], index: 0, kind: input, shape index: {}]   ;;  %s76_s1 = inlined_call_operand.vmem [shape: f32[1,80], index: 1, kind: output, shape index: {}]  }
   0x1   :  { %v35_v0 = vld [vmem:[%s75_s0 + $0x4] sm:$0x1]   ;;  %v37_v1 = vld [vmem:[%s75_s0 + $0x2] sm:$0x1]   ;;  %v36_v2 = vld [vmem:[%s75_s0 + $0x3] sm:$0x1]  }
   0x2   :  { %7 = vrot.lane.b32.xlu0 %v35_v0, %s43_s10  ;;  %19 = vrot.lane.b32.xlu1 %v37_v1, %s44_s11  ;;  %v38_v3 = vld [vmem:[%s75_s0 + $0x1] sm:$0x1]   ;;  %s45_s16 = smov 48   ;;  %s46_s17 = smov 16   ;;  %v2_v4 = vld [vmem:[%s75_s0] sm:$0x1]  }
   0x3   :  { %4 = vst.msk [vmem:[#allocation0] sm:$0x1] %vm3_vm0, %v2_v4   ;;  %vm27_vm4 = vcmask 261248  }
   0xa   :  { %13 = vrot.lane.b32.xlu0 %v36_v2, %s45_s16  ;;  %25 = vrot.lane.b32.xlu1 %v38_v3, %s46_s17 }
  0x74   :  { %v8_v5 = vpop.permute.xlu0 %7   ;;  %v20_v6 = vpop.permute.xlu1 %19  }
  0x75   :  { %10 = vst.msk [vmem:[#allocation0] sm:$0x1] %vm9_vm1, %v8_v5  }
  0x7c   :  { %v14_v7 = vpop.permute.xlu0 %13   ;;  %v26_v8 = vpop.permute.xlu1 %25  }
  0x7d   :  { %16 = vst.msk [vmem:[#allocation0] sm:$0x1] %vm15_vm2, %v14_v7  }
  0x7e   :  { %22 = vst.msk [vmem:[#allocation0] sm:$0x1] %vm21_vm3, %v20_v6  }
  0x7f   :  { %28 = vst.msk [vmem:[#allocation0] sm:$0x1] %vm27_vm4, %v26_v8  }
  0x86   :  { %v31_v9 = vld [vmem:[#allocation0] sm:$0x1] }
  0x87   :  { %34 = vst [vmem:[%s76_s1] sm:$0x1] %v31_v9 }

// kernel: forward.1
= control target key start
LH: loop header
LB: loop body
LE: loop exit
PB: predicated region body
PF: predicated region fallthrough
CT: control target
= control target key end

     0   :  { %s6881_s0 = inlined_call_operand.vmem [shape: f32[2,4,84,84], index: 0, kind: input, shape index: {}]   ;;  %s6882_s1 = inlined_call_operand.vmem [shape: f32[3,21,84], index: 1, kind: input, shape index: {}]   ;;  %s6883_s2 = inlined_call_operand.vmem [shape: f32[3,4,84,336], index: 2, kind: input, shape index: {}]   ;;  %s6884_s3 = inlined_call_operand.vmem [shape: f32[1,336], index: 3, kind: input, shape index: {}]   ;;  %s6885_s4 = inlined_call_operand.vmem [shape: f32[3,5,21], index: 4, kind: input, shape index: {}]   ;;  %s6886_s5 = inlined_call_operand.vmem [shape: f32[3,336,80], index: 5, kind: input, shape index: {}]   ;;  %s6887_s6 = inlined_call_operand.vmem [shape: f32[1,80], index: 6, kind: input, shape index: {}]   ;;  %s6888_s7 = inlined_call_operand.vmem [shape: f32[5,80,64], index: 7, kind: input, shape index: {}]   ;;  %s6889_s8 = inlined_call_operand.vmem [shape: f32[1,64], index: 8, kind: input, shape index: {}]   ;;  %s6890_s9 = inlined_call_operand.vmem [shape: f32[64,7], index: 9, kind: input, shape index: {}]   ;;  %s6891_s10 = inlined_call_operand.vmem [shape: f32[1,7], index: 10, kind: input, shape index: {}]   ;;  %s6892_s11 = inlined_call_operand.hbm [shape: f32[2,1,6], index: 11, kind: output, shape index: {0}]   ;;  %s6893_s12 = inlined_call_operand.vmem [shape: f32[2,1,1], index: 12, kind: output, shape index: {1}]  }
   0x1   :  { %6895 = sst [smem:[#allocation7_spill]] %s6881_s0 }
   0x2   :  { %6896 = sst [smem:[#allocation8_spill]] %s6882_s1 }
   0x3   :  { %18 = vsyncpa [#allocation3], 0 }
   0x4   :  { %20 = vsyncpa [#allocation3 + $0x1], 0  ;;  %s4271_s21 = smov 0   ;;  %s4273_s22 = smov 0  }
   0x5   :  { %s4275_s23 = smov 0   ;;  %s4277_s24 = smov 0  }
   0x6 LB: > { %6897 = sst [smem:[#allocation5_spill]] %s4199_s23  ;;  %s4292_s25 = sadd.s32 4294967295, %s4203_s24   ;;  %s4203_s24 = sphi %s4277_s24, %s6907_s24   ;;  %s4199_s23 = sphi %s4275_s23, %s6904_s23   ;;  %s4195_s22 = sphi %s4273_s22, %s6906_s22   ;;  %s4191_s21 = sphi %s4271_s21, %s6905_s21  }
   0x7   : > { %s3345_s26 = sadd.s32 4294967294, %s4203_s24   ;;  %s4296_s27 = sadd.s32 1, %s4203_s24  }
   0x8   : > { %s269_s28 = sadd.s32 1, %s4199_s23  ;;  %s266_s29 = ssub.s32 %s4203_s24, %s4296_s27 }
   0x9   : > { %p279_p0 = scmp.ne.s32.totalorder %s4199_s23, %s4195_s22  ;;  %p267_p1 = scmp.eq.s32.totalorder %s266_s29, 0 }
   0xa   : > { %p280_p2 = scmp.eq.s32.totalorder %s4292_s25, 1  ;;  %p285_p3 = scmp.ne.s32.totalorder %s4195_s22, %s4191_s21 }
   0xb   : > { %p286_p4 = scmp.eq.s32.totalorder %s3345_s26, 1  ;;  %p3348_p7 = scmp.ge.s32.totalorder %s4203_s24, 1 }
   0xc   : > { %s4307_s30 = scalar_select %p267_p1, %s4199_s23, %s269_s28  }
   0xd   : > { %p4309_p5 = por %p280_p2, %p279_p0  ;;  %p4313_p6 = por %p286_p4, %p285_p3 }
   0xe   : > { %6898 = sst [smem:[#allocation6_spill]] %s4307_s30  ;;  %p368_p8 = scmp.lt.s32.totalorder %s4203_s24, 3 }
  0x10   : > { %p369_p9 = pnand %p3348_p7, %p368_p8 }
  0x11   : > { %p412_p10 = scmp.lt.s32.totalorder (!%p369_p9), %s4292_s25, 1  ;;  %s6901_s0 = sld [smem:[#allocation7_spill]] (!%p369_p9) }
  0x12   : > { %372 = sbr.rel (%p369_p9) target bundleno = 1519 (0x5ef), region = 64  ;;  %s6902_s1 = sld [smem:[#allocation8_spill]] (!%p369_p9) }
  0x13   : > { %s405_s29 = sand.u32 (!%p369_p9), 1, %s4195_s22   ;;  %s3264_s18 = scalar_lea.hbm (!%p369_p9), %s6892_s11, %s4292_s25 }
  0x14   : > { %s406_s20 = scalar_lea.vmem (!%p369_p9), [#allocation2], %s405_s29  ;;  %s3268_s23 = sshll.u32 (!%p369_p9), %s3264_s18, 4  ;;  %s3269_s23 = int_to_ptr.hbm [resolvable:$true] %s3268_s23 }
  0x15   : > { %s3266_s26 = sshll.u32 (!%p369_p9), %s406_s20, 4  ;;  %s4205_s28 = smov (!%p369_p9), 122   ;;  %s3267_s26 = int_to_ptr.vmem [resolvable:$true] %s3266_s26 }
  0x16   : > { %s4161_s18 = scalar_lea.hbm (!%p369_p9), %s6892_s11, 2 }
  0x17   : > { %s4321_s15 = scalar_select %p412_p10, %s4292_s25, 1  ;;  %vm444_vm0 = vcmask 1043456   ;;  %v3399_v10 = vld [vmem:[%s6883_s2 + $0x1f8] sm:$0xf]  ;;  %v3400_v11 = vld [vmem:[%s6883_s2 + $0x200] sm:$0xf] }
  0x18   : > { %3402 = vmatpush.msk.msra.mxu2 %vm444_vm0, %v3399_v10  ;;  %v3396_v13 = vld [vmem:[%s6883_s2 + $0x1e0] sm:$0xff]  ;;  %v3397_v14 = vld [vmem:[%s6883_s2 + $0x1e8] sm:$0xff]  ;;  %3406 = vmatpush.msk.msra.mxu3 %vm444_vm0, %v3400_v11  ;;  %v3394_v18 = vld [vmem:[%s6883_s2 + $0x1d0] sm:$0xff]  ;;  %vm434_vm1 = vcmask 687104   ;;  %vm2511_vm2 = vcmask 1044480   ;;  %vm2507_vm3 = vcmask 171008  }
  0x19   : > { %s4099_s16 = smul.u32 352, %s4321_s15  ;;  %v3393_v16 = vld [vmem:[%s6883_s2 + $0x1c8] sm:$0xff]  ;;  %v3390_v20 = vld [vmem:[%s6883_s2 + $0x1b0] sm:$0xff]  ;;  %v3391_v22 = vld [vmem:[%s6883_s2 + $0x1b8] sm:$0xff]  ;;  %vm2731_vm4 = vcmask 654336   ;;  %vm3220_vm5 = vcmask 523264  }
  0x1a   : > { %606 = vmatpush.msra.mxu2 %v3396_v13  ;;  %632 = vmatpush.msra.mxu3 %v3397_v14  ;;  %v3387_v24 = vld [vmem:[%s6883_s2 + $0x198] sm:$0xff]  ;;  %v3388_v26 = vld [vmem:[%s6883_s2 + $0x1a0] sm:$0xff]  ;;  %v3385_v30 = vld [vmem:[%s6883_s2 + $0x188] sm:$0xff]  ;;  %vm3244_vm6 = vcmask 40960  }
  0x1b   : > { %s4327_s19 = scalar_lea.vmem %s6901_s0, %s4099_s16  ;;  %v3384_v28 = vld [vmem:[%s6883_s2 + $0x180] sm:$0xff]  ;;  %v3381_v32 = vld [vmem:[%s6883_s2 + $0x168] sm:$0xff]  ;;  %v3382_v34 = vld [vmem:[%s6883_s2 + $0x170] sm:$0xff]  ;;  %s3253_s0 = scalar_lea.sflag [#allocation3], %s405_s29 }
  0x1c   : > { %v4330_v0 = vld [vmem:[%s4327_s19 + $0xa8] sm:$0xf]  ;;  %v4333_v1 = vld [vmem:[%s4327_s19 + $0xa0] sm:$0xff]  ;;  %v4338_v2 = vld [vmem:[%s4327_s19 + $0x50] sm:$0xf]  ;;  %607 = vmatpush.msra.mxu2 %v3393_v16  ;;  %633 = vmatpush.msra.mxu3 %v3394_v18 }
  0x1d   : > { %3365 = vmatpush.msk.msra.mxu1 %vm444_vm0, %v4330_v0  ;;  %v4341_v3 = vld [vmem:[%s4327_s19 + $0x48] sm:$0xff]  ;;  %v4344_v4 = vld [vmem:[%s4327_s19 + $0x98] sm:$0xff]  ;;  %3350 = vmatpush.msk.msra.mxu0 %vm444_vm0, %v4338_v2  ;;  %v4350_v5 = vld [vmem:[%s4327_s19 + $0x40] sm:$0xff] }
  0x1e   : > { %v4353_v6 = vld [vmem:[%s4327_s19 + $0x90] sm:$0xff]  ;;  %v4358_v7 = vld [vmem:[%s4327_s19 + $0x38] sm:$0xff]  ;;  %v4361_v8 = vld [vmem:[%s4327_s19 + $0x88] sm:$0xff]  ;;  %608 = vmatpush.msra.mxu2 %v3390_v20  ;;  %634 = vmatpush.msra.mxu3 %v3391_v22 }
  0x1f   : > { %528 = vmatpush.msra.mxu1 %v4333_v1  ;;  %454 = vmatpush.msra.mxu0 %v4341_v3  ;;  %v4366_v9 = vld [vmem:[%s4327_s19 + $0x30] sm:$0xff]  ;;  %v4375_v12 = vld [vmem:[%s4327_s19 + $0x80] sm:$0xff]  ;;  %v4387_v15 = vld [vmem:[%s4327_s19 + $0x28] sm:$0xff] }
  0x20   : > { %v4394_v17 = vld [vmem:[%s4327_s19 + $0x78] sm:$0xff]  ;;  %v4402_v19 = vld [vmem:[%s4327_s19 + $0x20] sm:$0xff]  ;;  %v4408_v21 = vld [vmem:[%s4327_s19 + $0x70] sm:$0xff]  ;;  %609 = vmatpush.msra.mxu2 %v3387_v24  ;;  %635 = vmatpush.msra.mxu3 %v3388_v26 }
  0x21   : > { %529 = vmatpush.msra.mxu1 %v4344_v4  ;;  %455 = vmatpush.msra.mxu0 %v4350_v5  ;;  %v4416_v23 = vld [vmem:[%s4327_s19 + $0x18] sm:$0xff]  ;;  %v4422_v25 = vld [vmem:[%s4327_s19 + $0x68] sm:$0xff]  ;;  %v4430_v27 = vld [vmem:[%s4327_s19 + $0x10] sm:$0xff] }
  0x22   : > { %v4436_v29 = vld [vmem:[%s4327_s19 + $0x60] sm:$0xff]  ;;  %v4444_v31 = vld [vmem:[%s4327_s19 + $0x8] sm:$0xff]  ;;  %v4450_v33 = vld [vmem:[%s4327_s19 + $0x58] sm:$0xff]  ;;  %610 = vmatpush.msra.mxu2 %v3384_v28  ;;  %636 = vmatpush.msra.mxu3 %v3385_v30 }
  0x23   : > { %530 = vmatpush.msra.mxu1 %v4353_v6  ;;  %456 = vmatpush.msra.mxu0 %v4358_v7  ;;  %v4460_v35 = vld [vmem:[%s6902_s1] sm:$0xff]  ;;  %v504_v37 = vld [vmem:[%s6883_s2 + $0xf0] sm:$0xf]  ;;  %v3401_v38 = vld [vmem:[%s6883_s2 + $0x208] sm:$0xf] }
  0x24   : > { %v4463_v36 = vld [vmem:[%s4327_s19] sm:$0xff]  ;;  %611 = vmatpush.msra.mxu2 %v3381_v32  ;;  %637 = vmatpush.msra.mxu3 %v3382_v34  ;;  %v3378_v39 = vld [vmem:[%s6883_s2 + $0x150] sm:$0xff]  ;;  %v501_v40 = vld [vmem:[%s6883_s2 + $0xd8] sm:$0xff] }
  0x25   : > { %531 = vmatpush.msra.mxu1 %v4361_v8  ;;  %457 = vmatpush.msra.mxu0 %v4366_v9  ;;  %v3379_v41 = vld [vmem:[%s6883_s2 + $0x158] sm:$0xff]  ;;  %v3398_v42 = vld [vmem:[%s6883_s2 + $0x1f0] sm:$0xff]  ;;  %v498_v44 = vld [vmem:[%s6883_s2 + $0xc0] sm:$0xff] }
  0x26   : > { %v3375_v43 = vld [vmem:[%s6883_s2 + $0x138] sm:$0xff]  ;;  %612 = vmatpush.msra.mxu2 %v3378_v39  ;;  %v3376_v45 = vld [vmem:[%s6883_s2 + $0x140] sm:$0xff]  ;;  %638 = vmatpush.msra.mxu3 %v3379_v41  ;;  %v495_v48 = vld [vmem:[%s6883_s2 + $0xa8] sm:$0xff] }
  0x27   : > { %532 = vmatpush.msra.mxu1 %v4375_v12  ;;  %458 = vmatpush.msra.mxu0 %v4387_v15  ;;  %v3395_v46 = vld [vmem:[%s6883_s2 + $0x1d8] sm:$0xff]  ;;  %v3372_v47 = vld [vmem:[%s6883_s2 + $0x120] sm:$0xff]  ;;  %v3373_v49 = vld [vmem:[%s6883_s2 + $0x128] sm:$0xff] }
  0x28   : > { %613 = vmatpush.msra.mxu2 %v3375_v43  ;;  %v4516_v50 = vld [vmem:[%s6902_s1 + $0x8] sm:$0xff]  ;;  %v3392_v51 = vld [vmem:[%s6883_s2 + $0x1c0] sm:$0xff]  ;;  %639 = vmatpush.msra.mxu3 %v3376_v45  ;;  %v492_v52 = vld [vmem:[%s6883_s2 + $0x90] sm:$0xff] }
  0x29   : > { %533 = vmatpush.msra.mxu1 %v4394_v17  ;;  %459 = vmatpush.msra.mxu0 %v4402_v19  ;;  %v3389_v53 = vld [vmem:[%s6883_s2 + $0x1a8] sm:$0xff]  ;;  %v489_v54 = vld [vmem:[%s6883_s2 + $0x78] sm:$0xff]  ;;  %v3386_v55 = vld [vmem:[%s6883_s2 + $0x190] sm:$0xff] }
  0x2a   : > { %614 = vmatpush.msra.mxu2 %v3372_v47  ;;  %640 = vmatpush.msra.mxu3 %v3373_v49  ;;  %v486_v56 = vld [vmem:[%s6883_s2 + $0x60] sm:$0xff]  ;;  %v3383_v57 = vld [vmem:[%s6883_s2 + $0x178] sm:$0xff]  ;;  %v4546_v58 = vld [vmem:[%s6902_s1 + $0x10] sm:$0x1f] }
  0x2b   : > { %534 = vmatpush.msra.mxu1 %v4408_v21  ;;  %460 = vmatpush.msra.mxu0 %v4416_v23  ;;  %v3380_v59 = vld [vmem:[%s6883_s2 + $0x160] sm:$0xff]  ;;  %v3377_v60 = vld [vmem:[%s6883_s2 + $0x148] sm:$0xff]  ;;  %v3374_v61 = vld [vmem:[%s6883_s2 + $0x130] sm:$0xff] }
  0x2c   : > { %v3369_v62 = vld [vmem:[%s6883_s2 + $0x108] sm:$0xff]  ;;  %v3370_v63 = vld [vmem:[%s6883_s2 + $0x110] sm:$0xff]  ;;  %v3371_v10 = vld [vmem:[%s6883_s2 + $0x118] sm:$0xff] }
  0x2d   : > { %535 = vmatpush.msra.mxu1 %v4422_v25  ;;  %461 = vmatpush.msra.mxu0 %v4430_v27  ;;  %v483_v11 = vld [vmem:[%s6883_s2 + $0x48] sm:$0xff]  ;;  %v480_v13 = vld [vmem:[%s6883_s2 + $0x30] sm:$0xff]  ;;  %v477_v14 = vld [vmem:[%s6883_s2 + $0x18] sm:$0xff] }
  0x2e   : > { %615 = vmatpush.msra.mxu2 %v3369_v62  ;;  %641 = vmatpush.msra.mxu3 %v3370_v63  ;;  %v505_v16 = vld [vmem:[%s6883_s2 + $0xf8] sm:$0xf]  ;;  %v506_v18 = vld [vmem:[%s6883_s2 + $0x100] sm:$0xf]  ;;  %v503_v26 = vld [vmem:[%s6883_s2 + $0xe8] sm:$0xff] }
  0x2f   : > { %536 = vmatpush.msra.mxu1 %v4436_v29  ;;  %462 = vmatpush.msra.mxu0 %v4444_v31  ;;  %v4587_v20 = vld [vmem:[%s4327_s19 + $0x100] sm:$0xf]  ;;  %v4602_v28 = vld [vmem:[%s4327_s19 + $0xf8] sm:$0xff]  ;;  %v499_v30 = vld [vmem:[%s6883_s2 + $0xc8] sm:$0xff] }
  0x30   : > { %3418 = vmatpush.msk.msrb.mxu2 %vm444_vm0, %v505_v16  ;;  %v474_v22 = vld [vmem:[%s6883_s2] sm:$0xff]  ;;  %3422 = vmatpush.msk.msrb.mxu3 %vm444_vm0, %v506_v18  ;;  %v500_v32 = vld [vmem:[%s6883_s2 + $0xd0] sm:$0xff]  ;;  %v4622_v39 = vld [vmem:[%s4327_s19 + $0xe8] sm:$0xff] }
  0x31   : > { %537 = vmatpush.msra.mxu1 %v4450_v33  ;;  %463 = vmatpush.msra.mxu0 %v4463_v36  ;;  %v502_v24 = vld [vmem:[%s6883_s2 + $0xe0] sm:$0xff]  ;;  %v4612_v34 = vld [vmem:[%s4327_s19 + $0xf0] sm:$0xff]  ;;  %v4641_v45 = vld [vmem:[%s4327_s19 + $0xd8] sm:$0xff] }
  0x32   : > { %3366 = vmatmul.msk.f32.vlgmr.msra.gmra.mxu1 %vm434_vm1, %v4460_v35  ;;  %3351 = vmatmul.msk.f32.vlgmr.msra.gmra.mxu0 %vm434_vm1, %v4460_v35  ;;  %v494_v41 = vld [vmem:[%s6883_s2 + $0xa0] sm:$0xff]  ;;  %v488_v47 = vld [vmem:[%s6883_s2 + $0x70] sm:$0xff] }
  0x33   : > { %3414 = vmatpush.msk.msrb.mxu1 %vm444_vm0, %v504_v37  ;;  %3410 = vmatpush.msk.msrb.mxu0 %vm444_vm0, %v3401_v38  ;;  %v496_v37 = vld [vmem:[%s6883_s2 + $0xb0] sm:$0xff]  ;;  %v497_v38 = vld [vmem:[%s6883_s2 + $0xb8] sm:$0xff]  ;;  %v490_v43 = vld [vmem:[%s6883_s2 + $0x80] sm:$0xff] }
  0x34   : > { %728 = vmatpush.msrb.mxu2 %v502_v24  ;;  %754 = vmatpush.msrb.mxu3 %v503_v26  ;;  %v484_v49 = vld [vmem:[%s6883_s2 + $0x50] sm:$0xff]  ;;  %v4713_v18 = vld [vmem:[%s4327_s19 + $0x140] sm:$0xff]  ;;  %v4720_v24 = vld [vmem:[%s4327_s19 + $0x138] sm:$0xff] }
  0x35   : > { %702 = vmatpush.msrb.mxu1 %v501_v40  ;;  %658 = vmatpush.msrb.mxu0 %v3398_v42  ;;  %v493_v40 = vld [vmem:[%s6883_s2 + $0x98] sm:$0xff]  ;;  %v4631_v42 = vld [vmem:[%s4327_s19 + $0xe0] sm:$0xff]  ;;  %v4691_v62 = vld [vmem:[%s4327_s19 + $0xb0] sm:$0xff] }
  0x36   : > { %729 = vmatpush.msrb.mxu2 %v499_v30  ;;  %755 = vmatpush.msrb.mxu3 %v500_v32  ;;  %v4724_v26 = vld [vmem:[%s4327_s19 + $0x130] sm:$0xff]  ;;  %v4729_v32 = vld [vmem:[%s4327_s19 + $0x128] sm:$0xff] }
  0x37   : > { %703 = vmatpush.msrb.mxu1 %v498_v44  ;;  %659 = vmatpush.msrb.mxu0 %v3395_v46  ;;  %v491_v44 = vld [vmem:[%s6883_s2 + $0x88] sm:$0xff] }
  0x38   : > { %730 = vmatpush.msrb.mxu2 %v496_v37  ;;  %756 = vmatpush.msrb.mxu3 %v497_v38  ;;  %v487_v46 = vld [vmem:[%s6883_s2 + $0x68] sm:$0xff]  ;;  %v4736_v38 = vld [vmem:[%s4327_s19 + $0x120] sm:$0xff] }
  0x39   : > { %704 = vmatpush.msrb.mxu1 %v495_v48  ;;  %660 = vmatpush.msrb.mxu0 %v3392_v51  ;;  %v4652_v48 = vld [vmem:[%s4327_s19 + $0xd0] sm:$0xff]  ;;  %v485_v51 = vld [vmem:[%s6883_s2 + $0x58] sm:$0xff] }
  0x3a   : > { %3367 = vmatmul.msk.f32.gmra.mxu1 %vm434_vm1, %v4516_v50  ;;  %3352 = vmatmul.msk.f32.gmra.mxu0 %vm434_vm1, %v4516_v50 }
  0x3b   : > { %705 = vmatpush.msrb.mxu1 %v492_v52  ;;  %661 = vmatpush.msrb.mxu0 %v3389_v53  ;;  %v4662_v52 = vld [vmem:[%s4327_s19 + $0xc8] sm:$0xff]  ;;  %v481_v53 = vld [vmem:[%s6883_s2 + $0x38] sm:$0xff] }
  0x3c   : > { %731 = vmatpush.msrb.mxu2 %v493_v40  ;;  %757 = vmatpush.msrb.mxu3 %v494_v41  ;;  %v4740_v40 = vld [vmem:[%s4327_s19 + $0x118] sm:$0xff]  ;;  %v4745_v41 = vld [vmem:[%s4327_s19 + $0x110] sm:$0xff] }
  0x3d   : > { %706 = vmatpush.msrb.mxu1 %v489_v54  ;;  %662 = vmatpush.msrb.mxu0 %v3386_v55  ;;  %v482_v54 = vld [vmem:[%s6883_s2 + $0x40] sm:$0xff] }
  0x3e   : > { %732 = vmatpush.msrb.mxu2 %v490_v43  ;;  %758 = vmatpush.msrb.mxu3 %v491_v44  ;;  %v4671_v55 = vld [vmem:[%s4327_s19 + $0xc0] sm:$0xff]  ;;  %v4752_v43 = vld [vmem:[%s4327_s19 + $0x108] sm:$0xff] }
  0x3f   : > { %707 = vmatpush.msrb.mxu1 %v486_v56  ;;  %663 = vmatpush.msrb.mxu0 %v3383_v57  ;;  %v478_v56 = vld [vmem:[%s6883_s2 + $0x20] sm:$0xff]  ;;  %v479_v57 = vld [vmem:[%s6883_s2 + $0x28] sm:$0xff] }
  0x40   : > { %733 = vmatpush.msrb.mxu2 %v487_v46  ;;  %759 = vmatpush.msrb.mxu3 %v488_v47  ;;  %v3471_v44 = vld [vmem:[%s6883_s2 + $0x300] sm:$0xf]  ;;  %v3472_v46 = vld [vmem:[%s6883_s2 + $0x308] sm:$0xf]  ;;  %v3473_v47 = vld [vmem:[%s6883_s2 + $0x310] sm:$0xf] }
  0x41   : > { %664 = vmatpush.msrb.mxu0 %v3380_v59  ;;  %708 = vmatpush.msrb.mxu1 %v483_v11  ;;  %v4681_v59 = vld [vmem:[%s4327_s19 + $0xb8] sm:$0xff] }
  0x42   : > { %3368 = vmatmul.msk.f32.gmra.mxu1 %vm434_vm1, %v4546_v58  ;;  %3353 = vmatmul.msk.f32.gmra.mxu0 %vm434_vm1, %v4546_v58 }
  0x43   : > { %665 = vmatpush.msrb.mxu0 %v3377_v60  ;;  %709 = vmatpush.msrb.mxu1 %v480_v13  ;;  %v475_v60 = vld [vmem:[%s6883_s2 + $0x8] sm:$0xff]  ;;  %v4703_v13 = vld [vmem:[%s4327_s19 + $0x150] sm:$0xff] }
  0x44   : > { %734 = vmatpush.msrb.mxu2 %v484_v49  ;;  %760 = vmatpush.msrb.mxu3 %v485_v51  ;;  %v3468_v49 = vld [vmem:[%s6883_s2 + $0x2e8] sm:$0xff]  ;;  %v3469_v51 = vld [vmem:[%s6883_s2 + $0x2f0] sm:$0xff] }
  0x45   : > { %666 = vmatpush.msrb.mxu0 %v3374_v61  ;;  %710 = vmatpush.msrb.mxu1 %v477_v14  ;;  %v476_v61 = vld [vmem:[%s6883_s2 + $0x10] sm:$0xff]  ;;  %v4708_v14 = vld [vmem:[%s4327_s19 + $0x148] sm:$0xff] }
  0x46   : > { %735 = vmatpush.msrb.mxu2 %v481_v53  ;;  %761 = vmatpush.msrb.mxu3 %v482_v54  ;;  %v3470_v53 = vld [vmem:[%s6883_s2 + $0x2f8] sm:$0xff]  ;;  %v3465_v54 = vld [vmem:[%s6883_s2 + $0x2d0] sm:$0xff] }
  0x47   : > { %667 = vmatpush.msrb.mxu0 %v3371_v10  ;;  %711 = vmatpush.msrb.mxu1 %v474_v22  ;;  %v4696_v10 = vld [vmem:[%s4327_s19 + $0x158] sm:$0xf] }
  0x48   : > { %736 = vmatpush.msrb.mxu2 %v478_v56  ;;  %762 = vmatpush.msrb.mxu3 %v479_v57  ;;  %v3466_v56 = vld [vmem:[%s6883_s2 + $0x2d8] sm:$0xff]  ;;  %v3467_v57 = vld [vmem:[%s6883_s2 + $0x2e0] sm:$0xff] }
  0x49   : > { %3437 = vmatpush.msk.msra.mxu0 %vm444_vm0, %v4587_v20  ;;  %3474 = vmatpush.msk.msra.mxu1 %vm444_vm0, %v3471_v44  ;;  %v3458_v44 = vld [vmem:[%s6883_s2 + $0x298] sm:$0xff] }
  0x4a   : > { %737 = vmatpush.msrb.mxu2 %v475_v60  ;;  %763 = vmatpush.msrb.mxu3 %v476_v61  ;;  %v3462_v60 = vld [vmem:[%s6883_s2 + $0x2b8] sm:$0xff]  ;;  %v3463_v61 = vld [vmem:[%s6883_s2 + $0x2c0] sm:$0xff] }
  0x4b   : > { %795 = vmatpush.msra.mxu0 %v4602_v28  ;;  %873 = vmatpush.msra.mxu1 %v3468_v49  ;;  %v3455_v49 = vld [vmem:[%s6883_s2 + $0x280] sm:$0xff] }
  0x4d   : > { %796 = vmatpush.msra.mxu0 %v4612_v34  ;;  %874 = vmatpush.msra.mxu1 %v3465_v54  ;;  %v3452_v54 = vld [vmem:[%s6883_s2 + $0x268] sm:$0xff] }
  0x4f   : > { %797 = vmatpush.msra.mxu0 %v4622_v39  ;;  %875 = vmatpush.msra.mxu1 %v3462_v60  ;;  %v3449_v60 = vld [vmem:[%s6883_s2 + $0x250] sm:$0xff] }
  0x51   : > { %798 = vmatpush.msra.mxu0 %v4631_v42 }
  0x53   : > { %799 = vmatpush.msra.mxu0 %v4641_v45 }
  0x55   : > { %800 = vmatpush.msra.mxu0 %v4652_v48 }
  0x57   : > { %801 = vmatpush.msra.mxu0 %v4662_v52 }
  0x59   : > { %802 = vmatpush.msra.mxu0 %v4671_v55 }
  0x5b   : > { %803 = vmatpush.msra.mxu0 %v4681_v59 }
  0x5d   : > { %804 = vmatpush.msra.mxu0 %v4691_v62 }
  0xaf   : > { %v539_v63 = vpop.f32.mrf.mxu1  ;;  %v465_v11 = vpop.f32.mrf.mxu0 }
  0xb0   : > { %3403 = vmatmul.msk.f32.vlgmr.msra.gmra.mxu2 %vm434_vm1, %v539_v63  ;;  %3407 = vmatmul.msk.f32.vlgmr.msra.gmra.mxu3 %vm434_vm1, %v539_v63 }
  0xb1   : > { %3411 = vmatmul.msk.f32.vlgmr.msrb.gmra.mxu0 %vm434_vm1, %v539_v63  ;;  %3415 = vmatmul.msk.f32.vlgmr.msrb.gmra.mxu1 %vm434_vm1, %v465_v11  ;;  %v3464_v63 = vld [vmem:[%s6883_s2 + $0x2c8] sm:$0xff] }
  0xb2   : > { %3497 = vmatpush.msk.msrb.mxu0 %vm444_vm0, %v4696_v10  ;;  %3478 = vmatpush.msk.msra.mxu2 %vm444_vm0, %v3472_v46  ;;  %v3453_v46 = vld [vmem:[%s6883_s2 + $0x270] sm:$0xff] }
  0xb3   : > { %3482 = vmatpush.msk.msra.mxu3 %vm444_vm0, %v3473_v47  ;;  %v3454_v47 = vld [vmem:[%s6883_s2 + $0x278] sm:$0xff] }
  0xb4   : > { %975 = vmatpush.msrb.mxu0 %v4703_v13  ;;  %899 = vmatpush.msra.mxu2 %v3469_v51  ;;  %v3450_v51 = vld [vmem:[%s6883_s2 + $0x258] sm:$0xff] }
  0xb5   : > { %925 = vmatpush.msra.mxu3 %v3470_v53  ;;  %v3451_v53 = vld [vmem:[%s6883_s2 + $0x260] sm:$0xff] }
  0xb6   : > { %976 = vmatpush.msrb.mxu0 %v4708_v14  ;;  %900 = vmatpush.msra.mxu2 %v3466_v56  ;;  %v3447_v56 = vld [vmem:[%s6883_s2 + $0x240] sm:$0xff] }
  0xb7   : > { %v542_v16 = vpop.f32.mrf.mxu1  ;;  %v468_v22 = vpop.f32.mrf.mxu0  ;;  %926 = vmatpush.msra.mxu3 %v3467_v57  ;;  %v3448_v57 = vld [vmem:[%s6883_s2 + $0x248] sm:$0xff] }
  0xb8   : > { %3404 = vmatmul.msk.f32.gmra.mxu2 %vm434_vm1, %v542_v16  ;;  %3408 = vmatmul.msk.f32.gmra.mxu3 %vm434_vm1, %v542_v16 }
  0xb9   : > { %3412 = vmatmul.msk.f32.gmra.mxu0 %vm434_vm1, %v542_v16  ;;  %3416 = vmatmul.msk.f32.gmra.mxu1 %vm434_vm1, %v468_v22  ;;  %v3460_v16 = vld [vmem:[%s6883_s2 + $0x2a8] sm:$0xff] }
  0xba   : > { %977 = vmatpush.msrb.mxu0 %v4713_v18  ;;  %901 = vmatpush.msra.mxu2 %v3463_v61  ;;  %v3444_v61 = vld [vmem:[%s6883_s2 + $0x228] sm:$0xff] }
  0xbb   : > { %927 = vmatpush.msra.mxu3 %v3464_v63  ;;  %v3445_v63 = vld [vmem:[%s6883_s2 + $0x230] sm:$0xff] }
  0xbc   : > { %978 = vmatpush.msrb.mxu0 %v4720_v24  ;;  %902 = vmatpush.msra.mxu2 %v3460_v16  ;;  %v3441_v16 = vld [vmem:[%s6883_s2 + $0x210] sm:$0xff] }
  0xbe   : > { %979 = vmatpush.msrb.mxu0 %v4724_v26 }
  0xbf   : > { %v545_v30 = vpop.f32.mrf.mxu1  ;;  %v471_v37 = vpop.f32.mrf.mxu0 }
  0xc0   : > { %3405 = vmatmul.msk.f32.gmra.mxu2 %vm434_vm1, %v545_v30  ;;  %3409 = vmatmul.msk.f32.gmra.mxu3 %vm434_vm1, %v545_v30 }
  0xc1   : > { %3413 = vmatmul.msk.f32.gmra.mxu0 %vm434_vm1, %v545_v30  ;;  %3417 = vmatmul.msk.f32.gmra.mxu1 %vm434_vm1, %v471_v37  ;;  %v3456_v30 = vld [vmem:[%s6883_s2 + $0x288] sm:$0xff] }
  0xc2   : > { %980 = vmatpush.msrb.mxu0 %v4729_v32 }
  0xc4   : > { %981 = vmatpush.msrb.mxu0 %v4736_v38 }
  0xc6   : > { %982 = vmatpush.msrb.mxu0 %v4740_v40 }
  0xc8   : > { %3419 = vmatmul.msk.f32.vlgmr.msrb.gmra.mxu2 %vm434_vm1, %v465_v11  ;;  %3423 = vmatmul.msk.f32.vlgmr.msrb.gmra.mxu3 %vm434_vm1, %v465_v11  ;;  %v3459_v11 = vld [vmem:[%s6883_s2 + $0x2a0] sm:$0xff] }
  0xc9   : > { %3438 = vmatmul.msk.f32.vlgmr.msra.gmra.mxu0 %vm434_vm1, %v4460_v35  ;;  %876 = vmatpush.msra.mxu1 %v3459_v11  ;;  %v3446_v11 = vld [vmem:[%s6883_s2 + $0x238] sm:$0xff] }
  0xca   : > { %983 = vmatpush.msrb.mxu0 %v4745_v41 }
  0xcb   : > { %877 = vmatpush.msra.mxu1 %v3456_v30  ;;  %v3443_v30 = vld [vmem:[%s6883_s2 + $0x220] sm:$0xff] }
  0xcc   : > { %984 = vmatpush.msrb.mxu0 %v4752_v43 }
  0xcd   : > { %878 = vmatpush.msra.mxu1 %v3453_v46  ;;  %v3533_v46 = vld [vmem:[%s6883_s2 + $0x418] sm:$0xf] }
  0xce   : > { %3549 = vmatpush.msk.msra.mxu0 %vm444_vm0, %v4338_v2 }
  0xcf   : > { %879 = vmatpush.msra.mxu1 %v3450_v51 }
  0xd0   : > { %1153 = vmatpush.msra.mxu0 %v4341_v3  ;;  %3420 = vmatmul.msk.f32.gmra.mxu2 %vm434_vm1, %v468_v22 }
  0xd1   : > { %3424 = vmatmul.msk.f32.gmra.mxu3 %vm434_vm1, %v468_v22  ;;  %3439 = vmatmul.msk.f32.gmra.mxu0 %vm434_vm1, %v4516_v50  ;;  %v3461_v22 = vld [vmem:[%s6883_s2 + $0x2b0] sm:$0xff] }
  0xd2   : > { %1154 = vmatpush.msra.mxu0 %v4350_v5  ;;  %928 = vmatpush.msra.mxu3 %v3461_v22  ;;  %v3442_v22 = vld [vmem:[%s6883_s2 + $0x218] sm:$0xff] }
  0xd3   : > { %880 = vmatpush.msra.mxu1 %v3447_v56  ;;  %v3523_v56 = vld [vmem:[%s6883_s2 + $0x3c8] sm:$0xff] }
  0xd4   : > { %1155 = vmatpush.msra.mxu0 %v4358_v7  ;;  %929 = vmatpush.msra.mxu3 %v3458_v44  ;;  %v3532_v44 = vld [vmem:[%s6883_s2 + $0x410] sm:$0xf] }
  0xd5   : > { %881 = vmatpush.msra.mxu1 %v3444_v61  ;;  %v3521_v61 = vld [vmem:[%s6883_s2 + $0x3b8] sm:$0xff] }
  0xd6   : > { %1156 = vmatpush.msra.mxu0 %v4366_v9  ;;  %930 = vmatpush.msra.mxu3 %v3455_v49  ;;  %v3529_v49 = vld [vmem:[%s6883_s2 + $0x3f8] sm:$0xff] }
  0xd7   : > { %882 = vmatpush.msra.mxu1 %v3441_v16 }
  0xd8   : > { %3421 = vmatmul.msk.f32.gmra.mxu2 %vm434_vm1, %v471_v37  ;;  %1157 = vmatpush.msra.mxu0 %v4387_v15 }
  0xd9   : > { %3425 = vmatmul.msk.f32.gmra.mxu3 %vm434_vm1, %v471_v37  ;;  %3440 = vmatmul.msk.f32.gmra.mxu0 %vm434_vm1, %v4546_v58  ;;  %v3457_v37 = vld [vmem:[%s6883_s2 + $0x290] sm:$0xff] }
  0xda   : > { %1158 = vmatpush.msra.mxu0 %v4402_v19  ;;  %903 = vmatpush.msra.mxu2 %v3457_v37  ;;  %v3531_v37 = vld [vmem:[%s6883_s2 + $0x408] sm:$0xf] }
  0xdb   : > { %931 = vmatpush.msra.mxu3 %v3452_v54  ;;  %3534 = vmatpush.msk.msrb.mxu1 %vm444_vm0, %v3531_v37  ;;  %v3527_v54 = vld [vmem:[%s6883_s2 + $0x3e8] sm:$0xff] }
  0xdc   : > { %1159 = vmatpush.msra.mxu0 %v4416_v23  ;;  %904 = vmatpush.msra.mxu2 %v3454_v47  ;;  %v3528_v47 = vld [vmem:[%s6883_s2 + $0x3f0] sm:$0xff]  ;;  %v3511_v37 = vld [vmem:[%s6883_s2 + $0x368] sm:$0xff] }
  0xdd   : > { %932 = vmatpush.msra.mxu3 %v3449_v60  ;;  %1053 = vmatpush.msrb.mxu1 %v3528_v47  ;;  %v3520_v60 = vld [vmem:[%s6883_s2 + $0x3b0] sm:$0xff]  ;;  %v3509_v47 = vld [vmem:[%s6883_s2 + $0x358] sm:$0xff] }
  0xde   : > { %1160 = vmatpush.msra.mxu0 %v4430_v27  ;;  %905 = vmatpush.msra.mxu2 %v3451_v53  ;;  %v3526_v53 = vld [vmem:[%s6883_s2 + $0x3e0] sm:$0xff] }
  0xdf   : > { %933 = vmatpush.msra.mxu3 %v3446_v11  ;;  %v3517_v11 = vld [vmem:[%s6883_s2 + $0x398] sm:$0xff] }
  0xe0   : > { %1161 = vmatpush.msra.mxu0 %v4444_v31  ;;  %906 = vmatpush.msra.mxu2 %v3448_v57  ;;  %v3524_v57 = vld [vmem:[%s6883_s2 + $0x3d0] sm:$0xff] }
  0xe1   : > { %3498 = vmatmul.msk.f32.vlgmr.msrb.gmra.mxu0 %vm434_vm1, %v4460_v35  ;;  %v4794_v35 = vld [vmem:[%s6902_s1 + $0x18] sm:$0xff]  ;;  %934 = vmatpush.msra.mxu3 %v3443_v30  ;;  %v3515_v30 = vld [vmem:[%s6883_s2 + $0x388] sm:$0xff] }
  0xe2   : > { %1162 = vmatpush.msra.mxu0 %v4463_v36  ;;  %907 = vmatpush.msra.mxu2 %v3445_v63  ;;  %v3516_v63 = vld [vmem:[%s6883_s2 + $0x390] sm:$0xff] }
  0xe3   : > { %3542 = vmatpush.msk.msrb.mxu3 %vm444_vm0, %v3533_v46  ;;  %v3508_v46 = vld [vmem:[%s6883_s2 + $0x350] sm:$0xff] }
  0xe4   : > { %3598 = vmatpush.msk.msrb.mxu0 %vm444_vm0, %v4330_v0  ;;  %908 = vmatpush.msra.mxu2 %v3442_v22  ;;  %v3514_v22 = vld [vmem:[%s6883_s2 + $0x380] sm:$0xff] }
  0xe6   : > { %1318 = vmatpush.msrb.mxu0 %v4333_v1  ;;  %3538 = vmatpush.msk.msrb.mxu2 %vm444_vm0, %v3532_v44  ;;  %v3512_v44 = vld [vmem:[%s6883_s2 + $0x370] sm:$0xff] }
  0xe8   : > { %1319 = vmatpush.msrb.mxu0 %v4344_v4  ;;  %1079 = vmatpush.msrb.mxu2 %v3529_v49  ;;  %v3504_v49 = vld [vmem:[%s6883_s2 + $0x330] sm:$0xff] }
  0xe9   : > { %3499 = vmatmul.msk.f32.gmra.mxu0 %vm434_vm1, %v4516_v50  ;;  %v4807_v50 = vld [vmem:[%s6902_s1 + $0x20] sm:$0xff] }
  0xea   : > { %1320 = vmatpush.msrb.mxu0 %v4353_v6  ;;  %1080 = vmatpush.msrb.mxu2 %v3526_v53  ;;  %v3502_v53 = vld [vmem:[%s6883_s2 + $0x320] sm:$0xff] }
  0xec   : > { %1321 = vmatpush.msrb.mxu0 %v4361_v8  ;;  %1081 = vmatpush.msrb.mxu2 %v3523_v56  ;;  %v3584_v56 = vld [vmem:[%s6883_s2 + $0x518] sm:$0xf] }
  0xee   : > { %1322 = vmatpush.msrb.mxu0 %v4375_v12  ;;  %1082 = vmatpush.msrb.mxu2 %v3520_v60 }
  0xf0   : > { %1323 = vmatpush.msrb.mxu0 %v4394_v17  ;;  %1083 = vmatpush.msrb.mxu2 %v3517_v11  ;;  %v3573_v11 = vld [vmem:[%s6883_s2 + $0x4c0] sm:$0xff] }
  0xf1   : > { %3500 = vmatmul.msk.f32.gmra.mxu0 %vm434_vm1, %v4546_v58  ;;  %v4817_v58 = vld [vmem:[%s6902_s1 + $0x28] sm:$0x1f] }
  0xf2   : > { %1324 = vmatpush.msrb.mxu0 %v4408_v21  ;;  %1084 = vmatpush.msrb.mxu2 %v3514_v22 }
  0xf4   : > { %1325 = vmatpush.msrb.mxu0 %v4422_v25  ;;  %1085 = vmatpush.msrb.mxu2 %v3511_v37  ;;  %v3562_v37 = vld [vmem:[%s6883_s2 + $0x468] sm:$0xff] }
  0xf6   : > { %1326 = vmatpush.msrb.mxu0 %v4436_v29  ;;  %1086 = vmatpush.msrb.mxu2 %v3508_v46  ;;  %v3560_v46 = vld [vmem:[%s6883_s2 + $0x458] sm:$0xff] }
  0xf8   : > { %1327 = vmatpush.msrb.mxu0 %v4450_v33 }
  0xf9   : > { %3550 = vmatmul.msk.f32.vlgmr.msra.gmra.mxu0 %vm434_vm1, %v4794_v35 }
  0xfa   : > { %3647 = vmatpush.msk.msra.mxu0 %vm444_vm0, %v4587_v20 }
  0xfc   : > { %1483 = vmatpush.msra.mxu0 %v4602_v28 }
  0xfe   : > { %1484 = vmatpush.msra.mxu0 %v4612_v34 }
 0x100   : > { %1485 = vmatpush.msra.mxu0 %v4622_v39 }
 0x101   : > { %3551 = vmatmul.msk.f32.gmra.mxu0 %vm434_vm1, %v4807_v50 }
 0x102   : > { %1486 = vmatpush.msra.mxu0 %v4631_v42 }
 0x104   : > { %1487 = vmatpush.msra.mxu0 %v4641_v45 }
 0x106   : > { %1488 = vmatpush.msra.mxu0 %v4652_v48 }
 0x108   : > { %1489 = vmatpush.msra.mxu0 %v4662_v52 }
 0x109   : > { %3552 = vmatmul.msk.f32.gmra.mxu0 %vm434_vm1, %v4817_v58 }
 0x10a   : > { %1490 = vmatpush.msra.mxu0 %v4671_v55 }
 0x10c   : > { %1491 = vmatpush.msra.mxu0 %v4681_v59 }
 0x10e   : > { %1492 = vmatpush.msra.mxu0 %v4691_v62 }
 0x111   : > { %3599 = vmatmul.msk.f32.vlgmr.msrb.gmra.mxu0 %vm434_vm1, %v4794_v35 }
 0x112   : > { %3696 = vmatpush.msk.msrb.mxu0 %vm444_vm0, %v4696_v10 }
 0x114   : > { %1648 = vmatpush.msrb.mxu0 %v4703_v13 }
 0x116   : > { %1649 = vmatpush.msrb.mxu0 %v4708_v14 }
 0x118   : > { %1650 = vmatpush.msrb.mxu0 %v4713_v18 }
 0x119   : > { %3600 = vmatmul.msk.f32.gmra.mxu0 %vm434_vm1, %v4807_v50 }
 0x11a   : > { %1651 = vmatpush.msrb.mxu0 %v4720_v24 }
 0x11c   : > { %1652 = vmatpush.msrb.mxu0 %v4724_v26 }
 0x11e   : > { %1653 = vmatpush.msrb.mxu0 %v4729_v32 }
 0x120   : > { %1654 = vmatpush.msrb.mxu0 %v4736_v38 }
 0x121   : > { %3601 = vmatmul.msk.f32.gmra.mxu0 %vm434_vm1, %v4817_v58 }
 0x122   : > { %1655 = vmatpush.msrb.mxu0 %v4740_v40 }
 0x124   : > { %1656 = vmatpush.msrb.mxu0 %v4745_v41 }
 0x126   : > { %1657 = vmatpush.msrb.mxu0 %v4752_v43 }
 0x129   : > { %3648 = vmatmul.msk.f32.vlgmr.msra.gmra.mxu0 %vm434_vm1, %v4794_v35 }
 0x12a   : > { %3748 = vmatpush.msk.msra.mxu0 %vm444_vm0, %v4338_v2  ;;  %v3530_v2 = vld [vmem:[%s6883_s2 + $0x400] sm:$0xff] }
 0x12b   : > { %1105 = vmatpush.msrb.mxu3 %v3530_v2  ;;  %v3506_v2 = vld [vmem:[%s6883_s2 + $0x340] sm:$0xff] }
 0x12c   : > { %1826 = vmatpush.msra.mxu0 %v4341_v3  ;;  %v3525_v3 = vld [vmem:[%s6883_s2 + $0x3d8] sm:$0xff] }
 0x12d   : > { %1054 = vmatpush.msrb.mxu1 %v3525_v3  ;;  %1106 = vmatpush.msrb.mxu3 %v3527_v54  ;;  %v3503_v54 = vld [vmem:[%s6883_s2 + $0x328] sm:$0xff] }
 0x12e   : > { %v4973_v51 = vpop.f32.mrf.mxu0  ;;  %1827 = vmatpush.msra.mxu0 %v4350_v5  ;;  %v3522_v5 = vld [vmem:[%s6883_s2 + $0x3c0] sm:$0xff] }
 0x12f   : > { %1055 = vmatpush.msrb.mxu1 %v3522_v5  ;;  %1107 = vmatpush.msrb.mxu3 %v3524_v57  ;;  %v3577_v57 = vld [vmem:[%s6883_s2 + $0x4e0] sm:$0xff] }
 0x130   : > { %1828 = vmatpush.msra.mxu0 %v4358_v7  ;;  %v3519_v7 = vld [vmem:[%s6883_s2 + $0x3a8] sm:$0xff] }
 0x131   : > { %3649 = vmatmul.msk.f32.gmra.mxu0 %vm434_vm1, %v4807_v50  ;;  %1056 = vmatpush.msrb.mxu1 %v3519_v7  ;;  %v3578_v7 = vld [vmem:[%s6883_s2 + $0x4e8] sm:$0xff] }
 0x132   : > { %1829 = vmatpush.msra.mxu0 %v4366_v9  ;;  %v3518_v9 = vld [vmem:[%s6883_s2 + $0x3a0] sm:$0xff]  ;;  %1108 = vmatpush.msrb.mxu3 %v3521_v61  ;;  %v3575_v61 = vld [vmem:[%s6883_s2 + $0x4d0] sm:$0xff] }
 0x133   : > { %1057 = vmatpush.msrb.mxu1 %v3516_v63  ;;  %v3571_v63 = vld [vmem:[%s6883_s2 + $0x4b0] sm:$0xff] }
 0x134   : > { %1830 = vmatpush.msra.mxu0 %v4387_v15  ;;  %v3513_v15 = vld [vmem:[%s6883_s2 + $0x378] sm:$0xff]  ;;  %1109 = vmatpush.msrb.mxu3 %v3518_v9 }
 0x135   : > { %1058 = vmatpush.msrb.mxu1 %v3513_v15  ;;  %v3568_v9 = vld [vmem:[%s6883_s2 + $0x498] sm:$0xff]  ;;  %v3569_v15 = vld [vmem:[%s6883_s2 + $0x4a0] sm:$0xff] }
 0x136   : > { %v5017_v16 = vpop.f32.mrf.mxu0  ;;  %1831 = vmatpush.msra.mxu0 %v4402_v19  ;;  %v3510_v19 = vld [vmem:[%s6883_s2 + $0x360] sm:$0xff]  ;;  %1110 = vmatpush.msrb.mxu3 %v3515_v30  ;;  %v5157_v30 = vld [vmem:[%s6902_s1 + $0x30] sm:$0xff] }
 0x137   : > { %1059 = vmatpush.msrb.mxu1 %v3510_v19  ;;  %v3566_v19 = vld [vmem:[%s6883_s2 + $0x488] sm:$0xff] }
 0x138   : > { %1832 = vmatpush.msra.mxu0 %v4416_v23  ;;  %v3507_v23 = vld [vmem:[%s6883_s2 + $0x348] sm:$0xff]  ;;  %1111 = vmatpush.msrb.mxu3 %v3512_v44  ;;  %v3564_v44 = vld [vmem:[%s6883_s2 + $0x478] sm:$0xff] }
 0x139   : > { %3650 = vmatmul.msk.f32.gmra.mxu0 %vm434_vm1, %v4817_v58  ;;  %1060 = vmatpush.msrb.mxu1 %v3507_v23  ;;  %v3559_v23 = vld [vmem:[%s6883_s2 + $0x450] sm:$0xff] }
 0x13a   : > { %1833 = vmatpush.msra.mxu0 %v4430_v27  ;;  %v3505_v27 = vld [vmem:[%s6883_s2 + $0x338] sm:$0xff]  ;;  %1112 = vmatpush.msrb.mxu3 %v3509_v47  ;;  %v3561_v47 = vld [vmem:[%s6883_s2 + $0x460] sm:$0xff] }
 0x13b   : > { %1061 = vmatpush.msrb.mxu1 %v3504_v49  ;;  %1087 = vmatpush.msrb.mxu2 %v3505_v27  ;;  %v5197_v27 = vld [vmem:[%s6902_s1 + $0x38] sm:$0xff] }
 0x13c   : > { %1834 = vmatpush.msra.mxu0 %v4444_v31  ;;  %v3501_v31 = vld [vmem:[%s6883_s2 + $0x318] sm:$0xff]  ;;  %1113 = vmatpush.msrb.mxu3 %v3506_v2  ;;  %v3557_v2 = vld [vmem:[%s6883_s2 + $0x440] sm:$0xff] }
 0x13d   : > { %1062 = vmatpush.msrb.mxu1 %v3501_v31  ;;  %1088 = vmatpush.msrb.mxu2 %v3502_v53  ;;  %v3553_v31 = vld [vmem:[%s6883_s2 + $0x420] sm:$0xff]  ;;  %v3554_v53 = vld [vmem:[%s6883_s2 + $0x428] sm:$0xff] }
 0x13e   : > { %v5061_v3 = vpop.f32.mrf.mxu0  ;;  %1835 = vmatpush.msra.mxu0 %v4463_v36  ;;  %1114 = vmatpush.msrb.mxu3 %v3503_v54  ;;  %v3583_v36 = vld [vmem:[%s6883_s2 + $0x510] sm:$0xf]  ;;  %v3632_v54 = vld [vmem:[%s6883_s2 + $0x618] sm:$0xf] }
 0x141   : > { %3697 = vmatmul.msk.f32.vlgmr.msrb.gmra.mxu0 %vm434_vm1, %v4794_v35  ;;  %v3582_v35 = vld [vmem:[%s6883_s2 + $0x508] sm:$0xff] }
 0x142   : > { %3797 = vmatpush.msk.msrb.mxu0 %vm444_vm0, %v4330_v0  ;;  %v3585_v0 = vld [vmem:[%s6883_s2 + $0x520] sm:$0xf] }
 0x144   : > { %1991 = vmatpush.msrb.mxu0 %v4333_v1  ;;  %v3580_v1 = vld [vmem:[%s6883_s2 + $0x4f8] sm:$0xff] }
 0x146   : > { %v806_v5 = vpop.f32.mrf.mxu0  ;;  %1992 = vmatpush.msrb.mxu0 %v4344_v4  ;;  %v3581_v4 = vld [vmem:[%s6883_s2 + $0x500] sm:$0xff] }
 0x147   : > { %3475 = vmatmul.msk.f32.vlgmr.msra.gmra.mxu1 %vm434_vm1, %v806_v5  ;;  %3479 = vmatmul.msk.f32.vlgmr.msra.gmra.mxu2 %vm434_vm1, %v806_v5 }
 0x148   : > { %3483 = vmatmul.msk.f32.vlgmr.msra.gmra.mxu3 %vm434_vm1, %v806_v5  ;;  %3586 = vmatpush.msk.msra.mxu1 %vm444_vm0, %v3583_v36  ;;  %v3633_v36 = vld [vmem:[%s6883_s2 + $0x620] sm:$0xf]  ;;  %v3634_v5 = vld [vmem:[%s6883_s2 + $0x628] sm:$0xf] }
 0x149   : > { %3698 = vmatmul.msk.f32.gmra.mxu0 %vm434_vm1, %v4807_v50  ;;  %3590 = vmatpush.msk.msra.mxu2 %vm444_vm0, %v3584_v56  ;;  %v3579_v50 = vld [vmem:[%s6883_s2 + $0x4f0] sm:$0xff]  ;;  %v3629_v56 = vld [vmem:[%s6883_s2 + $0x600] sm:$0xff] }
 0x14a   : > { %3594 = vmatpush.msk.msra.mxu3 %vm444_vm0, %v3585_v0  ;;  %1993 = vmatpush.msrb.mxu0 %v4353_v6  ;;  %v3574_v6 = vld [vmem:[%s6883_s2 + $0x4c8] sm:$0xff] }
 0x14b   : > { %1231 = vmatpush.msra.mxu1 %v3580_v1  ;;  %1257 = vmatpush.msra.mxu2 %v3581_v4  ;;  %v3630_v1 = vld [vmem:[%s6883_s2 + $0x608] sm:$0xff] }
 0x14c   : > { %1283 = vmatpush.msra.mxu3 %v3582_v35  ;;  %1994 = vmatpush.msrb.mxu0 %v4361_v8  ;;  %v3576_v8 = vld [vmem:[%s6883_s2 + $0x4d8] sm:$0xff]  ;;  %v3626_v4 = vld [vmem:[%s6883_s2 + $0x5e8] sm:$0xff]  ;;  %v3627_v35 = vld [vmem:[%s6883_s2 + $0x5f0] sm:$0xff] }
 0x14d   : > { %1232 = vmatpush.msra.mxu1 %v3577_v57  ;;  %1258 = vmatpush.msra.mxu2 %v3578_v7  ;;  %v3628_v57 = vld [vmem:[%s6883_s2 + $0x5f8] sm:$0xff] }
 0x14e   : > { %v809_v60 = vpop.f32.mrf.mxu0  ;;  %1284 = vmatpush.msra.mxu3 %v3579_v50  ;;  %1995 = vmatpush.msrb.mxu0 %v4375_v12  ;;  %v3572_v12 = vld [vmem:[%s6883_s2 + $0x4b8] sm:$0xff]  ;;  %v3625_v50 = vld [vmem:[%s6883_s2 + $0x5e0] sm:$0xff] }
 0x14f   : > { %3476 = vmatmul.msk.f32.gmra.mxu1 %vm434_vm1, %v809_v60  ;;  %3480 = vmatmul.msk.f32.gmra.mxu2 %vm434_vm1, %v809_v60  ;;  %v3624_v7 = vld [vmem:[%s6883_s2 + $0x5d8] sm:$0xff] }
 0x150   : > { %3484 = vmatmul.msk.f32.gmra.mxu3 %vm434_vm1, %v809_v60  ;;  %1233 = vmatpush.msra.mxu1 %v3574_v6  ;;  %v3621_v60 = vld [vmem:[%s6883_s2 + $0x5c0] sm:$0xff] }
 0x151   : > { %3699 = vmatmul.msk.f32.gmra.mxu0 %vm434_vm1, %v4817_v58  ;;  %1259 = vmatpush.msra.mxu2 %v3575_v61  ;;  %v3570_v58 = vld [vmem:[%s6883_s2 + $0x4a8] sm:$0xff]  ;;  %v3617_v61 = vld [vmem:[%s6883_s2 + $0x5a0] sm:$0xff] }
 0x152   : > { %1285 = vmatpush.msra.mxu3 %v3576_v8  ;;  %1996 = vmatpush.msrb.mxu0 %v4394_v17  ;;  %v3565_v17 = vld [vmem:[%s6883_s2 + $0x480] sm:$0xff]  ;;  %v3619_v8 = vld [vmem:[%s6883_s2 + $0x5b0] sm:$0xff] }
 0x153   : > { %1234 = vmatpush.msra.mxu1 %v3571_v63  ;;  %1260 = vmatpush.msra.mxu2 %v3572_v12  ;;  %v3614_v63 = vld [vmem:[%s6883_s2 + $0x588] sm:$0xff]  ;;  %v3615_v12 = vld [vmem:[%s6883_s2 + $0x590] sm:$0xff] }
 0x154   : > { %1286 = vmatpush.msra.mxu3 %v3573_v11  ;;  %1997 = vmatpush.msrb.mxu0 %v4408_v21  ;;  %v3567_v21 = vld [vmem:[%s6883_s2 + $0x490] sm:$0xff]  ;;  %v3616_v11 = vld [vmem:[%s6883_s2 + $0x598] sm:$0xff] }
 0x155   : > { %1235 = vmatpush.msra.mxu1 %v3568_v9  ;;  %1261 = vmatpush.msra.mxu2 %v3569_v15  ;;  %v3612_v15 = vld [vmem:[%s6883_s2 + $0x578] sm:$0xff] }
 0x156   : > { %v812_v22 = vpop.f32.mrf.mxu0  ;;  %1287 = vmatpush.msra.mxu3 %v3570_v58  ;;  %1998 = vmatpush.msrb.mxu0 %v4422_v25  ;;  %v3563_v25 = vld [vmem:[%s6883_s2 + $0x470] sm:$0xff]  ;;  %v3608_v58 = vld [vmem:[%s6883_s2 + $0x558] sm:$0xff] }
 0x157   : > { %3477 = vmatmul.msk.f32.gmra.mxu1 %vm434_vm1, %v812_v22  ;;  %3481 = vmatmul.msk.f32.gmra.mxu2 %vm434_vm1, %v812_v22 }
 0x158   : > { %3485 = vmatmul.msk.f32.gmra.mxu3 %vm434_vm1, %v812_v22  ;;  %1236 = vmatpush.msra.mxu1 %v3565_v17  ;;  %v3610_v17 = vld [vmem:[%s6883_s2 + $0x568] sm:$0xff]  ;;  %v3605_v22 = vld [vmem:[%s6883_s2 + $0x540] sm:$0xff] }
 0x159   : > { %3749 = vmatmul.msk.f32.vlgmr.msra.gmra.mxu0 %vm434_vm1, %v5157_v30  ;;  %1262 = vmatpush.msra.mxu2 %v3566_v19  ;;  %v3606_v19 = vld [vmem:[%s6883_s2 + $0x548] sm:$0xff] }
 0x15a   : > { %1288 = vmatpush.msra.mxu3 %v3567_v21  ;;  %1999 = vmatpush.msrb.mxu0 %v4436_v29  ;;  %v3556_v29 = vld [vmem:[%s6883_s2 + $0x438] sm:$0xff]  ;;  %v3607_v21 = vld [vmem:[%s6883_s2 + $0x550] sm:$0xff] }
 0x15b   : > { %1237 = vmatpush.msra.mxu1 %v3562_v37  ;;  %1263 = vmatpush.msra.mxu2 %v3563_v25  ;;  %v3603_v25 = vld [vmem:[%s6883_s2 + $0x530] sm:$0xff] }
 0x15c   : > { %1289 = vmatpush.msra.mxu3 %v3564_v44  ;;  %2000 = vmatpush.msrb.mxu0 %v4450_v33  ;;  %v3558_v33 = vld [vmem:[%s6883_s2 + $0x448] sm:$0xff]  ;;  %v3681_v44 = vld [vmem:[%s6883_s2 + $0x720] sm:$0xf] }
 0x15d   : > { %1238 = vmatpush.msra.mxu1 %v3559_v23  ;;  %1264 = vmatpush.msra.mxu2 %v3560_v46  ;;  %v3682_v23 = vld [vmem:[%s6883_s2 + $0x728] sm:$0xf] }
 0x15e   : > { %v986_v49 = vpop.f32.mrf.mxu0  ;;  %1290 = vmatpush.msra.mxu3 %v3561_v47  ;;  %3846 = vmatpush.msk.msra.mxu0 %vm444_vm0, %v4587_v20  ;;  %v3555_v20 = vld [vmem:[%s6883_s2 + $0x430] sm:$0xff]  ;;  %v3678_v46 = vld [vmem:[%s6883_s2 + $0x708] sm:$0xff] }
 0x15f   : > { %3535 = vmatmul.msk.f32.vlgmr.msrb.gmra.mxu1 %vm434_vm1, %v986_v49  ;;  %3539 = vmatmul.msk.f32.vlgmr.msrb.gmra.mxu2 %vm434_vm1, %v986_v49  ;;  %v3679_v47 = vld [vmem:[%s6883_s2 + $0x710] sm:$0xff] }
 0x160   : > { %3543 = vmatmul.msk.f32.vlgmr.msrb.gmra.mxu3 %vm434_vm1, %v986_v49  ;;  %1239 = vmatpush.msra.mxu1 %v3556_v29  ;;  %v3680_v29 = vld [vmem:[%s6883_s2 + $0x718] sm:$0xff] }
 0x161   : > { %3750 = vmatmul.msk.f32.gmra.mxu0 %vm434_vm1, %v5197_v27  ;;  %1265 = vmatpush.msra.mxu2 %v3557_v2  ;;  %v3676_v2 = vld [vmem:[%s6883_s2 + $0x6f8] sm:$0xff] }
 0x162   : > { %1291 = vmatpush.msra.mxu3 %v3558_v33  ;;  %1240 = vmatpush.msra.mxu1 %v3553_v31  ;;  %v3672_v33 = vld [vmem:[%s6883_s2 + $0x6d8] sm:$0xff]  ;;  %v3674_v31 = vld [vmem:[%s6883_s2 + $0x6e8] sm:$0xff] }
 0x163   : > { %1266 = vmatpush.msra.mxu2 %v3554_v53  ;;  %2156 = vmatpush.msra.mxu0 %v4602_v28  ;;  %v5240_v28 = vld [vmem:[%s6902_s1 + $0x40] sm:$0x1f]  ;;  %s4155_s1 = sshra.s32 %s3269_s23, 4  ;;  %s4156_s1 = int_to_ptr.hbm [resolvable:$true] %s4155_s1 }
 0x164   : > { %1292 = vmatpush.msra.mxu3 %v3555_v20  ;;  %3635 = vmatpush.msk.msrb.mxu1 %vm444_vm0, %v3632_v54  ;;  %v3669_v53 = vld [vmem:[%s6883_s2 + $0x6c0] sm:$0xff]  ;;  %v3670_v20 = vld [vmem:[%s6883_s2 + $0x6c8] sm:$0xff]  ;;  %v3671_v54 = vld [vmem:[%s6883_s2 + $0x6d0] sm:$0xff]  ;;  %s4157_s25 = scalar_lea.hbm %s4156_s1, 1  ;;  %p4162_p0 = scmp.lt.s32.totalorder %s4156_s1, %s6892_s11 }
 0x165   : > { %2157 = vmatpush.msra.mxu0 %v4612_v34  ;;  %3639 = vmatpush.msk.msrb.mxu2 %vm444_vm0, %v3633_v36  ;;  %v3631_v34 = vld [vmem:[%s6883_s2 + $0x610] sm:$0xff]  ;;  %p4158_p11 = scmp.ne.s32.totalorder %s4156_s1, %s4157_s25  ;;  %p4163_p1 = scmp.lt.s32.totalorder %s4161_s18, %s4157_s25 }
 0x166   : > { %v989_v0 = vpop.f32.mrf.mxu0  ;;  %3643 = vmatpush.msk.msrb.mxu3 %vm444_vm0, %v3634_v5  ;;  %1396 = vmatpush.msrb.mxu1 %v3629_v56  ;;  %v3667_v5 = vld [vmem:[%s6883_s2 + $0x6b0] sm:$0xff]  ;;  %v5431_v56 = vpop.f32.mrf.mxu2 }
 0x167   : > { %3536 = vmatmul.msk.f32.gmra.mxu1 %vm434_vm1, %v989_v0  ;;  %3540 = vmatmul.msk.f32.gmra.mxu2 %vm434_vm1, %v989_v0  ;;  %p4159_p12 = pnand %p4158_p11, %p4309_p5  ;;  %p4164_p2 = por %p4163_p1, %p4162_p0 }
 0x168   : > { %3544 = vmatmul.msk.f32.gmra.mxu3 %vm434_vm1, %v989_v0  ;;  %2158 = vmatpush.msra.mxu0 %v4622_v39  ;;  %v3623_v39 = vld [vmem:[%s6883_s2 + $0x5d0] sm:$0xff]  ;;  %v3664_v0 = vld [vmem:[%s6883_s2 + $0x698] sm:$0xff] }
 0x169   : > { %3751 = vmatmul.msk.f32.gmra.mxu0 %vm434_vm1, %v5240_v28  ;;  %1422 = vmatpush.msrb.mxu2 %v3630_v1  ;;  %v5440_v1 = vpop.f32.mrf.mxu3  ;;  %p4160_p13 = pneg %p4159_p12 }
 0x16a   : > { %1448 = vmatpush.msrb.mxu3 %v3631_v34  ;;  %2159 = vmatpush.msra.mxu0 %v4631_v42  ;;  %v3620_v42 = vld [vmem:[%s6883_s2 + $0x5b8] sm:$0xff]  ;;  %v3665_v34 = vld [vmem:[%s6883_s2 + $0x6a0] sm:$0xff] }
 0x16b   : > { %1397 = vmatpush.msrb.mxu1 %v3626_v4  ;;  %1423 = vmatpush.msrb.mxu2 %v3627_v35  ;;  %v3660_v4 = vld [vmem:[%s6883_s2 + $0x678] sm:$0xff]  ;;  %v3661_v35 = vld [vmem:[%s6883_s2 + $0x680] sm:$0xff]  ;;  %p4165_p3 = pnand %p4164_p2, %p4160_p13 }
 0x16c   : > { %1449 = vmatpush.msrb.mxu3 %v3628_v57  ;;  %2160 = vmatpush.msra.mxu0 %v4641_v45  ;;  %v3622_v45 = vld [vmem:[%s6883_s2 + $0x5c8] sm:$0xff] }
 0x16d   : > { %1398 = vmatpush.msrb.mxu1 %v3623_v39  ;;  %1424 = vmatpush.msrb.mxu2 %v3624_v7  ;;  %v3662_v57 = vld [vmem:[%s6883_s2 + $0x688] sm:$0xff] }
 0x16e   : > { %v992_v6 = vpop.f32.mrf.mxu0  ;;  %1450 = vmatpush.msrb.mxu3 %v3625_v50  ;;  %2161 = vmatpush.msra.mxu0 %v4652_v48  ;;  %v3618_v48 = vld [vmem:[%s6883_s2 + $0x5a8] sm:$0xff] }
 0x16f   : > { %3537 = vmatmul.msk.f32.gmra.mxu1 %vm434_vm1, %v992_v6  ;;  %3541 = vmatmul.msk.f32.gmra.mxu2 %vm434_vm1, %v992_v6  ;;  %v3658_v7 = vld [vmem:[%s6883_s2 + $0x668] sm:$0xff] }
 0x170   : > { %3545 = vmatmul.msk.f32.gmra.mxu3 %vm434_vm1, %v992_v6  ;;  %1399 = vmatpush.msrb.mxu1 %v3620_v42  ;;  %v3654_v50 = vld [vmem:[%s6883_s2 + $0x648] sm:$0xff]  ;;  %v3656_v42 = vld [vmem:[%s6883_s2 + $0x658] sm:$0xff]  ;;  %v3651_v6 = vld [vmem:[%s6883_s2 + $0x630] sm:$0xff] }
 0x171   : > { %3798 = vmatmul.msk.f32.vlgmr.msrb.gmra.mxu0 %vm434_vm1, %v5157_v30  ;;  %1425 = vmatpush.msrb.mxu2 %v3621_v60  ;;  %v5485_v60 = vpop.f32.mrf.mxu2 }
 0x172   : > { %1451 = vmatpush.msrb.mxu3 %v3622_v45  ;;  %2162 = vmatpush.msra.mxu0 %v4662_v52  ;;  %v3611_v52 = vld [vmem:[%s6883_s2 + $0x570] sm:$0xff]  ;;  %v3652_v45 = vld [vmem:[%s6883_s2 + $0x638] sm:$0xff] }
 0x173   : > { %1400 = vmatpush.msrb.mxu1 %v3617_v61  ;;  %1426 = vmatpush.msrb.mxu2 %v3618_v48  ;;  %v3730_v61 = vld [vmem:[%s6883_s2 + $0x828] sm:$0xf]  ;;  %v5493_v48 = vpop.f32.mrf.mxu3 }
 0x174   : > { %1452 = vmatpush.msrb.mxu3 %v3619_v8  ;;  %2163 = vmatpush.msra.mxu0 %v4671_v55  ;;  %v3613_v55 = vld [vmem:[%s6883_s2 + $0x580] sm:$0xff] }
 0x175   : > { %1401 = vmatpush.msrb.mxu1 %v3614_v63  ;;  %1427 = vmatpush.msrb.mxu2 %v3615_v12  ;;  %v3653_v8 = vld [vmem:[%s6883_s2 + $0x640] sm:$0xff]  ;;  %v3731_v63 = vld [vmem:[%s6883_s2 + $0x830] sm:$0xf] }
 0x176   : > { %v1164_v9 = vpop.f32.mrf.mxu0  ;;  %1453 = vmatpush.msrb.mxu3 %v3616_v11  ;;  %2164 = vmatpush.msra.mxu0 %v4681_v59  ;;  %v3609_v59 = vld [vmem:[%s6883_s2 + $0x560] sm:$0xff]  ;;  %v3727_v12 = vld [vmem:[%s6883_s2 + $0x810] sm:$0xff] }
 0x177   : > { %3587 = vmatmul.msk.f32.vlgmr.msra.gmra.mxu1 %vm434_vm1, %v1164_v9  ;;  %3591 = vmatmul.msk.f32.vlgmr.msra.gmra.mxu2 %vm434_vm1, %v1164_v9 }
 0x178   : > { %3595 = vmatmul.msk.f32.vlgmr.msra.gmra.mxu3 %vm434_vm1, %v1164_v9  ;;  %1402 = vmatpush.msrb.mxu1 %v3611_v52  ;;  %v3732_v52 = vld [vmem:[%s6883_s2 + $0x838] sm:$0xf] }
 0x179   : > { %3799 = vmatmul.msk.f32.gmra.mxu0 %vm434_vm1, %v5197_v27  ;;  %1428 = vmatpush.msrb.mxu2 %v3612_v15  ;;  %v3728_v9 = vld [vmem:[%s6883_s2 + $0x818] sm:$0xff] }
 0x17a   : > { %1454 = vmatpush.msrb.mxu3 %v3613_v55  ;;  %2165 = vmatpush.msra.mxu0 %v4691_v62  ;;  %v3602_v62 = vld [vmem:[%s6883_s2 + $0x528] sm:$0xff]  ;;  %v3724_v15 = vld [vmem:[%s6883_s2 + $0x7f8] sm:$0xff]  ;;  %v3729_v55 = vld [vmem:[%s6883_s2 + $0x820] sm:$0xff] }
 0x17b   : > { %1403 = vmatpush.msrb.mxu1 %v3608_v58  ;;  %1429 = vmatpush.msrb.mxu2 %v3609_v59  ;;  %v3725_v58 = vld [vmem:[%s6883_s2 + $0x800] sm:$0xff] }
 0x17c   : > { %1455 = vmatpush.msrb.mxu3 %v3610_v17  ;;  %3895 = vmatpush.msk.msrb.mxu0 %vm444_vm0, %v4696_v10  ;;  %v3604_v10 = vld [vmem:[%s6883_s2 + $0x538] sm:$0xff]  ;;  %v3721_v59 = vld [vmem:[%s6883_s2 + $0x7e0] sm:$0xff]  ;;  %v3726_v17 = vld [vmem:[%s6883_s2 + $0x808] sm:$0xff] }
 0x17d   : > { %1404 = vmatpush.msrb.mxu1 %v3605_v22  ;;  %1430 = vmatpush.msrb.mxu2 %v3606_v19  ;;  %v3718_v22 = vld [vmem:[%s6883_s2 + $0x7c8] sm:$0xff]  ;;  %v5539_v19 = vpop.f32.mrf.mxu2 }
 0x17e   : > { %v1167_v37 = vpop.f32.mrf.mxu0  ;;  %1456 = vmatpush.msrb.mxu3 %v3607_v21  ;;  %2321 = vmatpush.msrb.mxu0 %v4703_v13  ;;  %v3683_v13 = vld [vmem:[%s6883_s2 + $0x730] sm:$0xf]  ;;  %v5541_v21 = vpop.f32.mrf.mxu3 }
 0x17f   : > { %3588 = vmatmul.msk.f32.gmra.mxu1 %vm434_vm1, %v1167_v37  ;;  %3592 = vmatmul.msk.f32.gmra.mxu2 %vm434_vm1, %v1167_v37 }
 0x180   : > { %3596 = vmatmul.msk.f32.gmra.mxu3 %vm434_vm1, %v1167_v37  ;;  %1405 = vmatpush.msrb.mxu1 %v3602_v62  ;;  %v3719_v62 = vld [vmem:[%s6883_s2 + $0x7d0] sm:$0xff] }
 0x181   : > { %3800 = vmatmul.msk.f32.gmra.mxu0 %vm434_vm1, %v5240_v28  ;;  %1431 = vmatpush.msrb.mxu2 %v3603_v25  ;;  %v3723_v25 = vld [vmem:[%s6883_s2 + $0x7f0] sm:$0xff] }
 0x182   : > { %1457 = vmatpush.msrb.mxu3 %v3604_v10  ;;  %2322 = vmatpush.msrb.mxu0 %v4708_v14  ;;  %v3675_v14 = vld [vmem:[%s6883_s2 + $0x6f0] sm:$0xff] }
 0x183   : > { %3684 = vmatpush.msk.msra.mxu1 %vm444_vm0, %v3681_v44  ;;  %3688 = vmatpush.msk.msra.mxu2 %vm444_vm0, %v3682_v23  ;;  %v3715_v10 = vld [vmem:[%s6883_s2 + $0x7b0] sm:$0xff]  ;;  %v3716_v44 = vld [vmem:[%s6883_s2 + $0x7b8] sm:$0xff]  ;;  %v5557_v23 = vpop.f32.mrf.mxu1 }
 0x184   : > { %3692 = vmatpush.msk.msra.mxu3 %vm444_vm0, %v3683_v13  ;;  %2323 = vmatpush.msrb.mxu0 %v4713_v18  ;;  %v3677_v18 = vld [vmem:[%s6883_s2 + $0x700] sm:$0xff]  ;;  %v3720_v13 = vld [vmem:[%s6883_s2 + $0x7d8] sm:$0xff] }
 0x185   : > { %1561 = vmatpush.msra.mxu1 %v3678_v46  ;;  %1587 = vmatpush.msra.mxu2 %v3679_v47  ;;  %v3712_v46 = vld [vmem:[%s6883_s2 + $0x798] sm:$0xff]  ;;  %v3713_v47 = vld [vmem:[%s6883_s2 + $0x7a0] sm:$0xff] }
 0x186   : > { %v1170_v49 = vpop.f32.mrf.mxu0  ;;  %1613 = vmatpush.msra.mxu3 %v3680_v29  ;;  %2324 = vmatpush.msrb.mxu0 %v4720_v24  ;;  %v3673_v24 = vld [vmem:[%s6883_s2 + $0x6e0] sm:$0xff] }
 0x187   : > { %3589 = vmatmul.msk.f32.gmra.mxu1 %vm434_vm1, %v1170_v49  ;;  %3593 = vmatmul.msk.f32.gmra.mxu2 %vm434_vm1, %v1170_v49  ;;  %v3717_v29 = vld [vmem:[%s6883_s2 + $0x7c0] sm:$0xff] }
 0x188   : > { %3597 = vmatmul.msk.f32.gmra.mxu3 %vm434_vm1, %v1170_v49  ;;  %1562 = vmatpush.msra.mxu1 %v3675_v14  ;;  %v3710_v14 = vld [vmem:[%s6883_s2 + $0x788] sm:$0xff] }
 0x189   : > { %3847 = vmatmul.msk.f32.vlgmr.msra.gmra.mxu0 %vm434_vm1, %v5157_v30  ;;  %1588 = vmatpush.msra.mxu2 %v3676_v2  ;;  %v3706_v49 = vld [vmem:[%s6883_s2 + $0x768] sm:$0xff]  ;;  %v5583_v2 = vpop.f32.mrf.mxu2 }
 0x18a   : > { %1614 = vmatpush.msra.mxu3 %v3677_v18  ;;  %2325 = vmatpush.msrb.mxu0 %v4724_v26  ;;  %v3666_v26 = vld [vmem:[%s6883_s2 + $0x6a8] sm:$0xff] }
 0x18b   : > { %1563 = vmatpush.msra.mxu1 %v3672_v33  ;;  %1589 = vmatpush.msra.mxu2 %v3673_v24  ;;  %v3714_v33 = vld [vmem:[%s6883_s2 + $0x7a8] sm:$0xff]  ;;  %v5588_v24 = vpop.f32.mrf.mxu3 }
 0x18c   : > { %1615 = vmatpush.msra.mxu3 %v3674_v31  ;;  %2326 = vmatpush.msrb.mxu0 %v4729_v32  ;;  %v3668_v32 = vld [vmem:[%s6883_s2 + $0x6b8] sm:$0xff]  ;;  %v3707_v31 = vld [vmem:[%s6883_s2 + $0x770] sm:$0xff] }
 0x18d   : > { %1564 = vmatpush.msra.mxu1 %v3669_v53  ;;  %1590 = vmatpush.msra.mxu2 %v3670_v20  ;;  %v3703_v53 = vld [vmem:[%s6883_s2 + $0x750] sm:$0xff] }
 0x18e   : > { %v1329_v36 = vpop.f32.mrf.mxu0  ;;  %1616 = vmatpush.msra.mxu3 %v3671_v54  ;;  %2327 = vmatpush.msrb.mxu0 %v4736_v38  ;;  %v3663_v38 = vld [vmem:[%s6883_s2 + $0x690] sm:$0xff]  ;;  %v3704_v54 = vld [vmem:[%s6883_s2 + $0x758] sm:$0xff] }
 0x18f   : > { %3636 = vmatmul.msk.f32.vlgmr.msrb.gmra.mxu1 %vm434_vm1, %v1329_v36  ;;  %3640 = vmatmul.msk.f32.vlgmr.msrb.gmra.mxu2 %vm434_vm1, %v1329_v36  ;;  %v3711_v20 = vld [vmem:[%s6883_s2 + $0x790] sm:$0xff] }
 0x190   : > { %3644 = vmatmul.msk.f32.vlgmr.msrb.gmra.mxu3 %vm434_vm1, %v1329_v36  ;;  %1565 = vmatpush.msra.mxu1 %v3666_v26  ;;  %v3700_v26 = vld [vmem:[%s6883_s2 + $0x738] sm:$0xff]  ;;  %v5610_v36 = vpop.f32.mrf.mxu1 }
 0x191   : > { %3848 = vmatmul.msk.f32.gmra.mxu0 %vm434_vm1, %v5197_v27  ;;  %1591 = vmatpush.msra.mxu2 %v3667_v5  ;;  %v3708_v5 = vld [vmem:[%s6883_s2 + $0x778] sm:$0xff] }
 0x192   : > { %1617 = vmatpush.msra.mxu3 %v3668_v32  ;;  %2328 = vmatpush.msrb.mxu0 %v4740_v40  ;;  %v3657_v40 = vld [vmem:[%s6883_s2 + $0x660] sm:$0xff] }
 0x193   : > { %1566 = vmatpush.msra.mxu1 %v3663_v38  ;;  %1592 = vmatpush.msra.mxu2 %v3664_v0  ;;  %v3701_v32 = vld [vmem:[%s6883_s2 + $0x740] sm:$0xff]  ;;  %v3783_v38 = vld [vmem:[%s6883_s2 + $0x938] sm:$0xf] }
 0x194   : > { %1618 = vmatpush.msra.mxu3 %v3665_v34  ;;  %2329 = vmatpush.msrb.mxu0 %v4745_v41  ;;  %v3659_v41 = vld [vmem:[%s6883_s2 + $0x670] sm:$0xff]  ;;  %v3705_v34 = vld [vmem:[%s6883_s2 + $0x760] sm:$0xff] }
 0x195   : > { %1567 = vmatpush.msra.mxu1 %v3660_v4  ;;  %1593 = vmatpush.msra.mxu2 %v3661_v35  ;;  %v3779_v4 = vld [vmem:[%s6883_s2 + $0x918] sm:$0xff]  ;;  %v3780_v35 = vld [vmem:[%s6883_s2 + $0x920] sm:$0xff] }
 0x196   : > { %v1332_v39 = vpop.f32.mrf.mxu0  ;;  %1619 = vmatpush.msra.mxu3 %v3662_v57  ;;  %2330 = vmatpush.msrb.mxu0 %v4752_v43  ;;  %v3655_v43 = vld [vmem:[%s6883_s2 + $0x650] sm:$0xff]  ;;  %v5636_v57 = vpop.f32.mrf.mxu2 }
 0x197   : > { %3637 = vmatmul.msk.f32.gmra.mxu1 %vm434_vm1, %v1332_v39  ;;  %3641 = vmatmul.msk.f32.gmra.mxu2 %vm434_vm1, %v1332_v39 }
 0x198   : > { %3645 = vmatmul.msk.f32.gmra.mxu3 %vm434_vm1, %v1332_v39  ;;  %1568 = vmatpush.msra.mxu1 %v3657_v40  ;;  %v3702_v40 = vld [vmem:[%s6883_s2 + $0x748] sm:$0xff]  ;;  %v3776_v39 = vld [vmem:[%s6883_s2 + $0x900] sm:$0xff] }
 0x199   : > { %3849 = vmatmul.msk.f32.gmra.mxu0 %vm434_vm1, %v5240_v28  ;;  %1594 = vmatpush.msra.mxu2 %v3658_v7  ;;  %v5646_v7 = vpop.f32.mrf.mxu3 }
 0x19a   : > { %1620 = vmatpush.msra.mxu3 %v3659_v41  ;;  %1569 = vmatpush.msra.mxu1 %v3654_v50  ;;  %v3784_v41 = vld [vmem:[%s6883_s2 + $0x940] sm:$0xf]  ;;  %v3777_v50 = vld [vmem:[%s6883_s2 + $0x908] sm:$0xff] }
 0x19b   : > { %1595 = vmatpush.msra.mxu2 %v3655_v43  ;;  %v3773_v43 = vld [vmem:[%s6883_s2 + $0x8e8] sm:$0xff] }
 0x19c   : > { %1621 = vmatpush.msra.mxu3 %v3656_v42  ;;  %1570 = vmatpush.msra.mxu1 %v3651_v6  ;;  %v3781_v42 = vld [vmem:[%s6883_s2 + $0x928] sm:$0xff]  ;;  %v3774_v6 = vld [vmem:[%s6883_s2 + $0x8f0] sm:$0xff] }
 0x19d   : > { %1596 = vmatpush.msra.mxu2 %v3652_v45  ;;  %v5663_v45 = vpop.f32.mrf.mxu1 }
 0x19e   : > { %3733 = vmatpush.msk.msrb.mxu1 %vm444_vm0, %v3730_v61  ;;  %v1335_v11 = vpop.f32.mrf.mxu0  ;;  %1622 = vmatpush.msra.mxu3 %v3653_v8  ;;  %v3770_v61 = vld [vmem:[%s6883_s2 + $0x8d0] sm:$0xff] }
 0x19f   : > { %3737 = vmatpush.msk.msrb.mxu2 %vm444_vm0, %v3731_v63  ;;  %3638 = vmatmul.msk.f32.gmra.mxu1 %vm434_vm1, %v1335_v11  ;;  %v3778_v63 = vld [vmem:[%s6883_s2 + $0x910] sm:$0xff] }
 0x1a0   : > { %3642 = vmatmul.msk.f32.gmra.mxu2 %vm434_vm1, %v1335_v11  ;;  %3646 = vmatmul.msk.f32.gmra.mxu3 %vm434_vm1, %v1335_v11  ;;  %v3767_v11 = vld [vmem:[%s6883_s2 + $0x8b8] sm:$0xff] }
 0x1a1   : > { %1726 = vmatpush.msrb.mxu1 %v3727_v12  ;;  %3896 = vmatmul.msk.f32.vlgmr.msrb.gmra.mxu0 %vm434_vm1, %v5157_v30  ;;  %v3722_v30 = vld [vmem:[%s6883_s2 + $0x7e8] sm:$0xff]  ;;  %v3771_v12 = vld [vmem:[%s6883_s2 + $0x8d8] sm:$0xff] }
 0x1a2   : > { %3741 = vmatpush.msk.msrb.mxu3 %vm444_vm0, %v3732_v52  ;;  %1752 = vmatpush.msrb.mxu2 %v3728_v9  ;;  %v3775_v52 = vld [vmem:[%s6883_s2 + $0x8f8] sm:$0xff]  ;;  %v3768_v9 = vld [vmem:[%s6883_s2 + $0x8c0] sm:$0xff] }
 0x1a3   : > { %1727 = vmatpush.msrb.mxu1 %v3724_v15  ;;  %v3764_v15 = vld [vmem:[%s6883_s2 + $0x8a0] sm:$0xff] }
 0x1a4   : > { %1778 = vmatpush.msrb.mxu3 %v3729_v55  ;;  %1753 = vmatpush.msrb.mxu2 %v3725_v58  ;;  %v5690_v55 = vpop.f32.mrf.mxu2  ;;  %v3772_v58 = vld [vmem:[%s6883_s2 + $0x8e0] sm:$0xff] }
 0x1a5   : > { %1728 = vmatpush.msrb.mxu1 %v3721_v59  ;;  %v3765_v59 = vld [vmem:[%s6883_s2 + $0x8a8] sm:$0xff] }
 0x1a6   : > { %1779 = vmatpush.msrb.mxu3 %v3726_v17  ;;  %v1494_v37 = vpop.f32.mrf.mxu0  ;;  %1754 = vmatpush.msrb.mxu2 %v3722_v30  ;;  %v5698_v17 = vpop.f32.mrf.mxu3  ;;  %v3761_v30 = vld [vmem:[%s6883_s2 + $0x888] sm:$0xff] }
 0x1a7   : > { %1729 = vmatpush.msrb.mxu1 %v3718_v22 }
 0x1a8   : > { %3685 = vmatmul.msk.f32.vlgmr.msra.gmra.mxu1 %vm434_vm1, %v1494_v37  ;;  %3689 = vmatmul.msk.f32.vlgmr.msra.gmra.mxu2 %vm434_vm1, %v1494_v37 }
 0x1a9   : > { %3693 = vmatmul.msk.f32.vlgmr.msra.gmra.mxu3 %vm434_vm1, %v1494_v37  ;;  %1755 = vmatpush.msrb.mxu2 %v3719_v62  ;;  %v3762_v62 = vld [vmem:[%s6883_s2 + $0x890] sm:$0xff] }
 0x1aa   : > { %3897 = vmatmul.msk.f32.gmra.mxu0 %vm434_vm1, %v5197_v27  ;;  %1780 = vmatpush.msrb.mxu3 %v3723_v25  ;;  %v3709_v27 = vld [vmem:[%s6883_s2 + $0x780] sm:$0xff]  ;;  %v3769_v25 = vld [vmem:[%s6883_s2 + $0x8c8] sm:$0xff] }
 0x1ab   : > { %1730 = vmatpush.msrb.mxu1 %v3715_v10  ;;  %1756 = vmatpush.msrb.mxu2 %v3716_v44  ;;  %v3758_v10 = vld [vmem:[%s6883_s2 + $0x870] sm:$0xff]  ;;  %v3759_v44 = vld [vmem:[%s6883_s2 + $0x878] sm:$0xff] }
 0x1ac   : > { %1781 = vmatpush.msrb.mxu3 %v3720_v13  ;;  %v3766_v13 = vld [vmem:[%s6883_s2 + $0x8b0] sm:$0xff] }
 0x1ad   : > { %1731 = vmatpush.msrb.mxu1 %v3712_v46  ;;  %1757 = vmatpush.msrb.mxu2 %v3713_v47  ;;  %v3755_v46 = vld [vmem:[%s6883_s2 + $0x858] sm:$0xff]  ;;  %v3756_v47 = vld [vmem:[%s6883_s2 + $0x860] sm:$0xff] }
 0x1ae   : > { %1782 = vmatpush.msrb.mxu3 %v3717_v29  ;;  %v1497_v18 = vpop.f32.mrf.mxu0  ;;  %v766_v29 = vadd.f32 %v5588_v24, %v4973_v51  ;;  %v3831_v51 = vld [vmem:[%s6883_s2 + $0xa38] sm:$0xf] }
 0x1af   : > { %1732 = vmatpush.msrb.mxu1 %v3709_v27  ;;  %1758 = vmatpush.msrb.mxu2 %v3710_v14  ;;  %v3763_v14 = vld [vmem:[%s6883_s2 + $0x898] sm:$0xff] }
 0x1b0   : > { %3686 = vmatmul.msk.f32.gmra.mxu1 %vm434_vm1, %v1497_v18  ;;  %3690 = vmatmul.msk.f32.gmra.mxu2 %vm434_vm1, %v1497_v18 }
 0x1b1   : > { %3694 = vmatmul.msk.f32.gmra.mxu3 %vm434_vm1, %v1497_v18  ;;  %1733 = vmatpush.msrb.mxu1 %v3706_v49  ;;  %v3752_v49 = vld [vmem:[%s6883_s2 + $0x840] sm:$0xff] }
 0x1b2   : > { %3898 = vmatmul.msk.f32.gmra.mxu0 %vm434_vm1, %v5240_v28  ;;  %1783 = vmatpush.msrb.mxu3 %v3714_v33  ;;  %v3782_v28 = vld [vmem:[%s6883_s2 + $0x930] sm:$0xf]  ;;  %v3753_v33 = vld [vmem:[%s6883_s2 + $0x848] sm:$0xff] }
 0x1b3   : > { %1759 = vmatpush.msrb.mxu2 %v3707_v31  ;;  %1734 = vmatpush.msrb.mxu1 %v3703_v53  ;;  %v3832_v53 = vld [vmem:[%s6883_s2 + $0xa40] sm:$0xf] }
 0x1b4   : > { %1784 = vmatpush.msrb.mxu3 %v3711_v20 }
 0x1b5   : > { %1760 = vmatpush.msrb.mxu2 %v3704_v54  ;;  %1735 = vmatpush.msrb.mxu1 %v3700_v26  ;;  %v3760_v54 = vld [vmem:[%s6883_s2 + $0x880] sm:$0xff] }
 0x1b6   : > { %1785 = vmatpush.msrb.mxu3 %v3708_v5  ;;  %v1500_v0 = vpop.f32.mrf.mxu0  ;;  %v3828_v26 = vld [vmem:[%s6883_s2 + $0xa20] sm:$0xff]  ;;  %v3829_v5 = vld [vmem:[%s6883_s2 + $0xa28] sm:$0xff] }
 0x1b7   : > { %3785 = vmatpush.msk.msra.mxu1 %vm444_vm0, %v3782_v28  ;;  %1761 = vmatpush.msrb.mxu2 %v3701_v32  ;;  %v3757_v28 = vld [vmem:[%s6883_s2 + $0x868] sm:$0xff] }
 0x1b8   : > { %3687 = vmatmul.msk.f32.gmra.mxu1 %vm434_vm1, %v1500_v0  ;;  %3691 = vmatmul.msk.f32.gmra.mxu2 %vm434_vm1, %v1500_v0  ;;  %v3825_v32 = vld [vmem:[%s6883_s2 + $0xa08] sm:$0xff] }
 0x1b9   : > { %3695 = vmatmul.msk.f32.gmra.mxu3 %vm434_vm1, %v1500_v0  ;;  %3789 = vmatpush.msk.msra.mxu2 %vm444_vm0, %v3783_v38  ;;  %v3826_v38 = vld [vmem:[%s6883_s2 + $0xa10] sm:$0xff]  ;;  %v769_v0 = vadd.f32 %v5646_v7, %v5017_v16  ;;  %v3823_v16 = vld [vmem:[%s6883_s2 + $0x9f8] sm:$0xff] }
 0x1ba   : > { %1786 = vmatpush.msrb.mxu3 %v3705_v34  ;;  %1904 = vmatpush.msra.mxu1 %v3779_v4  ;;  %v3754_v4 = vld [vmem:[%s6883_s2 + $0x850] sm:$0xff] }
 0x1bb   : > { %1930 = vmatpush.msra.mxu2 %v3780_v35  ;;  %v3822_v35 = vld [vmem:[%s6883_s2 + $0x9f0] sm:$0xff] }
 0x1bc   : > { %1787 = vmatpush.msrb.mxu3 %v3702_v40  ;;  %1905 = vmatpush.msra.mxu1 %v3776_v39  ;;  %v3833_v39 = vld [vmem:[%s6883_s2 + $0xa48] sm:$0xf] }
 0x1bd   : > { %1931 = vmatpush.msra.mxu2 %v3777_v50  ;;  %v3819_v50 = vld [vmem:[%s6883_s2 + $0x9d8] sm:$0xff] }
 0x1be   : > { %3793 = vmatpush.msk.msra.mxu3 %vm444_vm0, %v3784_v41  ;;  %1906 = vmatpush.msra.mxu1 %v3773_v43  ;;  %v1659_v8 = vpop.f32.mrf.mxu0 }
 0x1bf   : > { %1932 = vmatpush.msra.mxu2 %v3774_v6  ;;  %v3820_v6 = vld [vmem:[%s6883_s2 + $0x9e0] sm:$0xff] }
 0x1c0   : > { %1956 = vmatpush.msra.mxu3 %v3781_v42  ;;  %3734 = vmatmul.msk.f32.vlgmr.msrb.gmra.mxu1 %vm434_vm1, %v1659_v8  ;;  %v3830_v42 = vld [vmem:[%s6883_s2 + $0xa30] sm:$0xff] }
 0x1c1   : > { %3738 = vmatmul.msk.f32.vlgmr.msrb.gmra.mxu2 %vm434_vm1, %v1659_v8  ;;  %3742 = vmatmul.msk.f32.vlgmr.msrb.gmra.mxu3 %vm434_vm1, %v1659_v8  ;;  %v3827_v8 = vld [vmem:[%s6883_s2 + $0xa18] sm:$0xff] }
 0x1c2   : > { %1907 = vmatpush.msra.mxu1 %v3770_v61  ;;  %1957 = vmatpush.msra.mxu3 %v3778_v63  ;;  %v3816_v61 = vld [vmem:[%s6883_s2 + $0x9c0] sm:$0xff]  ;;  %v3817_v63 = vld [vmem:[%s6883_s2 + $0x9c8] sm:$0xff] }
 0x1c3   : > { %1933 = vmatpush.msra.mxu2 %v3771_v12  ;;  %v3813_v12 = vld [vmem:[%s6883_s2 + $0x9a8] sm:$0xff] }
 0x1c4   : > { %1908 = vmatpush.msra.mxu1 %v3767_v11  ;;  %1958 = vmatpush.msra.mxu3 %v3775_v52  ;;  %v5703_v22 = vpop.f32.mrf.mxu1  ;;  %v772_v11 = vadd.f32 %v5698_v17, %v5061_v3  ;;  %v3811_v17 = vld [vmem:[%s6883_s2 + $0x998] sm:$0xff] }
 0x1c5   : > { %1934 = vmatpush.msra.mxu2 %v3768_v9  ;;  %v3824_v9 = vld [vmem:[%s6883_s2 + $0xa00] sm:$0xff] }
 0x1c6   : > { %1909 = vmatpush.msra.mxu1 %v3764_v15  ;;  %1959 = vmatpush.msra.mxu3 %v3772_v58  ;;  %v1662_v37 = vpop.f32.mrf.mxu0  ;;  %v3814_v15 = vld [vmem:[%s6883_s2 + $0x9b0] sm:$0xff] }
 0x1c7   : > { %1935 = vmatpush.msra.mxu2 %v3765_v59  ;;  %v3810_v59 = vld [vmem:[%s6883_s2 + $0x990] sm:$0xff] }
 0x1c8   : > { %1910 = vmatpush.msra.mxu1 %v3761_v30  ;;  %1960 = vmatpush.msra.mxu3 %v3769_v25  ;;  %v3807_v25 = vld [vmem:[%s6883_s2 + $0x978] sm:$0xff] }
 0x1c9   : > { %3735 = vmatmul.msk.f32.gmra.mxu1 %vm434_vm1, %v1662_v37  ;;  %3739 = vmatmul.msk.f32.gmra.mxu2 %vm434_vm1, %v1662_v37 }
 0x1ca   : > { %3743 = vmatmul.msk.f32.gmra.mxu3 %vm434_vm1, %v1662_v37  ;;  %1936 = vmatpush.msra.mxu2 %v3762_v62  ;;  %v5731_v27 = vpop.f32.mrf.mxu2  ;;  %v3821_v37 = vld [vmem:[%s6883_s2 + $0x9e8] sm:$0xff] }
 0x1cb   : > { %1911 = vmatpush.msra.mxu1 %v3758_v10  ;;  %v936_v18 = vpop.f32.mrf.mxu3  ;;  %1961 = vmatpush.msra.mxu3 %v3766_v13  ;;  %v740_v10 = vadd.f32 %v5583_v2, %v5440_v1  ;;  %v3818_v13 = vld [vmem:[%s6883_s2 + $0x9d0] sm:$0xff]  ;;  %v3805_v2 = vld [vmem:[%s6883_s2 + $0x968] sm:$0xff] }
 0x1cc   : > { %1937 = vmatpush.msra.mxu2 %v3759_v44  ;;  %v5745_v24 = vadd.f32 %v936_v18, %v766_v29  ;;  %v5747_v31 = vpop.f32.mrf.mxu1  ;;  %v3808_v44 = vld [vmem:[%s6883_s2 + $0x980] sm:$0xff]  ;;  %v3815_v29 = vld [vmem:[%s6883_s2 + $0x9b8] sm:$0xff] }
 0x1cd   : > { %1912 = vmatpush.msra.mxu1 %v3755_v46  ;;  %1962 = vmatpush.msra.mxu3 %v3763_v14  ;;  %v3804_v46 = vld [vmem:[%s6883_s2 + $0x960] sm:$0xff]  ;;  %v946_v1 = vadd.f32 %v5731_v27, %v740_v10  ;;  %v3801_v14 = vld [vmem:[%s6883_s2 + $0x948] sm:$0xff]  ;;  %v3802_v27 = vld [vmem:[%s6883_s2 + $0x950] sm:$0xff] }
 0x1ce   : > { %1938 = vmatpush.msra.mxu2 %v3756_v47  ;;  %v1665_v20 = vpop.f32.mrf.mxu0  ;;  %v3870_v10 = vld [vmem:[%s6883_s2 + $0xaf0] sm:$0xff] }
 0x1cf   : > { %1913 = vmatpush.msra.mxu1 %v3752_v49  ;;  %1963 = vmatpush.msra.mxu3 %v3760_v54 }
 0x1d0   : > { %1939 = vmatpush.msra.mxu2 %v3753_v33  ;;  %v3880_v33 = vld [vmem:[%s6883_s2 + $0xb40] sm:$0xf] }
 0x1d1   : > { %3834 = vmatpush.msk.msrb.mxu1 %vm444_vm0, %v3831_v51  ;;  %3740 = vmatmul.msk.f32.gmra.mxu2 %vm434_vm1, %v1665_v20 }
 0x1d2   : > { %3736 = vmatmul.msk.f32.gmra.mxu1 %vm434_vm1, %v1665_v20  ;;  %3744 = vmatmul.msk.f32.gmra.mxu3 %vm434_vm1, %v1665_v20  ;;  %v5777_v34 = vpop.f32.mrf.mxu2  ;;  %v3881_v20 = vld [vmem:[%s6883_s2 + $0xb48] sm:$0xf] }
 0x1d3   : > { %3838 = vmatpush.msk.msrb.mxu2 %vm444_vm0, %v3832_v53  ;;  %2069 = vmatpush.msrb.mxu1 %v3828_v26  ;;  %v939_v40 = vpop.f32.mrf.mxu3  ;;  %v3812_v26 = vld [vmem:[%s6883_s2 + $0x9a0] sm:$0xff] }
 0x1d4   : > { %1964 = vmatpush.msra.mxu3 %v3757_v28  ;;  %v5791_v7 = vadd.f32 %v939_v40, %v769_v0  ;;  %v5793_v41 = vpop.f32.mrf.mxu1  ;;  %v3878_v28 = vld [vmem:[%s6883_s2 + $0xb30] sm:$0xff] }
 0x1d5   : > { %2095 = vmatpush.msrb.mxu2 %v3829_v5  ;;  %2070 = vmatpush.msrb.mxu1 %v3825_v32  ;;  %v743_v5 = vadd.f32 %v5636_v57, %v5493_v48  ;;  %v3809_v32 = vld [vmem:[%s6883_s2 + $0x988] sm:$0xff]  ;;  %v3874_v48 = vld [vmem:[%s6883_s2 + $0xb10] sm:$0xff] }
 0x1d6   : > { %1965 = vmatpush.msra.mxu3 %v3754_v4  ;;  %v1837_v43 = vpop.f32.mrf.mxu0  ;;  %v3806_v4 = vld [vmem:[%s6883_s2 + $0x970] sm:$0xff] }
 0x1d7   : > { %2096 = vmatpush.msrb.mxu2 %v3826_v38  ;;  %2071 = vmatpush.msrb.mxu1 %v3822_v35  ;;  %v949_v57 = vadd.f32 %v5777_v34, %v743_v5  ;;  %v3875_v38 = vld [vmem:[%s6883_s2 + $0xb18] sm:$0xff]  ;;  %v3872_v34 = vld [vmem:[%s6883_s2 + $0xb00] sm:$0xff]  ;;  %v3929_v5 = vld [vmem:[%s6883_s2 + $0xc48] sm:$0xf] }
 0x1d8   : > { %3842 = vmatpush.msk.msrb.mxu3 %vm444_vm0, %v3833_v39  ;;  %v3871_v35 = vld [vmem:[%s6883_s2 + $0xaf8] sm:$0xff] }
 0x1d9   : > { %2097 = vmatpush.msrb.mxu2 %v3823_v16  ;;  %2072 = vmatpush.msrb.mxu1 %v3819_v50 }
 0x1da   : > { %3786 = vmatmul.msk.f32.vlgmr.msra.gmra.mxu1 %vm434_vm1, %v1837_v43  ;;  %3790 = vmatmul.msk.f32.vlgmr.msra.gmra.mxu2 %vm434_vm1, %v1837_v43  ;;  %v5822_v52 = vpop.f32.mrf.mxu2 }
 0x1db   : > { %3794 = vmatmul.msk.f32.vlgmr.msra.gmra.mxu3 %vm434_vm1, %v1837_v43  ;;  %2098 = vmatpush.msrb.mxu2 %v3820_v6  ;;  %v942_v58 = vpop.f32.mrf.mxu3  ;;  %v3803_v43 = vld [vmem:[%s6883_s2 + $0x958] sm:$0xff]  ;;  %v3882_v6 = vld [vmem:[%s6883_s2 + $0xb50] sm:$0xf] }
 0x1dc   : > { %2121 = vmatpush.msrb.mxu3 %v3830_v42  ;;  %2073 = vmatpush.msrb.mxu1 %v3816_v61  ;;  %v5833_v30 = vadd.f32 %v942_v58, %v772_v11  ;;  %v5835_v3 = vpop.f32.mrf.mxu1  ;;  %v746_v61 = vadd.f32 %v5690_v55, %v5541_v21  ;;  %v3866_v55 = vld [vmem:[%s6883_s2 + $0xad0] sm:$0xff] }
 0x1dd   : > { %2099 = vmatpush.msrb.mxu2 %v3817_v63  ;;  %v3879_v63 = vld [vmem:[%s6883_s2 + $0xb38] sm:$0xff] }
 0x1de   : > { %2122 = vmatpush.msrb.mxu3 %v3827_v8  ;;  %2074 = vmatpush.msrb.mxu1 %v3813_v12  ;;  %v1840_v62 = vpop.f32.mrf.mxu0  ;;  %v3869_v8 = vld [vmem:[%s6883_s2 + $0xae8] sm:$0xff]  ;;  %v952_v21 = vadd.f32 %v5822_v52, %v746_v61 }
 0x1df   : > { %2100 = vmatpush.msrb.mxu2 %v3814_v15  ;;  %v3865_v12 = vld [vmem:[%s6883_s2 + $0xac8] sm:$0xff]  ;;  %v3862_v15 = vld [vmem:[%s6883_s2 + $0xab0] sm:$0xff] }
 0x1e0   : > { %2123 = vmatpush.msrb.mxu3 %v3824_v9  ;;  %2075 = vmatpush.msrb.mxu1 %v3810_v59  ;;  %v3876_v9 = vld [vmem:[%s6883_s2 + $0xb20] sm:$0xff]  ;;  %v3863_v59 = vld [vmem:[%s6883_s2 + $0xab8] sm:$0xff]  ;;  %v3921_v61 = vld [vmem:[%s6883_s2 + $0xc08] sm:$0xff] }
 0x1e1   : > { %2101 = vmatpush.msrb.mxu2 %v3811_v17 }
 0x1e2   : > { %3787 = vmatmul.msk.f32.gmra.mxu1 %vm434_vm1, %v1840_v62  ;;  %3791 = vmatmul.msk.f32.gmra.mxu2 %vm434_vm1, %v1840_v62  ;;  %v1090_v47 = vpop.f32.mrf.mxu2 }
 0x1e3   : > { %3795 = vmatmul.msk.f32.gmra.mxu3 %vm434_vm1, %v1840_v62  ;;  %2076 = vmatpush.msrb.mxu1 %v3807_v25  ;;  %v5870_v49 = vadd.f32 %v1090_v47, %v946_v1  ;;  %v1116_v18 = vpop.f32.mrf.mxu3  ;;  %v3857_v1 = vld [vmem:[%s6883_s2 + $0xa88] sm:$0xff]  ;;  %v3864_v47 = vld [vmem:[%s6883_s2 + $0xac0] sm:$0xff] }
 0x1e4   : > { %2124 = vmatpush.msrb.mxu3 %v3821_v37  ;;  %2102 = vmatpush.msrb.mxu2 %v3808_v44  ;;  %v5879_v51 = vadd.f32 %v1116_v18, %v5745_v24  ;;  %v5881_v53 = vpop.f32.mrf.mxu1  ;;  %v3877_v24 = vld [vmem:[%s6883_s2 + $0xb28] sm:$0xff]  ;;  %v3860_v44 = vld [vmem:[%s6883_s2 + $0xaa0] sm:$0xff]  ;;  %v3854_v18 = vld [vmem:[%s6883_s2 + $0xa70] sm:$0xff] }
 0x1e5   : > { %2077 = vmatpush.msrb.mxu1 %v3804_v46  ;;  %v3873_v37 = vld [vmem:[%s6883_s2 + $0xb08] sm:$0xff]  ;;  %v3856_v46 = vld [vmem:[%s6883_s2 + $0xa80] sm:$0xff] }
 0x1e6   : > { %2125 = vmatpush.msrb.mxu3 %v3818_v13  ;;  %2103 = vmatpush.msrb.mxu2 %v3805_v2  ;;  %v1843_v54 = vpop.f32.mrf.mxu0  ;;  %v3867_v13 = vld [vmem:[%s6883_s2 + $0xad8] sm:$0xff] }
 0x1e7   : > { %2078 = vmatpush.msrb.mxu1 %v3801_v14 }
 0x1e8   : > { %2126 = vmatpush.msrb.mxu3 %v3815_v29  ;;  %2104 = vmatpush.msrb.mxu2 %v3802_v27  ;;  %v3853_v29 = vld [vmem:[%s6883_s2 + $0xa68] sm:$0xff] }
 0x1e9   : > { %3883 = vmatpush.msk.msra.mxu1 %vm444_vm0, %v3880_v33  ;;  %v3861_v33 = vld [vmem:[%s6883_s2 + $0xaa8] sm:$0xff] }
 0x1ea   : > { %3788 = vmatmul.msk.f32.gmra.mxu1 %vm434_vm1, %v1843_v54  ;;  %3792 = vmatmul.msk.f32.gmra.mxu2 %vm434_vm1, %v1843_v54  ;;  %v1093_v0 = vpop.f32.mrf.mxu2 }
 0x1eb   : > { %3796 = vmatmul.msk.f32.gmra.mxu3 %vm434_vm1, %v1843_v54  ;;  %3887 = vmatpush.msk.msra.mxu2 %vm444_vm0, %v3881_v20  ;;  %v5918_v40 = vadd.f32 %v1093_v0, %v949_v57  ;;  %v1119_v39 = vpop.f32.mrf.mxu3  ;;  %v3858_v54 = vld [vmem:[%s6883_s2 + $0xa90] sm:$0xff]  ;;  %v3927_v0 = vld [vmem:[%s6883_s2 + $0xc38] sm:$0xff] }
 0x1ec   : > { %2127 = vmatpush.msrb.mxu3 %v3812_v26  ;;  %2234 = vmatpush.msra.mxu1 %v3877_v24  ;;  %v5924_v16 = vadd.f32 %v1119_v39, %v5791_v7  ;;  %v5926_v50 = vpop.f32.mrf.mxu1  ;;  %v3868_v7 = vld [vmem:[%s6883_s2 + $0xae0] sm:$0xff]  ;;  %v3850_v26 = vld [vmem:[%s6883_s2 + $0xa50] sm:$0xff]  ;;  %v3851_v24 = vld [vmem:[%s6883_s2 + $0xa58] sm:$0xff] }
 0x1ed   : > { %2260 = vmatpush.msra.mxu2 %v3878_v28  ;;  %v3855_v28 = vld [vmem:[%s6883_s2 + $0xa78] sm:$0xff] }
 0x1ee   : > { %2128 = vmatpush.msrb.mxu3 %v3809_v32  ;;  %2235 = vmatpush.msra.mxu1 %v3874_v48  ;;  %v2002_v42 = vpop.f32.mrf.mxu0  ;;  %v3930_v32 = vld [vmem:[%s6883_s2 + $0xc50] sm:$0xf]  ;;  %v3923_v39 = vld [vmem:[%s6883_s2 + $0xc18] sm:$0xff] }
 0x1ef   : > { %2261 = vmatpush.msra.mxu2 %v3875_v38  ;;  %v3926_v48 = vld [vmem:[%s6883_s2 + $0xc30] sm:$0xff]  ;;  %v3852_v38 = vld [vmem:[%s6883_s2 + $0xa60] sm:$0xff] }
 0x1f0   : > { %2129 = vmatpush.msrb.mxu3 %v3806_v4  ;;  %2236 = vmatpush.msra.mxu1 %v3871_v35  ;;  %v3931_v35 = vld [vmem:[%s6883_s2 + $0xc58] sm:$0xf] }
 0x1f1   : > { %2262 = vmatpush.msra.mxu2 %v3872_v34 }
 0x1f2   : > { %2130 = vmatpush.msrb.mxu3 %v3803_v43  ;;  %3835 = vmatmul.msk.f32.vlgmr.msrb.gmra.mxu1 %vm434_vm1, %v2002_v42  ;;  %v1096_v11 = vpop.f32.mrf.mxu2  ;;  %v3924_v43 = vld [vmem:[%s6883_s2 + $0xc20] sm:$0xff] }
 0x1f3   : > { %3839 = vmatmul.msk.f32.vlgmr.msrb.gmra.mxu2 %vm434_vm1, %v2002_v42  ;;  %3843 = vmatmul.msk.f32.vlgmr.msrb.gmra.mxu3 %vm434_vm1, %v2002_v42  ;;  %v5962_v58 = vadd.f32 %v1096_v11, %v952_v21  ;;  %v1122_v52 = vpop.f32.mrf.mxu3  ;;  %v3914_v11 = vld [vmem:[%s6883_s2 + $0xbd0] sm:$0xff] }
 0x1f4   : > { %3891 = vmatpush.msk.msra.mxu3 %vm444_vm0, %v3882_v6  ;;  %2237 = vmatpush.msra.mxu1 %v3868_v7  ;;  %v5968_v17 = vadd.f32 %v1122_v52, %v5833_v30  ;;  %v5970_v62 = vpop.f32.mrf.mxu1  ;;  %v3859_v30 = vld [vmem:[%s6883_s2 + $0xa98] sm:$0xff]  ;;  %v3928_v6 = vld [vmem:[%s6883_s2 + $0xc40] sm:$0xff] }
 0x1f5   : > { %2263 = vmatpush.msra.mxu2 %v3869_v8  ;;  %v3920_v7 = vld [vmem:[%s6883_s2 + $0xc00] sm:$0xff]  ;;  %v3925_v8 = vld [vmem:[%s6883_s2 + $0xc28] sm:$0xff] }
 0x1f6   : > { %2286 = vmatpush.msra.mxu3 %v3879_v63  ;;  %2238 = vmatpush.msra.mxu1 %v3865_v12  ;;  %v2005_v25 = vpop.f32.mrf.mxu0  ;;  %v3917_v63 = vld [vmem:[%s6883_s2 + $0xbe8] sm:$0xff]  ;;  %v3918_v12 = vld [vmem:[%s6883_s2 + $0xbf0] sm:$0xff] }
 0x1f7   : > { %2264 = vmatpush.msra.mxu2 %v3866_v55  ;;  %v3922_v55 = vld [vmem:[%s6883_s2 + $0xc10] sm:$0xff] }
 0x1f8   : > { %2287 = vmatpush.msra.mxu3 %v3876_v9  ;;  %2239 = vmatpush.msra.mxu1 %v3862_v15  ;;  %v3915_v15 = vld [vmem:[%s6883_s2 + $0xbd8] sm:$0xff] }
 0x1f9   : > { %2265 = vmatpush.msra.mxu2 %v3863_v59  ;;  %v3919_v59 = vld [vmem:[%s6883_s2 + $0xbf8] sm:$0xff] }
 0x1fa   : > { %3836 = vmatmul.msk.f32.gmra.mxu1 %vm434_vm1, %v2005_v25  ;;  %2288 = vmatpush.msra.mxu3 %v3873_v37  ;;  %v5996_v2 = vpop.f32.mrf.mxu2 }
 0x1fb   : > { %3840 = vmatmul.msk.f32.gmra.mxu2 %vm434_vm1, %v2005_v25  ;;  %3844 = vmatmul.msk.f32.gmra.mxu3 %vm434_vm1, %v2005_v25  ;;  %v6004_v14 = vpop.f32.mrf.mxu3  ;;  %v3916_v25 = vld [vmem:[%s6883_s2 + $0xbe0] sm:$0xff] }
 0x1fc   : > { %2289 = vmatpush.msra.mxu3 %v3870_v10  ;;  %2240 = vmatpush.msra.mxu1 %v3859_v30  ;;  %v6009_v27 = vpop.f32.mrf.mxu1  ;;  %v3911_v10 = vld [vmem:[%s6883_s2 + $0xbb8] sm:$0xff]  ;;  %v3912_v30 = vld [vmem:[%s6883_s2 + $0xbc0] sm:$0xff] }
 0x1fd   : > { %2266 = vmatpush.msra.mxu2 %v3860_v44  ;;  %v3913_v44 = vld [vmem:[%s6883_s2 + $0xbc8] sm:$0xff] }
 0x1fe   : > { %2290 = vmatpush.msra.mxu3 %v3867_v13  ;;  %2241 = vmatpush.msra.mxu1 %v3856_v46  ;;  %v2008_v20 = vpop.f32.mrf.mxu0  ;;  %v3908_v13 = vld [vmem:[%s6883_s2 + $0xba0] sm:$0xff]  ;;  %v3909_v46 = vld [vmem:[%s6883_s2 + $0xba8] sm:$0xff] }
 0x1ff   : > { %2267 = vmatpush.msra.mxu2 %v3857_v1 }
 0x200   : > { %2291 = vmatpush.msra.mxu3 %v3864_v47  ;;  %2242 = vmatpush.msra.mxu1 %v3853_v29  ;;  %v3910_v47 = vld [vmem:[%s6883_s2 + $0xbb0] sm:$0xff]  ;;  %v3905_v29 = vld [vmem:[%s6883_s2 + $0xb88] sm:$0xff] }
 0x201   : > { %2268 = vmatpush.msra.mxu2 %v3854_v18 }
 0x202   : > { %3837 = vmatmul.msk.f32.gmra.mxu1 %vm434_vm1, %v2008_v20  ;;  %2292 = vmatpush.msra.mxu3 %v3861_v33  ;;  %v6038_v57 = vpop.f32.mrf.mxu2  ;;  %v3906_v33 = vld [vmem:[%s6883_s2 + $0xb90] sm:$0xff] }
 0x203   : > { %3841 = vmatmul.msk.f32.gmra.mxu2 %vm434_vm1, %v2008_v20  ;;  %3845 = vmatmul.msk.f32.gmra.mxu3 %vm434_vm1, %v2008_v20  ;;  %v6047_v4 = vpop.f32.mrf.mxu3 }
 0x204   : > { %2293 = vmatpush.msra.mxu3 %v3858_v54  ;;  %2243 = vmatpush.msra.mxu1 %v3850_v26  ;;  %v6056_v34 = vpop.f32.mrf.mxu1  ;;  %v3907_v54 = vld [vmem:[%s6883_s2 + $0xb98] sm:$0xff] }
 0x205   : > { %2269 = vmatpush.msra.mxu2 %v3851_v24  ;;  %v3902_v24 = vld [vmem:[%s6883_s2 + $0xb70] sm:$0xff] }
 0x206   : > { %3932 = vmatpush.msk.msrb.mxu1 %vm444_vm0, %v3929_v5  ;;  %2294 = vmatpush.msra.mxu3 %v3855_v28  ;;  %v2167_v42 = vpop.f32.mrf.mxu0  ;;  %v3903_v5 = vld [vmem:[%s6883_s2 + $0xb78] sm:$0xff]  ;;  %v3904_v28 = vld [vmem:[%s6883_s2 + $0xb80] sm:$0xff] }
 0x207   : > { %3936 = vmatpush.msk.msrb.mxu2 %vm444_vm0, %v3930_v32  ;;  %v3899_v32 = vld [vmem:[%s6883_s2 + $0xb58] sm:$0xff] }
 0x208   : > { %2399 = vmatpush.msrb.mxu1 %v3926_v48  ;;  %2295 = vmatpush.msra.mxu3 %v3852_v38  ;;  %v3900_v48 = vld [vmem:[%s6883_s2 + $0xb60] sm:$0xff]  ;;  %v3901_v38 = vld [vmem:[%s6883_s2 + $0xb68] sm:$0xff] }
 0x209   : > { %2425 = vmatpush.msrb.mxu2 %v3927_v0 }
 0x20a   : > { %3940 = vmatpush.msk.msrb.mxu3 %vm444_vm0, %v3931_v35  ;;  %2400 = vmatpush.msrb.mxu1 %v3923_v39  ;;  %v6083_v21 = vpop.f32.mrf.mxu2 }
 0x20b   : > { %3884 = vmatmul.msk.f32.vlgmr.msra.gmra.mxu1 %vm434_vm1, %v2167_v42  ;;  %2426 = vmatpush.msrb.mxu2 %v3924_v43  ;;  %v6091_v9 = vpop.f32.mrf.mxu3 }
 0x20c   : > { %3888 = vmatmul.msk.f32.vlgmr.msra.gmra.mxu2 %vm434_vm1, %v2167_v42  ;;  %3892 = vmatmul.msk.f32.vlgmr.msra.gmra.mxu3 %vm434_vm1, %v2167_v42  ;;  %v6096_v52 = vpop.f32.mrf.mxu1 }
 0x20d   : > { %2451 = vmatpush.msrb.mxu3 %v3928_v6  ;;  %2401 = vmatpush.msrb.mxu1 %v3920_v7 }
 0x20e   : > { %2427 = vmatpush.msrb.mxu2 %v3921_v61  ;;  %v2170_v37 = vpop.f32.mrf.mxu0 }
 0x20f   : > { %2452 = vmatpush.msrb.mxu3 %v3925_v8  ;;  %2402 = vmatpush.msrb.mxu1 %v3917_v63  ;;  %v1304_v8 = vadd.f32 %v5996_v2, %v5870_v49  ;;  %v1305_v63 = vadd.f32 %v6004_v14, %v5879_v51  ;;  %v1307_v49 = vadd.f32 %v6038_v57, %v5918_v40 }
 0x210   : > { %2428 = vmatpush.msrb.mxu2 %v3918_v12  ;;  %v1308_v51 = vadd.f32 %v6047_v4, %v5924_v16  ;;  %v714_v2 = vadd.f32 %v5557_v23, %v5431_v56  ;;  %v1310_v4 = vadd.f32 %v6083_v21, %v5962_v58  ;;  %v717_v56 = vadd.f32 %v5610_v36, %v5485_v60 }
 0x211   : > { %2453 = vmatpush.msrb.mxu3 %v3922_v55  ;;  %2403 = vmatpush.msrb.mxu1 %v3914_v11  ;;  %v720_v60 = vadd.f32 %v5663_v45, %v5539_v19 }
 0x212   : > { %2429 = vmatpush.msrb.mxu2 %v3915_v15  ;;  %v1433_v1 = vpop.f32.mrf.mxu2 }
 0x213   : > { %3885 = vmatmul.msk.f32.gmra.mxu1 %vm434_vm1, %v2170_v37  ;;  %2454 = vmatpush.msrb.mxu3 %v3919_v59  ;;  %v1459_v18 = vpop.f32.mrf.mxu3  ;;  %v1469_v12 = vadd.f32 %v1433_v1, %v1304_v8 }
 0x214   : > { %3889 = vmatmul.msk.f32.gmra.mxu2 %vm434_vm1, %v2170_v37  ;;  %3893 = vmatmul.msk.f32.gmra.mxu3 %vm434_vm1, %v2170_v37  ;;  %v6131_v20 = vpop.f32.mrf.mxu1  ;;  %v1470_v55 = vadd.f32 %v1459_v18, %v1305_v63 }
 0x215   : > { %2455 = vmatpush.msrb.mxu3 %v3916_v25  ;;  %2404 = vmatpush.msrb.mxu1 %v3911_v10 }
 0x216   : > { %2430 = vmatpush.msrb.mxu2 %v3912_v30  ;;  %v2173_v26 = vpop.f32.mrf.mxu0 }
 0x217   : > { %2456 = vmatpush.msrb.mxu3 %v3913_v44  ;;  %2405 = vmatpush.msrb.mxu1 %v3908_v13  ;;  %v945_v13 = vadd.f32 %v5703_v22, %v714_v2 }
 0x218   : > { %2431 = vmatpush.msrb.mxu2 %v3909_v46 }
 0x219   : > { %2457 = vmatpush.msrb.mxu3 %v3910_v47  ;;  %2406 = vmatpush.msrb.mxu1 %v3905_v29  ;;  %v1125_v47 = vadd.f32 %v5835_v3, %v945_v13  ;;  %v1311_v29 = vadd.f32 %v6091_v9, %v5968_v17 }
 0x21a   : > { %2432 = vmatpush.msrb.mxu2 %v3906_v33  ;;  %v1436_v0 = vpop.f32.mrf.mxu2 }
 0x21b   : > { %3886 = vmatmul.msk.f32.gmra.mxu1 %vm434_vm1, %v2173_v26  ;;  %2458 = vmatpush.msrb.mxu3 %v3907_v54  ;;  %v1462_v35 = vpop.f32.mrf.mxu3  ;;  %v1472_v14 = vadd.f32 %v1436_v0, %v1307_v49  ;;  %v1303_v16 = vadd.f32 %v5970_v62, %v1125_v47  ;;  %v948_v54 = vadd.f32 %v5747_v31, %v717_v56 }
 0x21c   : > { %3890 = vmatmul.msk.f32.gmra.mxu2 %vm434_vm1, %v2173_v26  ;;  %3894 = vmatmul.msk.f32.gmra.mxu3 %vm434_vm1, %v2173_v26  ;;  %v6157_v39 = vpop.f32.mrf.mxu1  ;;  %v1473_v30 = vadd.f32 %v1462_v35, %v1308_v51 }
 0x21d   : > { %2407 = vmatpush.msrb.mxu1 %v3902_v24  ;;  %2433 = vmatpush.msrb.mxu2 %v3903_v5  ;;  %v1468_v23 = vadd.f32 %v6096_v52, %v1303_v16  ;;  %v1128_v58 = vadd.f32 %v5881_v53, %v948_v54  ;;  %v951_v52 = vadd.f32 %v5793_v41, %v720_v60 }
 0x21e   : > { %2459 = vmatpush.msrb.mxu3 %v3904_v28  ;;  %v2332_v43 = vpop.f32.mrf.mxu0 }
 0x21f   : > { %2408 = vmatpush.msrb.mxu1 %v3899_v32  ;;  %2434 = vmatpush.msrb.mxu2 %v3900_v48  ;;  %v1306_v17 = vadd.f32 %v6009_v27, %v1128_v58  ;;  %v1131_v0 = vadd.f32 %v5926_v50, %v951_v52 }
 0x220   : > { %2460 = vmatpush.msrb.mxu3 %v3901_v38 }
 0x221   : > { %v1471_v36 = vadd.f32 %v6131_v20, %v1306_v17  ;;  %v1309_v53 = vadd.f32 %v6056_v34, %v1131_v0 }
 0x223   : > { %3933 = vmatmul.msk.f32.vlgmr.msrb.gmra.mxu1 %vm434_vm1, %v2332_v43  ;;  %v1439_v42 = vpop.f32.mrf.mxu2  ;;  %v1465_v6 = vpop.f32.mrf.mxu3  ;;  %v1474_v27 = vadd.f32 %v6157_v39, %v1309_v53 }
 0x224   : > { %3937 = vmatmul.msk.f32.vlgmr.msrb.gmra.mxu2 %vm434_vm1, %v2332_v43  ;;  %3941 = vmatmul.msk.f32.vlgmr.msrb.gmra.mxu3 %vm434_vm1, %v2332_v43  ;;  %v1475_v22 = vadd.f32 %v1439_v42, %v1310_v4  ;;  %v1476_v18 = vadd.f32 %v1465_v6, %v1311_v29 }
 0x225   : > { %v1572_v7 = vpop.f32.mrf.mxu1 }
 0x226   : > { %v1633_v26 = vadd.f32 %v1572_v7, %v1468_v23 }
 0x227   : > { %v2335_v61 = vpop.f32.mrf.mxu0 }
 0x22b   : > { %3934 = vmatmul.msk.f32.gmra.mxu1 %vm434_vm1, %v2335_v61  ;;  %v1598_v11 = vpop.f32.mrf.mxu2 }
 0x22c   : > { %3938 = vmatmul.msk.f32.gmra.mxu2 %vm434_vm1, %v2335_v61  ;;  %3942 = vmatmul.msk.f32.gmra.mxu3 %vm434_vm1, %v2335_v61  ;;  %v1634_v15 = vadd.f32 %v1598_v11, %v1469_v12  ;;  %v1624_v59 = vpop.f32.mrf.mxu3 }
 0x22d   : > { %v1635_v37 = vadd.f32 %v1624_v59, %v1470_v55  ;;  %v1575_v25 = vpop.f32.mrf.mxu1 }
 0x22e   : > { %v1636_v28 = vadd.f32 %v1575_v25, %v1471_v36 }
 0x22f   : > { %v2338_v10 = vpop.f32.mrf.mxu0 }
 0x233   : > { %3935 = vmatmul.msk.f32.gmra.mxu1 %vm434_vm1, %v2338_v10  ;;  %v1601_v44 = vpop.f32.mrf.mxu2 }
 0x234   : > { %3939 = vmatmul.msk.f32.gmra.mxu2 %vm434_vm1, %v2338_v10  ;;  %3943 = vmatmul.msk.f32.gmra.mxu3 %vm434_vm1, %v2338_v10  ;;  %v1637_v46 = vadd.f32 %v1601_v44, %v1472_v14  ;;  %v1627_v1 = vpop.f32.mrf.mxu3 }
 0x235   : > { %v1638_v40 = vadd.f32 %v1627_v1, %v1473_v30  ;;  %v1578_v57 = vpop.f32.mrf.mxu1 }
 0x236   : > { %v1639_v42 = vadd.f32 %v1578_v57, %v1474_v27 }
 0x23b   : > { %v1604_v33 = vpop.f32.mrf.mxu2 }
 0x23c   : > { %v1640_v3 = vadd.f32 %v1604_v33, %v1475_v22  ;;  %v1630_v24 = vpop.f32.mrf.mxu3 }
 0x23d   : > { %v1641_v62 = vadd.f32 %v1630_v24, %v1476_v18  ;;  %v1737_v5 = vpop.f32.mrf.mxu1 }
 0x23e   : > { %v1798_v21 = vadd.f32 %v1737_v5, %v1633_v26 }
 0x244   : > { %v1763_v9 = vpop.f32.mrf.mxu2  ;;  %v1789_v32 = vpop.f32.mrf.mxu3 }
 0x245   : > { %v1799_v31 = vadd.f32 %v1763_v9, %v1634_v15  ;;  %v1800_v48 = vadd.f32 %v1789_v32, %v1635_v37  ;;  %v2480_v32 = vld [vmem:[%s6884_s3] sm:$0x7] }
 0x246   : > { %v1740_v38 = vpop.f32.mrf.mxu1 }
 0x247   : > { %v1801_v35 = vadd.f32 %v1740_v38, %v1636_v28 }
 0x24c   : > { %v1766_v43 = vpop.f32.mrf.mxu2 }
 0x24d   : > { %v1802_v19 = vadd.f32 %v1766_v43, %v1637_v46  ;;  %v1792_v45 = vpop.f32.mrf.mxu3 }
 0x24e   : > { %v1803_v20 = vadd.f32 %v1792_v45, %v1638_v40 }
 0x24f   : > { %v1743_v6 = vpop.f32.mrf.mxu1 }
 0x250   : > { %v1804_v7 = vadd.f32 %v1743_v6, %v1639_v42  ;;  %v2482_v42 = vperm.slane %v2480_v32, 0 }
 0x254   : > { %v1769_v41 = vpop.f32.mrf.mxu2 }
 0x255   : > { %v1805_v61 = vadd.f32 %v1769_v41, %v1640_v3  ;;  %v1795_v8 = vpop.f32.mrf.mxu3 }
 0x256   : > { %v1806_v63 = vadd.f32 %v1795_v8, %v1641_v62 }
 0x257   : > { %v1915_v12 = vpop.f32.mrf.mxu1 }
 0x258   : > { %v1976_v55 = vadd.f32 %v1915_v12, %v1798_v21 }
 0x25d   : > { %v1941_v11 = vpop.f32.mrf.mxu2 }
 0x25e   : > { %v1977_v50 = vadd.f32 %v1941_v11, %v1799_v31  ;;  %v1967_v15 = vpop.f32.mrf.mxu3 }
 0x25f   : > { %v1978_v59 = vadd.f32 %v1967_v15, %v1800_v48  ;;  %v1918_v34 = vpop.f32.mrf.mxu1 }
 0x260   : > { %v1979_v37 = vadd.f32 %v1918_v34, %v1801_v35 }
 0x265   : > { %v1944_v39 = vpop.f32.mrf.mxu2 }
 0x266   : > { %v1980_v25 = vadd.f32 %v1944_v39, %v1802_v19  ;;  %v1970_v10 = vpop.f32.mrf.mxu3  ;;  %v2483_v39 = vperm.slane %v2480_v32, 1 }
 0x267   : > { %v1981_v49 = vadd.f32 %v1970_v10, %v1803_v20  ;;  %v1921_v51 = vpop.f32.mrf.mxu1  ;;  %v2484_v10 = vperm.slane %v2480_v32, 2  ;;  %v3971_v32 = vld [vmem:[%s6886_s5 + $0x1c0] sm:$0xff] }
 0x268   : > { %v1982_v2 = vadd.f32 %v1921_v51, %v1804_v7 }
 0x26d   : > { %v1947_v14 = vpop.f32.mrf.mxu2 }
 0x26e   : > { %v1983_v30 = vadd.f32 %v1947_v14, %v1805_v61  ;;  %v1973_v44 = vpop.f32.mrf.mxu3 }
 0x26f   : > { %v1984_v13 = vadd.f32 %v1973_v44, %v1806_v63  ;;  %v2080_v46 = vpop.f32.mrf.mxu1 }
 0x270   : > { %v2141_v1 = vadd.f32 %v2080_v46, %v1976_v55  ;;  %v2506_v46 = vld [vmem:[%s6885_s4] sm:$0x1f] }
 0x276   : > { %v2106_v40 = vpop.f32.mrf.mxu2  ;;  %v2132_v57 = vpop.f32.mrf.mxu3 }
 0x277   : > { %v2142_v47 = vadd.f32 %v2106_v40, %v1977_v50  ;;  %v2143_v16 = vadd.f32 %v2132_v57, %v1978_v59  ;;  %v2083_v4 = vpop.f32.mrf.mxu1 }
 0x278   : > { %v2144_v52 = vadd.f32 %v2083_v4, %v1979_v37  ;;  %v3950_v4 = vld [vmem:[%s6885_s4 + $0x8] sm:$0x1f] }
 0x27e   : > { %v2109_v29 = vpop.f32.mrf.mxu2  ;;  %v2135_v56 = vpop.f32.mrf.mxu3 }
 0x27f   : > { %v2086_v23 = vpop.f32.mrf.mxu1  ;;  %v2145_v45 = vadd.f32 %v2109_v29, %v1980_v25  ;;  %v2146_v20 = vadd.f32 %v2135_v56, %v1981_v49 }
 0x280   : > { %v2147_v28 = vadd.f32 %v2086_v23, %v1982_v2 }
 0x286   : > { %v2112_v22 = vpop.f32.mrf.mxu2  ;;  %v2138_v18 = vpop.f32.mrf.mxu3 }
 0x287   : > { %v2148_v6 = vadd.f32 %v2112_v22, %v1983_v30  ;;  %v2149_v61 = vadd.f32 %v2138_v18, %v1984_v13  ;;  %v3987_v18 = vld [vmem:[%s6886_s5 + $0x240] sm:$0xff] }
 0x288   : > { %v2245_v33 = vpop.f32.mrf.mxu1 }
 0x289   : > { %v2306_v48 = vadd.f32 %v2245_v33, %v2141_v1  ;;  %v3988_v1 = vld [vmem:[%s6886_s5 + $0x248] sm:$0xff] }
 0x28f   : > { %v2271_v54 = vpop.f32.mrf.mxu2  ;;  %v2297_v26 = vpop.f32.mrf.mxu3 }
 0x290   : > { %v2248_v3 = vpop.f32.mrf.mxu1  ;;  %v2307_v12 = vadd.f32 %v2271_v54, %v2142_v47  ;;  %v2308_v55 = vadd.f32 %v2297_v26, %v2143_v16  ;;  %v3986_v26 = vld [vmem:[%s6886_s5 + $0x238] sm:$0xff] }
 0x291   : > { %v2309_v31 = vadd.f32 %v2248_v3, %v2144_v52  ;;  %v3980_v52 = vld [vmem:[%s6886_s5 + $0x208] sm:$0xff] }
 0x297   : > { %v2274_v24 = vpop.f32.mrf.mxu2  ;;  %v2300_v62 = vpop.f32.mrf.mxu3 }
 0x298   : > { %v2251_v5 = vpop.f32.mrf.mxu1  ;;  %v2310_v8 = vadd.f32 %v2274_v24, %v2145_v45  ;;  %v2311_v63 = vadd.f32 %v2300_v62, %v2146_v20  ;;  %v3985_v62 = vld [vmem:[%s6886_s5 + $0x230] sm:$0xff]  ;;  %v3995_v20 = vld [vmem:[%s6886_s5 + $0x280] sm:$0xff] }
 0x299   : > { %v2312_v38 = vadd.f32 %v2251_v5, %v2147_v28  ;;  %v3984_v5 = vld [vmem:[%s6886_s5 + $0x228] sm:$0xff]  ;;  %v2593_v28 = vld [vmem:[%s6886_s5 + $0x60] sm:$0xff]  ;;  %v3977_v45 = vld [vmem:[%s6886_s5 + $0x1f0] sm:$0xff] }
 0x29f   : > { %v2277_v58 = vpop.f32.mrf.mxu2  ;;  %v2303_v21 = vpop.f32.mrf.mxu3 }
 0x2a0   : > { %v2410_v17 = vpop.f32.mrf.mxu1  ;;  %v2313_v15 = vadd.f32 %v2277_v58, %v2148_v6  ;;  %v2314_v59 = vadd.f32 %v2303_v21, %v2149_v61  ;;  %v3983_v58 = vld [vmem:[%s6886_s5 + $0x220] sm:$0xff]  ;;  %v2596_v21 = vld [vmem:[%s6886_s5 + $0x78] sm:$0xff]  ;;  %v2590_v6 = vld [vmem:[%s6886_s5 + $0x48] sm:$0xff] }
 0x2a1   : > { %v2471_v43 = vadd.f32 %v2410_v17, %v2306_v48  ;;  %v3982_v17 = vld [vmem:[%s6886_s5 + $0x218] sm:$0xff]  ;;  %v3979_v48 = vld [vmem:[%s6886_s5 + $0x200] sm:$0xff] }
 0x2a2   : > { %v3994_v61 = vld [vmem:[%s6886_s5 + $0x278] sm:$0xff] }
 0x2a3   : > { %v2488_v11 = vadd.f32 %v2482_v42, %v2471_v43  ;;  %v3996_v43 = vld [vmem:[%s6886_s5 + $0x288] sm:$0xff] }
 0x2a5   : > { %v6209_v13 = vmax.f32 %v2488_v11, 0.0  ;;  %v2588_v11 = vld [vmem:[%s6886_s5 + $0x38] sm:$0xff] }
 0x2a7   : > { %v2436_v60 = vpop.f32.mrf.mxu2  ;;  %v2462_v36 = vpop.f32.mrf.mxu3 }
 0x2a8   : > { %v2413_v9 = vpop.f32.mrf.mxu1  ;;  %v2472_v2 = vadd.f32 %v2436_v60, %v2307_v12  ;;  %v2473_v14 = vadd.f32 %v2462_v36, %v2308_v55  ;;  %v2595_v60 = vld [vmem:[%s6886_s5 + $0x70] sm:$0xff]  ;;  %v3975_v12 = vld [vmem:[%s6886_s5 + $0x1e0] sm:$0xff] }
 0x2a9   : > { %v2474_v0 = vadd.f32 %v2413_v9, %v2309_v31  ;;  %v3981_v36 = vld [vmem:[%s6886_s5 + $0x210] sm:$0xff]  ;;  %v2594_v9 = vld [vmem:[%s6886_s5 + $0x68] sm:$0xff] }
 0x2aa   : > { %v2489_v29 = vadd.f32 %v2483_v39, %v2472_v2  ;;  %v2490_v56 = vadd.f32 %v2484_v10, %v2473_v14  ;;  %v3972_v31 = vld [vmem:[%s6886_s5 + $0x1c8] sm:$0xff]  ;;  %v3993_v55 = vld [vmem:[%s6886_s5 + $0x270] sm:$0xff]  ;;  %v3990_v14 = vld [vmem:[%s6886_s5 + $0x258] sm:$0xff] }
 0x2ab   : > { %v2491_v7 = vadd.f32 %v2482_v42, %v2474_v0  ;;  %v3997_v0 = vld [vmem:[%s6886_s5 + $0x290] sm:$0xff]  ;;  %v3964_v2 = vld [vmem:[%s6886_s5 + $0x188] sm:$0xff] }
 0x2ac   : > { %v6246_v3 = vmax.f32 %v2489_v29, 0.0  ;;  %v6248_v24 = vmax.f32 %v2490_v56, 0.0  ;;  %v2581_v29 = vld [vmem:[%s6886_s5] sm:$0xff] }
 0x2ad   : > { %v6203_v25 = vmax.f32 %v2491_v7, 0.0  ;;  %v3968_v7 = vld [vmem:[%s6886_s5 + $0x1a8] sm:$0xff]  ;;  %v3959_v56 = vld [vmem:[%s6886_s5 + $0x160] sm:$0xff] }
 0x2af   : > { %v2439_v35 = vpop.f32.mrf.mxu2  ;;  %v2465_v53 = vpop.f32.mrf.mxu3 }
 0x2b0   : > { %v2416_v27 = vpop.f32.mrf.mxu1  ;;  %v2475_v34 = vadd.f32 %v2439_v35, %v2310_v8  ;;  %v2476_v37 = vadd.f32 %v2465_v53, %v2311_v63  ;;  %v2592_v35 = vld [vmem:[%s6886_s5 + $0x58] sm:$0xff]  ;;  %v2589_v8 = vld [vmem:[%s6886_s5 + $0x40] sm:$0xff] }
 0x2b1   : > { %v2477_v19 = vadd.f32 %v2416_v27, %v2312_v38  ;;  %v3998_v38 = vld [vmem:[%s6886_s5 + $0x298] sm:$0xff]  ;;  %v3967_v63 = vld [vmem:[%s6886_s5 + $0x1a0] sm:$0xff] }
 0x2b2   : > { %v2492_v40 = vadd.f32 %v2483_v39, %v2475_v34  ;;  %v2493_v57 = vadd.f32 %v2484_v10, %v2476_v37  ;;  %v3970_v53 = vld [vmem:[%s6886_s5 + $0x1b8] sm:$0xff]  ;;  %v3992_v34 = vld [vmem:[%s6886_s5 + $0x268] sm:$0xff]  ;;  %v2587_v37 = vld [vmem:[%s6886_s5 + $0x30] sm:$0xff] }
 0x2b3   : > { %v2494_v41 = vadd.f32 %v2482_v42, %v2477_v19  ;;  %v3978_v27 = vld [vmem:[%s6886_s5 + $0x1f8] sm:$0xff]  ;;  %v2591_v42 = vld [vmem:[%s6886_s5 + $0x50] sm:$0xff] }
 0x2b4   : > { %v6233_v33 = vmax.f32 %v2492_v40, 0.0  ;;  %v6235_v54 = vmax.f32 %v2493_v57, 0.0  ;;  %v3969_v19 = vld [vmem:[%s6886_s5 + $0x1b0] sm:$0xff]  ;;  %v2612_v40 = vld [vmem:[%s6886_s5 + $0xf8] sm:$0xff] }
 0x2b5   : > { %v6201_v50 = vmax.f32 %v2494_v41, 0.0  ;;  %v3976_v41 = vld [vmem:[%s6886_s5 + $0x1e8] sm:$0xff]  ;;  %v2583_v57 = vld [vmem:[%s6886_s5 + $0x10] sm:$0xff] }
 0x2b7   : > { %v2442_v49 = vpop.f32.mrf.mxu2  ;;  %v2468_v51 = vpop.f32.mrf.mxu3  ;;  %3944 = vmatpush.msk.msra.mxu0 %vm2511_vm2, %v6201_v50  ;;  %3951 = vmatpush.msk.msra.mxu3 %vm2511_vm2, %v6201_v50 }
 0x2b8   : > { %v2478_v30 = vadd.f32 %v2442_v49, %v2313_v15  ;;  %v2479_v44 = vadd.f32 %v2468_v51, %v2314_v59  ;;  %v3966_v15 = vld [vmem:[%s6886_s5 + $0x198] sm:$0xff]  ;;  %v3991_v49 = vld [vmem:[%s6886_s5 + $0x260] sm:$0xff]  ;;  %v2586_v51 = vld [vmem:[%s6886_s5 + $0x28] sm:$0xff] }
 0x2b9   : > { %2535 = vmatpush.msra.mxu0 %v6203_v25  ;;  %2642 = vmatpush.msra.mxu3 %v6203_v25  ;;  %v3974_v59 = vld [vmem:[%s6886_s5 + $0x1d8] sm:$0xff] }
 0x2ba   : > { %v2495_v47 = vadd.f32 %v2483_v39, %v2478_v30  ;;  %v2496_v16 = vadd.f32 %v2484_v10, %v2479_v44  ;;  %v3965_v39 = vld [vmem:[%s6886_s5 + $0x190] sm:$0xff]  ;;  %v2585_v30 = vld [vmem:[%s6886_s5 + $0x20] sm:$0xff] }
 0x2bb   : > { %2536 = vmatpush.msra.mxu0 %v6209_v13  ;;  %2643 = vmatpush.msra.mxu3 %v6209_v13  ;;  %v3973_v10 = vld [vmem:[%s6886_s5 + $0x1d0] sm:$0xff]  ;;  %v3963_v44 = vld [vmem:[%s6886_s5 + $0x180] sm:$0xff] }
 0x2bc   : > { %v6224_v23 = vmax.f32 %v2495_v47, 0.0  ;;  %v6226_v22 = vmax.f32 %v2496_v16, 0.0  ;;  %3945 = vmatmul.msk.f32.vlgmr.msra.gmra.mxu0 %vm2507_vm3, %v2506_v46  ;;  %3952 = vmatmul.msk.f32.vlgmr.msra.gmra.mxu3 %vm2507_vm3, %v3950_v4  ;;  %v2611_v47 = vld [vmem:[%s6886_s5 + $0xf0] sm:$0xff]  ;;  %v2582_v16 = vld [vmem:[%s6886_s5 + $0x8] sm:$0xff] }
 0x2bd   : > { %2755 = vmatpush.msrb.mxu3 %v3988_v1  ;;  %v2584_v1 = vld [vmem:[%s6886_s5 + $0x18] sm:$0xff] }
 0x2be   : > { %3946 = vmatpush.msk.msra.mxu1 %vm2511_vm2, %v6224_v23  ;;  %3948 = vmatpush.msk.msra.mxu2 %vm2511_vm2, %v6226_v22 }
 0x2bf   : > { %3953 = vmatpush.msk.msrb.mxu0 %vm2511_vm2, %v6224_v23  ;;  %2756 = vmatpush.msrb.mxu3 %v3987_v18  ;;  %v2609_v18 = vld [vmem:[%s6886_s5 + $0xe0] sm:$0xff] }
 0x2c0   : > { %2555 = vmatpush.msra.mxu1 %v6233_v33  ;;  %2575 = vmatpush.msra.mxu2 %v6235_v54 }
 0x2c1   : > { %2662 = vmatpush.msrb.mxu0 %v6233_v33  ;;  %2757 = vmatpush.msrb.mxu3 %v3986_v26  ;;  %v3958_v26 = vld [vmem:[%s6886_s5 + $0x158] sm:$0xff] }
 0x2c2   : > { %2556 = vmatpush.msra.mxu1 %v6246_v3  ;;  %2576 = vmatpush.msra.mxu2 %v6248_v24 }
 0x2c3   : > { %2663 = vmatpush.msrb.mxu0 %v6246_v3  ;;  %3947 = vmatmul.msk.f32.vlgmr.msra.gmra.mxu1 %vm2507_vm3, %v2506_v46 }
 0x2c4   : > { %3955 = vmatpush.msk.msrb.mxu1 %vm2511_vm2, %v6226_v22  ;;  %2758 = vmatpush.msrb.mxu3 %v3985_v62  ;;  %v3957_v62 = vld [vmem:[%s6886_s5 + $0x150] sm:$0xff] }
 0x2c5   : > { %3954 = vmatmul.msk.f32.vlgmr.msrb.gmra.mxu0 %vm2507_vm3, %v3950_v4  ;;  %3949 = vmatmul.msk.f32.vlgmr.msra.gmra.mxu2 %vm2507_vm3, %v2506_v46  ;;  %v3989_v46 = vld [vmem:[%s6886_s5 + $0x250] sm:$0xff] }
 0x2c6   : > { %2682 = vmatpush.msrb.mxu1 %v6235_v54  ;;  %2759 = vmatpush.msrb.mxu3 %v3984_v5  ;;  %v2608_v5 = vld [vmem:[%s6886_s5 + $0xd8] sm:$0xff] }
 0x2c7   : > { %2735 = vmatpush.msrb.mxu2 %v3972_v31  ;;  %2781 = vmatpush.msra.mxu0 %v3998_v38  ;;  %v2602_v31 = vld [vmem:[%s6886_s5 + $0xa8] sm:$0xff]  ;;  %v2615_v38 = vld [vmem:[%s6886_s5 + $0x110] sm:$0xff] }
 0x2c8   : > { %2683 = vmatpush.msrb.mxu1 %v6248_v24  ;;  %2760 = vmatpush.msrb.mxu3 %v3983_v58  ;;  %v2607_v58 = vld [vmem:[%s6886_s5 + $0xd0] sm:$0xff] }
 0x2c9   : > { %2736 = vmatpush.msrb.mxu2 %v3971_v32  ;;  %2782 = vmatpush.msra.mxu0 %v3997_v0  ;;  %v2616_v32 = vld [vmem:[%s6886_s5 + $0x118] sm:$0xff] }
 0x2ca   : > { %2798 = vmatpush.msra.mxu1 %v2596_v21  ;;  %2761 = vmatpush.msrb.mxu3 %v3982_v17  ;;  %v2620_v21 = vld [vmem:[%s6886_s5 + $0x138] sm:$0xff]  ;;  %v2605_v17 = vld [vmem:[%s6886_s5 + $0xc0] sm:$0xff] }
 0x2cb   : > { %3956 = vmatmul.msk.f32.vlgmr.msrb.gmra.mxu1 %vm2507_vm3, %v3950_v4  ;;  %2737 = vmatpush.msrb.mxu2 %v3970_v53  ;;  %v3960_v4 = vld [vmem:[%s6886_s5 + $0x168] sm:$0xff]  ;;  %v2600_v0 = vld [vmem:[%s6886_s5 + $0x98] sm:$0xff]  ;;  %v2599_v53 = vld [vmem:[%s6886_s5 + $0x90] sm:$0xff] }
 0x2cc   : > { %2799 = vmatpush.msra.mxu1 %v2595_v60  ;;  %2762 = vmatpush.msrb.mxu3 %v3981_v36  ;;  %v2619_v60 = vld [vmem:[%s6886_s5 + $0x130] sm:$0xff]  ;;  %v2604_v36 = vld [vmem:[%s6886_s5 + $0xb8] sm:$0xff] }
 0x2cd   : > { %2783 = vmatpush.msra.mxu0 %v3996_v43  ;;  %2738 = vmatpush.msrb.mxu2 %v3969_v19  ;;  %v2598_v43 = vld [vmem:[%s6886_s5 + $0x88] sm:$0xff]  ;;  %v4023_v19 = vld [vmem:[%s6886_s5 + $0x318] sm:$0xff] }
 0x2ce   : > { %2800 = vmatpush.msra.mxu1 %v2594_v9  ;;  %2763 = vmatpush.msrb.mxu3 %v3980_v52  ;;  %v2618_v9 = vld [vmem:[%s6886_s5 + $0x128] sm:$0xff]  ;;  %v2603_v52 = vld [vmem:[%s6886_s5 + $0xb0] sm:$0xff] }
 0x2cf   : > { %2784 = vmatpush.msra.mxu0 %v3995_v20  ;;  %2739 = vmatpush.msrb.mxu2 %v3968_v7  ;;  %v4022_v20 = vld [vmem:[%s6886_s5 + $0x310] sm:$0xff]  ;;  %v4020_v7 = vld [vmem:[%s6886_s5 + $0x300] sm:$0xff] }
 0x2d0   : > { %2801 = vmatpush.msra.mxu1 %v2593_v28  ;;  %2764 = vmatpush.msrb.mxu3 %v3979_v48  ;;  %v2617_v28 = vld [vmem:[%s6886_s5 + $0x120] sm:$0xff] }
 0x2d1   : > { %2785 = vmatpush.msra.mxu0 %v3994_v61  ;;  %2740 = vmatpush.msrb.mxu2 %v3967_v63  ;;  %v2601_v48 = vld [vmem:[%s6886_s5 + $0xa0] sm:$0xff]  ;;  %v4049_v61 = vld [vmem:[%s6886_s5 + $0x3e8] sm:$0xff] }
 0x2d2   : > { %2802 = vmatpush.msra.mxu1 %v2592_v35  ;;  %2765 = vmatpush.msrb.mxu3 %v3978_v27  ;;  %v2614_v35 = vld [vmem:[%s6886_s5 + $0x108] sm:$0xff]  ;;  %v2613_v27 = vld [vmem:[%s6886_s5 + $0x100] sm:$0xff] }
 0x2d3   : > { %2786 = vmatpush.msra.mxu0 %v3993_v55  ;;  %2741 = vmatpush.msrb.mxu2 %v3966_v15 }
 0x2d4   : > { %2803 = vmatpush.msra.mxu1 %v2591_v42  ;;  %2766 = vmatpush.msrb.mxu3 %v3977_v45  ;;  %v2597_v42 = vld [vmem:[%s6886_s5 + $0x80] sm:$0xff] }
 0x2d5   : > { %2787 = vmatpush.msra.mxu0 %v3992_v34  ;;  %2742 = vmatpush.msrb.mxu2 %v3965_v39  ;;  %v4035_v34 = vld [vmem:[%s6886_s5 + $0x378] sm:$0xff]  ;;  %v4033_v39 = vld [vmem:[%s6886_s5 + $0x368] sm:$0xff] }
 0x2d6   : > { %2804 = vmatpush.msra.mxu1 %v2590_v6  ;;  %2767 = vmatpush.msrb.mxu3 %v3976_v41  ;;  %v4021_v6 = vld [vmem:[%s6886_s5 + $0x308] sm:$0xff]  ;;  %v4001_v41 = vld [vmem:[%s6885_s4 + $0x10] sm:$0x1f] }
 0x2d7   : > { %2788 = vmatpush.msra.mxu0 %v3991_v49  ;;  %2743 = vmatpush.msrb.mxu2 %v3964_v2  ;;  %v4018_v49 = vld [vmem:[%s6886_s5 + $0x2f0] sm:$0xff]  ;;  %v4017_v2 = vld [vmem:[%s6886_s5 + $0x2e8] sm:$0xff] }
 0x2d8   : > { %2805 = vmatpush.msra.mxu1 %v2589_v8  ;;  %2768 = vmatpush.msrb.mxu3 %v3975_v12  ;;  %v4019_v12 = vld [vmem:[%s6886_s5 + $0x2f8] sm:$0xff] }
 0x2d9   : > { %2789 = vmatpush.msra.mxu0 %v3990_v14  ;;  %2744 = vmatpush.msrb.mxu2 %v3963_v44  ;;  %v4030_v14 = vld [vmem:[%s6886_s5 + $0x350] sm:$0xff]  ;;  %v4029_v44 = vld [vmem:[%s6886_s5 + $0x348] sm:$0xff] }
 0x2da   : > { %2806 = vmatpush.msra.mxu1 %v2588_v11  ;;  %2769 = vmatpush.msrb.mxu3 %v3974_v59  ;;  %v4039_v59 = vld [vmem:[%s6886_s5 + $0x398] sm:$0xff] }
 0x2db   : > { %2790 = vmatpush.msra.mxu0 %v3989_v46  ;;  %v4015_v46 = vld [vmem:[%s6886_s5 + $0x2d8] sm:$0xff] }
 0x2dc   : > { %2807 = vmatpush.msra.mxu1 %v2587_v37  ;;  %2770 = vmatpush.msrb.mxu3 %v3973_v10  ;;  %v4034_v37 = vld [vmem:[%s6886_s5 + $0x370] sm:$0xff]  ;;  %v4032_v10 = vld [vmem:[%s6886_s5 + $0x360] sm:$0xff] }
 0x2dd   : > { %2818 = vmatpush.msrb.mxu0 %v2612_v40  ;;  %v4027_v40 = vld [vmem:[%s6886_s5 + $0x338] sm:$0xff] }
 0x2de   : > { %2808 = vmatpush.msra.mxu1 %v2586_v51  ;;  %4002 = vmatpush.msk.msra.mxu3 %vm2511_vm2, %v6201_v50  ;;  %v3962_v50 = vld [vmem:[%s6886_s5 + $0x178] sm:$0xff] }
 0x2df   : > { %2745 = vmatpush.msrb.mxu2 %v3962_v50  ;;  %2819 = vmatpush.msrb.mxu0 %v2611_v47  ;;  %v4031_v51 = vld [vmem:[%s6886_s5 + $0x358] sm:$0xff]  ;;  %v4014_v50 = vld [vmem:[%s6886_s5 + $0x2d0] sm:$0xff]  ;;  %v4048_v47 = vld [vmem:[%s6886_s5 + $0x3e0] sm:$0xff] }
 0x2e0   : > { %2809 = vmatpush.msra.mxu1 %v2585_v30  ;;  %2877 = vmatpush.msra.mxu3 %v6203_v25  ;;  %v3961_v25 = vld [vmem:[%s6886_s5 + $0x170] sm:$0xff]  ;;  %v4016_v30 = vld [vmem:[%s6886_s5 + $0x2e0] sm:$0xff] }
 0x2e1   : > { %2746 = vmatpush.msrb.mxu2 %v3961_v25  ;;  %v4026_v25 = vld [vmem:[%s6886_s5 + $0x330] sm:$0xff] }
 0x2e2   : > { %2810 = vmatpush.msra.mxu1 %v2584_v1  ;;  %2878 = vmatpush.msra.mxu3 %v6209_v13  ;;  %v2610_v13 = vld [vmem:[%s6886_s5 + $0xe8] sm:$0xff]  ;;  %v4028_v1 = vld [vmem:[%s6886_s5 + $0x340] sm:$0xff] }
 0x2e3   : > { %2747 = vmatpush.msrb.mxu2 %v3960_v4  ;;  %2820 = vmatpush.msrb.mxu0 %v2610_v13  ;;  %v4025_v4 = vld [vmem:[%s6886_s5 + $0x328] sm:$0xff]  ;;  %v4047_v13 = vld [vmem:[%s6886_s5 + $0x3d8] sm:$0xff] }
 0x2e4   : > { %2811 = vmatpush.msra.mxu1 %v2583_v57  ;;  %v4013_v57 = vld [vmem:[%s6886_s5 + $0x2c8] sm:$0xff] }
 0x2e5   : > { %2748 = vmatpush.msrb.mxu2 %v3959_v56  ;;  %2821 = vmatpush.msrb.mxu0 %v2609_v18  ;;  %v4011_v56 = vld [vmem:[%s6886_s5 + $0x2b8] sm:$0xff]  ;;  %v4024_v18 = vld [vmem:[%s6886_s5 + $0x320] sm:$0xff] }
 0x2e6   : > { %2812 = vmatpush.msra.mxu1 %v2582_v16  ;;  %v4012_v16 = vld [vmem:[%s6886_s5 + $0x2c0] sm:$0xff] }
 0x2e7   : > { %2749 = vmatpush.msrb.mxu2 %v3958_v26  ;;  %2822 = vmatpush.msrb.mxu0 %v2608_v5  ;;  %v4010_v26 = vld [vmem:[%s6886_s5 + $0x2b0] sm:$0xff]  ;;  %v4009_v5 = vld [vmem:[%s6886_s5 + $0x2a8] sm:$0xff] }
 0x2e8   : > { %2813 = vmatpush.msra.mxu1 %v2581_v29  ;;  %v4046_v29 = vld [vmem:[%s6886_s5 + $0x3d0] sm:$0xff] }
 0x2e9   : > { %2750 = vmatpush.msrb.mxu2 %v3957_v62  ;;  %2823 = vmatpush.msrb.mxu0 %v2607_v58  ;;  %v4045_v62 = vld [vmem:[%s6886_s5 + $0x3c8] sm:$0xff]  ;;  %v4008_v58 = vld [vmem:[%s6886_s5 + $0x2a0] sm:$0xff] }
 0x2ea   : > { %4004 = vmatpush.msk.msrb.mxu1 %vm2511_vm2, %v6224_v23  ;;  %v2622_v23 = vld [vmem:[%s6886_s5 + $0x148] sm:$0xff] }
 0x2eb   : > { %2844 = vmatpush.msra.mxu2 %v2622_v23  ;;  %v4044_v23 = vld [vmem:[%s6886_s5 + $0x3c0] sm:$0xff] }
 0x2ec   : > { %2897 = vmatpush.msrb.mxu1 %v6233_v33  ;;  %v2621_v33 = vld [vmem:[%s6886_s5 + $0x140] sm:$0xff] }
 0x2ed   : > { %2845 = vmatpush.msra.mxu2 %v2621_v33  ;;  %v4043_v33 = vld [vmem:[%s6886_s5 + $0x3b8] sm:$0xff] }
 0x2ee   : > { %2898 = vmatpush.msrb.mxu1 %v6246_v3  ;;  %v2606_v3 = vld [vmem:[%s6886_s5 + $0xc8] sm:$0xff] }
 0x2ef   : > { %2824 = vmatpush.msrb.mxu0 %v2606_v3  ;;  %2846 = vmatpush.msra.mxu2 %v2620_v21  ;;  %v4042_v3 = vld [vmem:[%s6886_s5 + $0x3b0] sm:$0xff]  ;;  %v4041_v21 = vld [vmem:[%s6886_s5 + $0x3a8] sm:$0xff] }
 0x2f1   : > { %2825 = vmatpush.msrb.mxu0 %v2605_v17  ;;  %2847 = vmatpush.msra.mxu2 %v2619_v60  ;;  %v4040_v17 = vld [vmem:[%s6886_s5 + $0x3a0] sm:$0xff] }
 0x2f3   : > { %2826 = vmatpush.msrb.mxu0 %v2604_v36  ;;  %2848 = vmatpush.msra.mxu2 %v2618_v9  ;;  %v4060_v36 = vld [vmem:[%s6888_s7 + $0x98] sm:$0xff]  ;;  %v4059_v9 = vld [vmem:[%s6888_s7 + $0x90] sm:$0xff] }
 0x2f5   : > { %2827 = vmatpush.msrb.mxu0 %v2603_v52  ;;  %2849 = vmatpush.msra.mxu2 %v2617_v28  ;;  %v3045_v52 = vld [vmem:[%s6888_s7 + $0x48] sm:$0xff] }
 0x2f6   : > { %v4058_v28 = vld [vmem:[%s6888_s7 + $0x88] sm:$0xff] }
 0x2f7   : > { %2828 = vmatpush.msrb.mxu0 %v2602_v31  ;;  %2850 = vmatpush.msra.mxu2 %v2616_v32  ;;  %v3044_v31 = vld [vmem:[%s6888_s7 + $0x40] sm:$0xff]  ;;  %v4083_v32 = vld [vmem:[%s6888_s7 + $0x138] sm:$0xff] }
 0x2f9   : > { %2829 = vmatpush.msrb.mxu0 %v2601_v48  ;;  %2851 = vmatpush.msra.mxu2 %v2615_v38  ;;  %v4094_v48 = vld [vmem:[%s6888_s7 + $0x188] sm:$0xff]  ;;  %v3043_v38 = vld [vmem:[%s6888_s7 + $0x38] sm:$0xff] }
 0x2fb   : > { %2830 = vmatpush.msrb.mxu0 %v2600_v0  ;;  %2852 = vmatpush.msra.mxu2 %v2614_v35  ;;  %v4057_v0 = vld [vmem:[%s6888_s7 + $0x80] sm:$0xff]  ;;  %v4082_v35 = vld [vmem:[%s6888_s7 + $0x130] sm:$0xff] }
 0x2fd   : > { %2831 = vmatpush.msrb.mxu0 %v2599_v53  ;;  %2853 = vmatpush.msra.mxu2 %v2613_v27  ;;  %v4093_v53 = vld [vmem:[%s6888_s7 + $0x180] sm:$0xff]  ;;  %v3042_v27 = vld [vmem:[%s6888_s7 + $0x30] sm:$0xff] }
 0x2ff   : > { %2832 = vmatpush.msrb.mxu0 %v2598_v43  ;;  %v4081_v43 = vld [vmem:[%s6888_s7 + $0x128] sm:$0xff] }
 0x301   : > { %2833 = vmatpush.msrb.mxu0 %v2597_v42  ;;  %v4092_v42 = vld [vmem:[%s6888_s7 + $0x178] sm:$0xff] }
 0x339   : > { %v2538_v45 = vpop.f32.mrf.mxu0 }
 0x33a   : > { %2814 = vmatmul.f32.vlgmr.msra.gmra.mxu1 %v2538_v45 }
 0x33b   : > { %2969 = vmatpush.msra.mxu1 %v4023_v19  ;;  %v4056_v19 = vld [vmem:[%s6888_s7 + $0x78] sm:$0xff] }
 0x33d   : > { %2970 = vmatpush.msra.mxu1 %v4022_v20  ;;  %v4055_v20 = vld [vmem:[%s6888_s7 + $0x70] sm:$0xff] }
 0x33f   : > { %2971 = vmatpush.msra.mxu1 %v4021_v6  ;;  %v2645_v63 = vpop.f32.mrf.mxu3  ;;  %v4054_v6 = vld [vmem:[%s6888_s7 + $0x68] sm:$0xff] }
 0x340   : > { %v2558_v8 = vpop.f32.mrf.mxu1  ;;  %2751 = vmatmul.f32.vlgmr.msrb.gmra.mxu2 %v2645_v63 }
 0x341   : > { %2972 = vmatpush.msra.mxu1 %v4020_v7  ;;  %3015 = vmatpush.msrb.mxu2 %v4049_v61  ;;  %v4053_v7 = vld [vmem:[%s6888_s7 + $0x60] sm:$0xff]  ;;  %v4052_v61 = vld [vmem:[%s6888_s7 + $0x58] sm:$0xff] }
 0x342   : > { %v2665_v55 = vpop.f32.mrf.mxu0  ;;  %4005 = vmatmul.msk.f32.vlgmr.msrb.gmra.mxu1 %vm2507_vm3, %v4001_v41 }
 0x343   : > { %2771 = vmatmul.f32.vlgmr.msrb.gmra.mxu3 %v2665_v55  ;;  %2973 = vmatpush.msra.mxu1 %v4019_v12 }
 0x344   : > { %4006 = vmatpush.msk.msrb.mxu3 %vm2511_vm2, %v6226_v22  ;;  %v4038_v22 = vld [vmem:[%s6886_s5 + $0x390] sm:$0xff]  ;;  %3016 = vmatpush.msrb.mxu2 %v4048_v47 }
 0x345   : > { %2974 = vmatpush.msra.mxu1 %v4018_v49  ;;  %v4090_v49 = vld [vmem:[%s6888_s7 + $0x168] sm:$0xff]  ;;  %v4087_v47 = vld [vmem:[%s6888_s7 + $0x150] sm:$0xff] }
 0x346   : > { %2917 = vmatpush.msrb.mxu3 %v6235_v54  ;;  %v4037_v54 = vld [vmem:[%s6886_s5 + $0x388] sm:$0xff]  ;;  %3017 = vmatpush.msrb.mxu2 %v4047_v13  ;;  %v4075_v13 = vld [vmem:[%s6888_s7 + $0xf8] sm:$0xff] }
 0x347   : > { %2975 = vmatpush.msra.mxu1 %v4017_v2  ;;  %v4071_v2 = vld [vmem:[%s6888_s7 + $0xe0] sm:$0xff] }
 0x348   : > { %2918 = vmatpush.msrb.mxu3 %v6248_v24  ;;  %v2578_v11 = vpop.f32.mrf.mxu2  ;;  %v2685_v15 = vpop.f32.mrf.mxu1  ;;  %v4036_v24 = vld [vmem:[%s6886_s5 + $0x380] sm:$0xff]  ;;  %3018 = vmatpush.msrb.mxu2 %v4046_v29  ;;  %v4086_v29 = vld [vmem:[%s6888_s7 + $0x148] sm:$0xff] }
 0x349   : > { %4000 = vmatmul.msk.f32.vlgmr.msra.gmra.mxu2 %vm2731_vm4, %v2578_v11  ;;  %3999 = vmatmul.msk.f32.vlgmr.msra.gmra.mxu0 %vm2731_vm4, %v2685_v15 }
 0x34a   : > { %2976 = vmatpush.msra.mxu1 %v4016_v30  ;;  %3019 = vmatpush.msrb.mxu2 %v4045_v62  ;;  %v4089_v30 = vld [vmem:[%s6888_s7 + $0x160] sm:$0xff]  ;;  %v4066_v62 = vld [vmem:[%s6888_s7 + $0xb8] sm:$0xff] }
 0x34b   : > { %4003 = vmatmul.msk.f32.vlgmr.msra.gmra.mxu3 %vm2507_vm3, %v4001_v41  ;;  %3067 = vmatpush.msra.mxu0 %v4060_v36 }
 0x34c   : > { %2989 = vmatpush.msra.mxu3 %v4039_v59  ;;  %2977 = vmatpush.msra.mxu1 %v4015_v46  ;;  %v4070_v46 = vld [vmem:[%s6888_s7 + $0xd8] sm:$0xff] }
 0x34d   : > { %3020 = vmatpush.msrb.mxu2 %v4044_v23  ;;  %3068 = vmatpush.msra.mxu0 %v4059_v9  ;;  %v4064_v23 = vld [vmem:[%s6888_s7 + $0xa8] sm:$0xff] }
 0x34e   : > { %2990 = vmatpush.msra.mxu3 %v4038_v22  ;;  %2978 = vmatpush.msra.mxu1 %v4014_v50  ;;  %v3041_v22 = vld [vmem:[%s6888_s7 + $0x28] sm:$0xff]  ;;  %v4088_v50 = vld [vmem:[%s6888_s7 + $0x158] sm:$0xff] }
 0x34f   : > { %3021 = vmatpush.msrb.mxu2 %v4043_v33  ;;  %3069 = vmatpush.msra.mxu0 %v4058_v28 }
 0x350   : > { %2991 = vmatpush.msra.mxu3 %v4037_v54  ;;  %2979 = vmatpush.msra.mxu1 %v4013_v57  ;;  %v4080_v54 = vld [vmem:[%s6888_s7 + $0x120] sm:$0xff]  ;;  %v4069_v57 = vld [vmem:[%s6888_s7 + $0xd0] sm:$0xff] }
 0x351   : > { %2834 = vmatmul.f32.vlgmr.msrb.gmra.mxu0 %v2558_v8  ;;  %3022 = vmatpush.msrb.mxu2 %v4042_v3 }
 0x352   : > { %2992 = vmatpush.msra.mxu3 %v4036_v24  ;;  %2980 = vmatpush.msra.mxu1 %v4012_v16  ;;  %v4091_v24 = vld [vmem:[%s6888_s7 + $0x170] sm:$0xff]  ;;  %v3036_v16 = vld [vmem:[%s6888_s7] sm:$0xff] }
 0x353   : > { %4007 = vmatmul.msk.f32.vlgmr.msrb.gmra.mxu3 %vm2507_vm3, %v4001_v41  ;;  %3023 = vmatpush.msrb.mxu2 %v4041_v21 }
 0x354   : > { %2993 = vmatpush.msra.mxu3 %v4035_v34  ;;  %2981 = vmatpush.msra.mxu1 %v4011_v56  ;;  %v4051_v34 = vld [vmem:[%s6888_s7 + $0x50] sm:$0xff]  ;;  %v4067_v56 = vld [vmem:[%s6888_s7 + $0xc0] sm:$0xff] }
 0x355   : > { %3024 = vmatpush.msrb.mxu2 %v4040_v17  ;;  %3070 = vmatpush.msra.mxu0 %v4057_v0 }
 0x356   : > { %2994 = vmatpush.msra.mxu3 %v4034_v37  ;;  %2982 = vmatpush.msra.mxu1 %v4010_v26  ;;  %v3040_v37 = vld [vmem:[%s6888_s7 + $0x20] sm:$0xff] }
 0x357   : > { %3089 = vmatpush.msra.mxu2 %v3045_v52  ;;  %3071 = vmatpush.msra.mxu0 %v4056_v19  ;;  %v4085_v26 = vld [vmem:[%s6888_s7 + $0x140] sm:$0xff]  ;;  %v3216_v19 = vld [vmem:[%s6890_s9 + $0x28] sm:$0xff] }
 0x358   : > { %2995 = vmatpush.msra.mxu3 %v4033_v39  ;;  %2983 = vmatpush.msra.mxu1 %v4009_v5  ;;  %v4072_v39 = vld [vmem:[%s6888_s7 + $0xe8] sm:$0xff]  ;;  %v4065_v5 = vld [vmem:[%s6888_s7 + $0xb0] sm:$0xff] }
 0x359   : > { %3090 = vmatpush.msra.mxu2 %v3044_v31  ;;  %3072 = vmatpush.msra.mxu0 %v4055_v20  ;;  %v4140_v31 = vld [vmem:[%s6887_s6] ss:$0 sm:$0xff]  ;;  %v3214_v20 = vld [vmem:[%s6890_s9 + $0x18] sm:$0xff] }
 0x35a   : > { %2996 = vmatpush.msra.mxu3 %v4032_v10  ;;  %2984 = vmatpush.msra.mxu1 %v4008_v58  ;;  %v4079_v10 = vld [vmem:[%s6888_s7 + $0x118] sm:$0xff]  ;;  %v4063_v58 = vld [vmem:[%s6888_s7 + $0xa0] sm:$0xff] }
 0x35b   : > { %3091 = vmatpush.msra.mxu2 %v3043_v38  ;;  %3073 = vmatpush.msra.mxu0 %v4054_v6  ;;  %v3213_v6 = vld [vmem:[%s6890_s9 + $0x10] sm:$0xff] }
 0x35c   : > { %2997 = vmatpush.msra.mxu3 %v4031_v51  ;;  %3158 = vmatpush.msrb.mxu1 %v4083_v32  ;;  %v3039_v51 = vld [vmem:[%s6888_s7 + $0x18] sm:$0xff] }
 0x35d   : > { %3092 = vmatpush.msra.mxu2 %v3042_v27  ;;  %3074 = vmatpush.msra.mxu0 %v4053_v7  ;;  %v3212_v7 = vld [vmem:[%s6890_s9 + $0x8] sm:$0xff] }
 0x35e   : > { %2998 = vmatpush.msra.mxu3 %v4030_v14  ;;  %3159 = vmatpush.msrb.mxu1 %v4082_v35  ;;  %v4078_v14 = vld [vmem:[%s6888_s7 + $0x110] sm:$0xff] }
 0x35f   : > { %3075 = vmatpush.msra.mxu0 %v4052_v61  ;;  %3093 = vmatpush.msra.mxu2 %v3041_v22  ;;  %v3208_v22 = vld [vmem:[%s6889_s8] sm:$0x1] }
 0x360   : > { %2999 = vmatpush.msra.mxu3 %v4029_v44  ;;  %3160 = vmatpush.msrb.mxu1 %v4081_v43  ;;  %v3038_v44 = vld [vmem:[%s6888_s7 + $0x10] sm:$0xff]  ;;  %v3218_v43 = vld [vmem:[%s6890_s9 + $0x38] sm:$0xff] }
 0x361   : > { %3076 = vmatpush.msra.mxu0 %v4051_v34  ;;  %3094 = vmatpush.msra.mxu2 %v3040_v37  ;;  %v3219_v37 = vld [vmem:[%s6891_s10] sm:$0x1] }
 0x362   : > { %3000 = vmatpush.msra.mxu3 %v4028_v1  ;;  %3161 = vmatpush.msrb.mxu1 %v4080_v54  ;;  %v4077_v1 = vld [vmem:[%s6888_s7 + $0x108] sm:$0xff] }
 0x363   : > { %3123 = vmatpush.msrb.mxu0 %v4072_v39  ;;  %3095 = vmatpush.msra.mxu2 %v3039_v51 }
 0x364   : > { %3001 = vmatpush.msra.mxu3 %v4027_v40  ;;  %3162 = vmatpush.msrb.mxu1 %v4079_v10  ;;  %v3037_v40 = vld [vmem:[%s6888_s7 + $0x8] sm:$0xff] }
 0x365   : > { %3124 = vmatpush.msrb.mxu0 %v4071_v2  ;;  %3096 = vmatpush.msra.mxu2 %v3038_v44 }
 0x366   : > { %3002 = vmatpush.msra.mxu3 %v4026_v25  ;;  %3163 = vmatpush.msrb.mxu1 %v4078_v14  ;;  %v4076_v25 = vld [vmem:[%s6888_s7 + $0x100] sm:$0xff] }
 0x367   : > { %3125 = vmatpush.msrb.mxu0 %v4070_v46  ;;  %3097 = vmatpush.msra.mxu2 %v3037_v40 }
 0x368   : > { %3003 = vmatpush.msra.mxu3 %v4025_v4  ;;  %3164 = vmatpush.msrb.mxu1 %v4077_v1  ;;  %v4068_v4 = vld [vmem:[%s6888_s7 + $0xc8] sm:$0xff] }
 0x369   : > { %3126 = vmatpush.msrb.mxu0 %v4069_v57  ;;  %3098 = vmatpush.msra.mxu2 %v3036_v16 }
 0x36a   : > { %3004 = vmatpush.msra.mxu3 %v4024_v18  ;;  %3165 = vmatpush.msrb.mxu1 %v4076_v25  ;;  %v4074_v18 = vld [vmem:[%s6888_s7 + $0xf0] sm:$0xff] }
 0x36b   : > { %3127 = vmatpush.msrb.mxu0 %v4068_v4 }
 0x36c   : > { %3193 = vmatpush.msrb.mxu3 %v4094_v48  ;;  %3166 = vmatpush.msrb.mxu1 %v4075_v13 }
 0x36d   : > { %3128 = vmatpush.msrb.mxu0 %v4067_v56 }
 0x36e   : > { %3194 = vmatpush.msrb.mxu3 %v4093_v53  ;;  %3167 = vmatpush.msrb.mxu1 %v4074_v18 }
 0x36f   : > { %3129 = vmatpush.msrb.mxu0 %v4066_v62 }
 0x370   : > { %3195 = vmatpush.msrb.mxu3 %v4092_v42  ;;  %v3217_v42 = vld [vmem:[%s6890_s9 + $0x30] sm:$0xff] }
 0x371   : > { %3130 = vmatpush.msrb.mxu0 %v4065_v5 }
 0x372   : > { %3196 = vmatpush.msrb.mxu3 %v4091_v24 }
 0x373   : > { %3131 = vmatpush.msrb.mxu0 %v4064_v23 }
 0x374   : > { %3197 = vmatpush.msrb.mxu3 %v4090_v49 }
 0x375   : > { %3132 = vmatpush.msrb.mxu0 %v4063_v58 }
 0x376   : > { %3198 = vmatpush.msrb.mxu3 %v4089_v30 }
 0x378   : > { %3199 = vmatpush.msrb.mxu3 %v4088_v50 }
 0x37a   : > { %3200 = vmatpush.msrb.mxu3 %v4087_v47 }
 0x37c   : > { %3201 = vmatpush.msrb.mxu3 %v4086_v29 }
 0x37e   : > { %3202 = vmatpush.msrb.mxu3 %v4085_v26 }
 0x3b7   : > { %v2815_v60 = vpop.f32.mrf.mxu1 }
 0x3bf   : > { %v2900_v45 = vpop.f32.mrf.mxu1 }
 0x3c0   : > { %3005 = vmatmul.f32.vlgmr.msra.gmra.mxu3 %v2900_v45  ;;  %v3215_v45 = vld [vmem:[%s6890_s9 + $0x20] sm:$0xff] }
 0x3c3   : > { %v2752_v41 = vpop.f32.mrf.mxu2 }
 0x3c6   : > { %v2772_v8 = vpop.f32.mrf.mxu3  ;;  %v2792_v12 = vpop.f32.mrf.mxu0 }
 0x3c7   : > { %v2773_v63 = vadd.f32 %v2772_v8, %v2752_v41  ;;  %v3211_v41 = vld [vmem:[%s6890_s9] sm:$0xff] }
 0x3c9   : > { %v2793_v55 = vadd.f32 %v2792_v12, %v2773_v63 }
 0x3cb   : > { %v6710_v11 = vadd.f32 %v2815_v60, %v2793_v55 }
 0x3cc   : > { %v2855_v33 = vpop.f32.mrf.mxu2 }
 0x3ce   : > { %v2880_v15 = vpop.f32.mrf.mxu3  ;;  %v2835_v3 = vpop.f32.mrf.mxu0 }
 0x3cf   : > { %2985 = vmatmul.f32.vlgmr.msra.gmra.mxu1 %v2880_v15  ;;  %v2836_v60 = vadd.f32 %v2835_v3, %v6710_v11 }
 0x3d1   : > { %v2856_v52 = vadd.f32 %v2855_v33, %v2836_v60 }
 0x3d6   : > { %v2920_v59 = vpop.f32.mrf.mxu3 }
 0x3d7   : > { %4050 = vmatmul.msk.f32.vlgmr.msrb.gmra.mxu2 %vm2731_vm4, %v2920_v59 }
 0x3d8   : > { %3232 = vmatpush.msrb.mxu2 %v3218_v43 }
 0x3da   : > { %3233 = vmatpush.msrb.mxu2 %v3217_v42 }
 0x3dc   : > { %3234 = vmatpush.msrb.mxu2 %v3216_v19 }
 0x3de   : > { %3235 = vmatpush.msrb.mxu2 %v3215_v45 }
 0x3e0   : > { %3236 = vmatpush.msrb.mxu2 %v3214_v20 }
 0x3e2   : > { %3237 = vmatpush.msrb.mxu2 %v3213_v6 }
 0x3e4   : > { %3238 = vmatpush.msrb.mxu2 %v3212_v7 }
 0x3e6   : > { %3239 = vmatpush.msrb.mxu2 %v3211_v41 }
 0x443   : > { %v3006_v17 = vpop.f32.mrf.mxu3 }
 0x44c   : > { %v2986_v21 = vpop.f32.mrf.mxu1 }
 0x44d   : > { %v3007_v36 = vadd.f32 %v3006_v17, %v2986_v21 }
 0x45a   : > { %v3026_v9 = vpop.f32.mrf.mxu2 }
 0x45b   : > { %v3027_v28 = vadd.f32 %v3026_v9, %v3007_v36 }
 0x45d   : > { %v3029_v32 = vadd.f32 %v3027_v28, %v2856_v52 }
 0x45f   : > { %v3034_v48 = vadd.f32 %v4140_v31, %v3029_v32 }
 0x461   : > { %v3035_v38 = vmax.f32 %v3034_v48, 0.0 }
 0x463   : > { %4062 = vmatmul.msk.f32.vlgmr.msra.gmra.mxu2 %vm2731_vm4, %v3035_v38  ;;  %v3058_v0 = vrot.slane %v3035_v38, 1  ;;  %v3149_v35 = vrot.slane %v3035_v38, 3  ;;  %v3184_v53 = vrot.slane %v3035_v38, 4  ;;  %v3114_v27 = vrot.slane %v3035_v38, 2 }
 0x465   : > { %4061 = vmatmul.msk.f32.vlgmr.msra.gmra.mxu0 %vm2731_vm4, %v3058_v0  ;;  %4084 = vmatmul.msk.f32.vlgmr.msrb.gmra.mxu1 %vm2731_vm4, %v3149_v35 }
 0x466   : > { %4095 = vmatmul.msk.f32.vlgmr.msrb.gmra.mxu3 %vm2731_vm4, %v3184_v53 }
 0x46d   : > { %4073 = vmatmul.msk.f32.vlgmr.msrb.gmra.mxu0 %vm2731_vm4, %v3114_v27 }
 0x4e2   : > { %v3078_v61 = vpop.f32.mrf.mxu0  ;;  %v3169_v11 = vpop.f32.mrf.mxu1 }
 0x4e6   : > { %v3100_v8 = vpop.f32.mrf.mxu2 }
 0x4e7   : > { %v3101_v63 = vadd.f32 %v3100_v8, %v3078_v61 }
 0x4e9   : > { %v3204_v59 = vpop.f32.mrf.mxu3 }
 0x4ea   : > { %v3134_v12 = vpop.f32.mrf.mxu0 }
 0x4eb   : > { %v3137_v55 = vadd.f32 %v3134_v12, %v3101_v63 }
 0x4ed   : > { %v3172_v15 = vadd.f32 %v3169_v11, %v3137_v55 }
 0x4ef   : > { %v3207_v54 = vadd.f32 %v3204_v59, %v3172_v15 }
 0x4f1   : > { %v3209_v24 = vadd.f32 %v3208_v22, %v3207_v54 }
 0x4f3   : > { %v3210_v34 = vmax.f32 %v3209_v24, 0.0 }
 0x4f5   : > { %4096 = vmatmul.msk.f32.vlgmr.msrb.gmra.mxu2 %vm3220_vm5, %v3210_v34 }
 0x578   : > { %v3241_v39 = vpop.f32.mrf.mxu2 }
 0x579   : > { %v3242_v10 = vadd.f32 %v3241_v39, %v3219_v37 }
 0x57b   : > { %3247 = vrot.lane.b32.xlu0 %v3242_v10, %s4205_s28  ;;  %3245 = vst.msk [vmem:[%s406_s20] sm:$0x1] %vm3244_vm6, %v3242_v10 }
 0x57c   : > { %4168 = shalt.err (!%p4165_p3)
}
 0x57d   : > { %4100 = dma.vmem_to_hbm [thread:$0]  (%p4309_p5), %s3267_s26, 16, %s3269_s23, %s3253_s0   ;;  %vm3250_vm7 = vcmask 0  }
 0x57e   : > { %s419_s28 = scalar_lea.vmem %s6893_s12, %s4321_s15 }
 0x5ed   : > { %v3248_v49 = vpop.permute.xlu0 %3247 }
 0x5ee   : > { %3251 = vst.msk [vmem:[%s419_s28] sm:$0x1] %vm3250_vm7, %v3248_v49 }
 0x5ef PF: > { %p4106_p4 = scmp.ge.s32.totalorder %s4203_s24, 2  ;;  %s3283_s1 = sand.u32 1, %s4191_s21  }
 0x5f0   : > { %s3284_s25 = scalar_lea.sflag [#allocation3], %s3283_s1 }
 0x5f1   : > { %p4103_p7 = pnand %p4106_p4, %p4313_p6 }
 0x5f3   : > { %p4104_p8 = pneg %p4103_p7 }
 0x5f5   : > { %4186 = dma.done.wait (%p4104_p8), %s3284_s25, 16  }
 0x5f6   : > { %4188 = vsyncadd (%p4104_p8), %s3284_s25, 4294967280  ;;  %s6903_s13 = sld [smem:[#allocation5_spill]]  ;;  %p23_p5 = scmp.ge.s32.totalorder %s4296_s27, 4  }
 0x5f7   : > { %s6904_s23 = sld [smem:[#allocation6_spill]]  ;;  %s6905_s21 = smov %s4195_s22 }
 0x5f8   : > { %s6907_s24 = smov %s4296_s27  ;;  %25 = sbr.rel (!%p23_p5) target bundleno = 6 (0x6), region = 135 }
 0x5fc   : > { %s6906_s22 = smov %s6903_s13 }
 0x5fd   :  { %3295 = vsyncpa [#allocation3], 1 }
 0x5fe   :  { %3297 = vsyncpa [#allocation3 + $0x1], 1 }

</bundles_post_ra>
